<compile_context>
chip_gen: v7x
topology: tpu7x:2x2x1
jax: 0.10.0
libtpu: 0.0.40
codegen_flags: <defaults>
</compile_context>

<pallas_src>
import math
from functools import partial

import jax
import jax.numpy as jnp
from jax.experimental import pallas as pl
from jax.experimental.pallas import tpu as pltpu

MXU_DTYPE = jnp.bfloat16   # MXU operand dtype (accumulation stays f32); use jnp.float32 for exact f32
LN_EPS = 1e-5


def _gelu(x):
    # exact GELU, matches torch.nn.GELU(approximate='none')
    return 0.5 * x * (1.0 + jax.lax.erf(x * (1.0 / math.sqrt(2.0))))


def _ln_rows(x, w, b, eps):
    # LayerNorm over the last axis of a (rows, H*W) tile == nn.LayerNorm([H, W]) per channel
    m = jnp.mean(x, axis=-1, keepdims=True)
    c = x - m
    v = jnp.mean(c * c, axis=-1, keepdims=True)
    return c * jax.lax.rsqrt(v + eps) * w + b


# --------------------------------------------------------------------------------------
# Kernel 0: pos_embed add + LayerNorm1 of the first block (lane-dense (rows, H*W) tiles)
# --------------------------------------------------------------------------------------
def _prologue_kernel(x_ref, pos_ref, w_ref, b_ref, xo_ref, xn_ref, *, eps):
    x = x_ref[...] + pos_ref[...]                       # (ct, H*W)
    xo_ref[...] = x
    xn_ref[...] = _ln_rows(x, w_ref[...], b_ref[...], eps)


def prologue(x3, pos3, n1w, n1b, *, eps=LN_EPS, c_tile=8):
    B, C, L = x3.shape
    ct = min(c_tile, C)
    grid = (B, pl.cdiv(C, ct))
    act = pl.BlockSpec((None, ct, L), lambda b, c: (b, c, 0))
    pos = pl.BlockSpec((None, ct, L), lambda b, c: (0, c, 0))
    vec = pl.BlockSpec((1, L), lambda b, c: (0, 0))
    out_sds = jax.ShapeDtypeStruct((B, C, L), x3.dtype)
    return pl.pallas_call(
        partial(_prologue_kernel, eps=eps),
        out_shape=(out_sds, out_sds),
        grid=grid,
        in_specs=[act, pos, vec, vec],
        out_specs=(act, act),
        compiler_params=pltpu.CompilerParams(
            dimension_semantics=("parallel", "parallel")),
    )(x3, pos3, n1w, n1b)


# --------------------------------------------------------------------------------------
# Kernel 1/2: one attention branch (qkv Linear + per-head channel attention), fully fused.
# Input layout (B, Y, C, N):  W-branch -> (B, H, C, W),  H-branch -> (B, W, C, H).
# Attention is softmax over the channel axis C, batched over (b, y, head).
# --------------------------------------------------------------------------------------
def _branch_attn_kernel(x_ref, w_ref, b_ref, o_ref, *, num_heads, head_dim, scale):
    x = x_ref[...]                                       # (yt, C, N) f32
    yt, C, n = x.shape
    w = jnp.broadcast_to(w_ref[...].astype(MXU_DTYPE)[None], (yt, n, 3 * n))
    qkv = jnp.einsum("ycw,ywn->ycn", x.astype(MXU_DTYPE), w,
                     preferred_element_type=jnp.float32)
    qkv = qkv + b_ref[...][None]                         # (yt, C, 3N)
    for h in range(num_heads):
        lo = h * head_dim
        q = qkv[:, :, lo:lo + head_dim]
        k = qkv[:, :, n + lo:n + lo + head_dim]
        v = qkv[:, :, 2 * n + lo:2 * n + lo + head_dim]
        s = jnp.einsum("ycd,yed->yce", q.astype(MXU_DTYPE), k.astype(MXU_DTYPE),
                       preferred_element_type=jnp.float32) * scale
        s = s - jnp.max(s, axis=-1, keepdims=True)
        p = jnp.exp(s)
        denom = jnp.sum(p, axis=-1, keepdims=True)
        o = jnp.einsum("yce,yed->ycd", p.astype(MXU_DTYPE), v.astype(MXU_DTYPE),
                       preferred_element_type=jnp.float32)
        o = o * pl.reciprocal(denom, approx=True)        # normalize output, EUP reciprocal
        o_ref[:, :, lo:lo + head_dim] = o.astype(o_ref.dtype)


def branch_attention(xb, w, b, *, num_heads, y_tile=8):
    B, Y, C, N = xb.shape
    assert N % num_heads == 0
    head_dim = N // num_heads
    scale = head_dim ** (-0.5)
    yt = min(y_tile, Y)
    grid = (B, pl.cdiv(Y, yt))
    blk = pl.BlockSpec((None, yt, C, N), lambda i, j: (i, j, 0, 0))
    return pl.pallas_call(
        partial(_branch_attn_kernel, num_heads=num_heads,
                head_dim=head_dim, scale=scale),
        out_shape=jax.ShapeDtypeStruct((B, Y, C, N), xb.dtype),
        grid=grid,
        in_specs=[blk,
                  pl.BlockSpec((N, 3 * N), lambda i, j: (0, 0)),
                  pl.BlockSpec((1, 3 * N), lambda i, j: (0, 0))],
        out_specs=blk,
        compiler_params=pltpu.CompilerParams(
            dimension_semantics=("parallel", "parallel")),
    )(xb, w, b)


# --------------------------------------------------------------------------------------
# Kernel 3: combine branches + proj(1x1) + residual + LN2 + conv-MLP(GELU) + residual,
# plus the next block's LayerNorm1 (or final GELU+LayerNorm). Lane-dense (C, H*W) tiles.
# --------------------------------------------------------------------------------------
def _fuse_kernel(aw_ref, ah_ref, x_ref, pw_ref, pb_ref, n2w_ref, n2b_ref,
                 w1_ref, b1_ref, w2_ref, b2_ref, auxw_ref, auxb_ref,
                 xo_ref, aux_ref, *, eps, aux_pre_gelu):
    x = x_ref[...]                                       # (C, L) f32 residual stream
    att = aw_ref[...] + ah_ref[...]                      # combined branch outputs (C, L)
    y = jnp.dot(pw_ref[...].astype(MXU_DTYPE), att.astype(MXU_DTYPE),
                preferred_element_type=jnp.float32) + pb_ref[...]
    x = x + y                                            # residual 1 (fused)
    xn = _ln_rows(x, n2w_ref[...], n2b_ref[...], eps)
    h = jnp.dot(w1_ref[...].astype(MXU_DTYPE), xn.astype(MXU_DTYPE),
                preferred_element_type=jnp.float32) + b1_ref[...]
    h = _gelu(h)
    z = jnp.dot(w2_ref[...].astype(MXU_DTYPE), h.astype(MXU_DTYPE),
                preferred_element_type=jnp.float32) + b2_ref[...]
    x = x + z                                            # residual 2 (fused)
    xo_ref[...] = x.astype(xo_ref.dtype)
    a = _gelu(x) if aux_pre_gelu else x                  # final GELU only for last block
    aux_ref[...] = _ln_rows(a, auxw_ref[...], auxb_ref[...], eps).astype(aux_ref.dtype)


def fuse_proj_mlp(aw3, ah3, x3, bp, aux_w, aux_b, *, aux_pre_gelu, eps=LN_EPS):
    B, C, L = x3.shape
    act = pl.BlockSpec((None, C, L), lambda b: (b, 0, 0))

    def cst(a):
        nd = a.ndim
        return pl.BlockSpec(a.shape, lambda b, _nd=nd: (0,) * _nd)

    weights = [bp["proj_w"], bp["proj_b"], bp["n2_w"], bp["n2_b"],
               bp["c1_w"], bp["c1_b"], bp["c2_w"], bp["c2_b"], aux_w, aux_b]
    out_sds = jax.ShapeDtypeStruct((B, C, L), x3.dtype)
    return pl.pallas_call(
        partial(_fuse_kernel, eps=eps, aux_pre_gelu=aux_pre_gelu),
        out_shape=(out_sds, out_sds),
        grid=(B,),
        in_specs=[act, act, act] + [cst(w) for w in weights],
        out_specs=(act, act),
        compiler_params=pltpu.CompilerParams(dimension_semantics=("parallel",)),
    )(aw3, ah3, x3, *weights)


# --------------------------------------------------------------------------------------
# model glue
# --------------------------------------------------------------------------------------
def block_forward(x3, xn3, bp, aux_w, aux_b, *, num_heads, H, W, last):
    B, C, L = x3.shape
    xn4 = xn3.reshape(B, C, H, W)
    # the only remaining XLA relayouts: small axis swaps feeding each attention branch
    xw = jnp.transpose(xn4, (0, 2, 1, 3))                # (B, H, C, W)
    xh = jnp.transpose(xn4, (0, 3, 1, 2))                # (B, W, C, H)
    aw = branch_attention(xw, bp["qkv_W_w"], bp["qkv_W_b"], num_heads=num_heads)
    ah = branch_attention(xh, bp["qkv_H_w"], bp["qkv_H_b"], num_heads=num_heads)
    aw_nat = jnp.transpose(aw, (0, 2, 1, 3)).reshape(B, C, L)   # -> (B, C, H*W)
    ah_nat = jnp.transpose(ah, (0, 2, 3, 1)).reshape(B, C, L)   # -> (B, C, H*W)
    return fuse_proj_mlp(aw_nat, ah_nat, x3, bp, aux_w, aux_b, aux_pre_gelu=last)


def hmvit_block_forward(x, params, num_heads):
    B, C, H, W = x.shape
    L = H * W
    blocks = params["blocks"]
    depth = len(blocks)
    x3 = x.reshape(B, C, L)
    # pos_embed add + LayerNorm1 of block 0, fused
    x3, xn3 = prologue(x3, params["pos_embed"], blocks[0]["n1_w"], blocks[0]["n1_b"])
    for i, bp in enumerate(blocks):
        last = (i == depth - 1)
        if last:
            aux_w, aux_b = params["norm_w"], params["norm_b"]       # final GELU + LayerNorm
        else:
            aux_w, aux_b = blocks[i + 1]["n1_w"], blocks[i + 1]["n1_b"]  # next block's LN1
        x3, xn3 = block_forward(x3, xn3, bp, aux_w, aux_b,
                                num_heads=num_heads, H=H, W=W, last=last)
    # for the last block, xn3 holds LayerNorm(GELU(x)) == model output
    return xn3.reshape(B, C, H, W)


# --------------------------------------------------------------------------------------
# params (stored in kernel-ready layouts; equivalent to the PyTorch module parameters:
# Linear weights transposed to (in, out), conv 1x1 weights as (out, in), LN weights as (1, H*W))
# --------------------------------------------------------------------------------------
def init_params(key, *, C, H, W, depth, ratio):
    L = H * W
    hidden = int(C * ratio)
    keys = jax.random.split(key, 1 + depth)
    params = {
        "pos_embed": 0.02 * jax.random.normal(keys[0], (1, C, L), jnp.float32),
        "norm_w": jnp.ones((1, L), jnp.float32),
        "norm_b": jnp.zeros((1, L), jnp.float32),
        "blocks": [],
    }
    for d in range(depth):
        ks = jax.random.split(keys[1 + d], 8)
        bp = {
            "n1_w": jnp.ones((1, L), jnp.float32),
            "n1_b": jnp.zeros((1, L), jnp.float32),
            "n2_w": jnp.ones((1, L), jnp.float32),
            "n2_b": jnp.zeros((1, L), jnp.float32),
            "qkv_W_w": 0.05 * jax.random.normal(ks[0], (W, 3 * W), jnp.float32),
            "qkv_W_b": 0.01 * jax.random.normal(ks[1], (1, 3 * W), jnp.float32),
            "qkv_H_w": 0.05 * jax.random.normal(ks[2], (H, 3 * H), jnp.float32),
            "qkv_H_b": 0.01 * jax.random.normal(ks[3], (1, 3 * H), jnp.float32),
            "proj_w": 0.05 * jax.random.normal(ks[4], (C, C), jnp.float32),
            "proj_b": jnp.zeros((C, 1), jnp.float32),
            "c1_w": 0.05 * jax.random.normal(ks[5], (hidden, C), jnp.float32),
            "c1_b": 0.01 * jax.random.normal(ks[6], (hidden, 1), jnp.float32),
            "c2_w": 0.05 * jax.random.normal(ks[7], (C, hidden), jnp.float32),
            "c2_b": jnp.zeros((C, 1), jnp.float32),
        }
        params["blocks"].append(bp)
    return params


# --------------------------------------------------------------------------------------
# main
# --------------------------------------------------------------------------------------
if __name__ == "__main__":
    # small shapes consistent with HMVIT_block(C, H, W, depth, num_heads, ratio)
    B, C, H, W = 2, 8, 16, 16
    depth, num_heads, ratio = 2, 2, 2

    key = jax.random.PRNGKey(0)
    kx, kp = jax.random.split(key)
    x = jax.random.normal(kx, (B, C, H, W), jnp.float32)
    params = init_params(kp, C=C, H=H, W=W, depth=depth, ratio=ratio)

    fwd = jax.jit(lambda xx, pp: hmvit_block_forward(xx, pp, num_heads))
    out = fwd(x, params)
    out = jax.block_until_ready(out)

    assert out.shape == (B, C, H, W)
    assert out.dtype == jnp.float32
    assert bool(jnp.all(jnp.isfinite(out)))
    print("KERNEL_OK")
</pallas_src>

<mosaic_0001>
module attributes {stable_mosaic.version = 11 : i64} {
  func.func @_prologue_kernel(%arg0: i32, %arg1: i32, %arg2: memref<1x8x256xf32, #tpu.memory_space<vmem>>, %arg3: memref<1x8x256xf32, #tpu.memory_space<vmem>>, %arg4: memref<1x256xf32, #tpu.memory_space<vmem>>, %arg5: memref<1x256xf32, #tpu.memory_space<vmem>>, %arg6: memref<1x8x256xf32, #tpu.memory_space<vmem>>, %arg7: memref<1x8x256xf32, #tpu.memory_space<vmem>>) attributes {dimension_semantics = [#tpu.dimension_semantics<parallel>, #tpu.dimension_semantics<parallel>], iteration_bounds = array<i64: 2, 1>, scalar_prefetch = 0 : i64, scratch_operands = 0 : i64, tpu.core_type = #tpu.core_type<tc>, window_params = [{transform_indices = @transform_0, window_bounds = array<i64: 1, 8, 256>}, {transform_indices = @transform_1, window_bounds = array<i64: 1, 8, 256>}, {pipeline_mode = #tpu.pipeline_mode<synchronous>, transform_indices = @transform_2, window_bounds = array<i64: 1, 256>}, {pipeline_mode = #tpu.pipeline_mode<synchronous>, transform_indices = @transform_3, window_bounds = array<i64: 1, 256>}, {transform_indices = @transform_4, window_bounds = array<i64: 1, 8, 256>}, {transform_indices = @transform_5, window_bounds = array<i64: 1, 8, 256>}]} {
    %c0 = arith.constant 0 : index
    %c0_0 = arith.constant 0 : index
    %c0_1 = arith.constant 0 : index
    %0 = vector.load %arg2[%c0, %c0_0, %c0_1] : memref<1x8x256xf32, #tpu.memory_space<vmem>>, vector<1x8x256xf32>
    %1 = vector.shape_cast %0 : vector<1x8x256xf32> to vector<8x256xf32>
    %c0_2 = arith.constant 0 : index
    %c0_3 = arith.constant 0 : index
    %c0_4 = arith.constant 0 : index
    %2 = vector.load %arg3[%c0_2, %c0_3, %c0_4] : memref<1x8x256xf32, #tpu.memory_space<vmem>>, vector<1x8x256xf32>
    %3 = vector.shape_cast %2 : vector<1x8x256xf32> to vector<8x256xf32>
    %4 = arith.addf %1, %3 : vector<8x256xf32>
    %c0_5 = arith.constant 0 : index
    %c0_6 = arith.constant 0 : index
    %c0_7 = arith.constant 0 : index
    %5 = vector.load %arg6[%c0_5, %c0_6, %c0_7] : memref<1x8x256xf32, #tpu.memory_space<vmem>>, vector<1x8x256xf32>
    %6 = vector.shape_cast %5 : vector<1x8x256xf32> to vector<8x256xf32>
    %7 = vector.shape_cast %4 : vector<8x256xf32> to vector<1x8x256xf32>
    tpu.vector_store %arg6[%c0_5, %c0_6, %c0_7], %7 {strides = array<i32>} : memref<1x8x256xf32, #tpu.memory_space<vmem>>, vector<1x8x256xf32>,
    %c0_8 = arith.constant 0 : index
    %c0_9 = arith.constant 0 : index
    %8 = vector.load %arg4[%c0_8, %c0_9] : memref<1x256xf32, #tpu.memory_space<vmem>>, vector<1x256xf32>
    %c0_10 = arith.constant 0 : index
    %c0_11 = arith.constant 0 : index
    %9 = vector.load %arg5[%c0_10, %c0_11] : memref<1x256xf32, #tpu.memory_space<vmem>>, vector<1x256xf32>
    %cst = arith.constant dense<0.000000e+00> : vector<8xf32>
    %10 = vector.multi_reduction <add>, %4, %cst [1] : vector<8x256xf32> to vector<8xf32>
    %11 = vector.shape_cast %10 : vector<8xf32> to vector<8x1xf32>
    %cst_12 = arith.constant 2.560000e+02 : f32
    %12 = vector.broadcast %cst_12 : f32 to vector<8x1xf32>
    %13 = arith.divf %11, %12 : vector<8x1xf32>
    %14 = vector.broadcast %13 : vector<8x1xf32> to vector<8x256xf32>
    %15 = arith.subf %4, %14 : vector<8x256xf32>
    %16 = arith.mulf %15, %15 : vector<8x256xf32>
    %cst_13 = arith.constant dense<0.000000e+00> : vector<8xf32>
    %17 = vector.multi_reduction <add>, %16, %cst_13 [1] : vector<8x256xf32> to vector<8xf32>
    %18 = vector.shape_cast %17 : vector<8xf32> to vector<8x1xf32>
    %cst_14 = arith.constant 2.560000e+02 : f32
    %19 = vector.broadcast %cst_14 : f32 to vector<8x1xf32>
    %20 = arith.divf %18, %19 : vector<8x1xf32>
    %cst_15 = arith.constant 9.99999974E-6 : f32
    %21 = vector.broadcast %cst_15 : f32 to vector<8x1xf32>
    %22 = arith.addf %20, %21 : vector<8x1xf32>
    %23 = math.rsqrt %22 : vector<8x1xf32>
    %24 = vector.broadcast %23 : vector<8x1xf32> to vector<8x256xf32>
    %25 = arith.mulf %15, %24 : vector<8x256xf32>
    %26 = vector.broadcast %8 : vector<1x256xf32> to vector<8x256xf32>
    %27 = arith.mulf %25, %26 : vector<8x256xf32>
    %28 = vector.broadcast %9 : vector<1x256xf32> to vector<8x256xf32>
    %29 = arith.addf %27, %28 : vector<8x256xf32>
    %c0_16 = arith.constant 0 : index
    %c0_17 = arith.constant 0 : index
    %c0_18 = arith.constant 0 : index
    %30 = vector.load %arg7[%c0_16, %c0_17, %c0_18] : memref<1x8x256xf32, #tpu.memory_space<vmem>>, vector<1x8x256xf32>
    %31 = vector.shape_cast %30 : vector<1x8x256xf32> to vector<8x256xf32>
    %32 = vector.shape_cast %29 : vector<8x256xf32> to vector<1x8x256xf32>
    tpu.vector_store %arg7[%c0_16, %c0_17, %c0_18], %32 {strides = array<i32>} : memref<1x8x256xf32, #tpu.memory_space<vmem>>, vector<1x8x256xf32>,
    return
  }
  func.func @transform_0(%arg0: i32, %arg1: i32) -> (i32, i32, i32) {
    %c0_i32 = arith.constant 0 : i32
    %c0_i32_0 = arith.constant 0 : i32
    return %arg0, %arg1, %c0_i32 : i32, i32, i32
  }
  func.func @transform_1(%arg0: i32, %arg1: i32) -> (i32, i32, i32) {
    %c0_i32 = arith.constant 0 : i32
    %c0_i32_0 = arith.constant 0 : i32
    %c0_i32_1 = arith.constant 0 : i32
    return %c0_i32, %arg1, %c0_i32_0 : i32, i32, i32
  }
  func.func @transform_2(%arg0: i32, %arg1: i32) -> (i32, i32) {
    %c0_i32 = arith.constant 0 : i32
    %c0_i32_0 = arith.constant 0 : i32
    %c0_i32_1 = arith.constant 0 : i32
    return %c0_i32, %c0_i32_0 : i32, i32
  }
  func.func @transform_3(%arg0: i32, %arg1: i32) -> (i32, i32) {
    %c0_i32 = arith.constant 0 : i32
    %c0_i32_0 = arith.constant 0 : i32
    %c0_i32_1 = arith.constant 0 : i32
    return %c0_i32, %c0_i32_0 : i32, i32
  }
  func.func @transform_4(%arg0: i32, %arg1: i32) -> (i32, i32, i32) {
    %c0_i32 = arith.constant 0 : i32
    %c0_i32_0 = arith.constant 0 : i32
    return %arg0, %arg1, %c0_i32 : i32, i32, i32
  }
  func.func @transform_5(%arg0: i32, %arg1: i32) -> (i32, i32, i32) {
    %c0_i32 = arith.constant 0 : i32
    %c0_i32_0 = arith.constant 0 : i32
    return %arg0, %arg1, %c0_i32 : i32, i32, i32
  }
}

module attributes {stable_mosaic.version = 11 : i64} {
  func.func @_branch_attn_kernel(%arg0: i32, %arg1: i32, %arg2: memref<1x8x8x16xf32, #tpu.memory_space<vmem>>, %arg3: memref<16x48xf32, #tpu.memory_space<vmem>>, %arg4: memref<1x48xf32, #tpu.memory_space<vmem>>, %arg5: memref<1x8x8x16xf32, #tpu.memory_space<vmem>>) attributes {dimension_semantics = [#tpu.dimension_semantics<parallel>, #tpu.dimension_semantics<parallel>], iteration_bounds = array<i64: 2, 2>, scalar_prefetch = 0 : i64, scratch_operands = 0 : i64, tpu.core_type = #tpu.core_type<tc>, window_params = [{transform_indices = @transform_0, window_bounds = array<i64: 1, 8, 8, 16>}, {pipeline_mode = #tpu.pipeline_mode<synchronous>, transform_indices = @transform_1, window_bounds = array<i64: 16, 48>}, {pipeline_mode = #tpu.pipeline_mode<synchronous>, transform_indices = @transform_2, window_bounds = array<i64: 1, 48>}, {transform_indices = @transform_3, window_bounds = array<i64: 1, 8, 8, 16>}]} {
    %c0 = arith.constant 0 : index
    %c0_0 = arith.constant 0 : index
    %c0_1 = arith.constant 0 : index
    %c0_2 = arith.constant 0 : index
    %0 = vector.load %arg2[%c0, %c0_0, %c0_1, %c0_2] : memref<1x8x8x16xf32, #tpu.memory_space<vmem>>, vector<1x8x8x16xf32>
    %1 = vector.shape_cast %0 : vector<1x8x8x16xf32> to vector<8x8x16xf32>
    %c0_3 = arith.constant 0 : index
    %c0_4 = arith.constant 0 : index
    %2 = vector.load %arg3[%c0_3, %c0_4] : memref<16x48xf32, #tpu.memory_space<vmem>>, vector<16x48xf32>
    %3 = arith.truncf %2 : vector<16x48xf32> to vector<16x48xbf16>
    %4 = vector.shape_cast %3 : vector<16x48xbf16> to vector<1x16x48xbf16>
    %5 = vector.shape_cast %4 : vector<1x16x48xbf16> to vector<1x16x48xbf16>
    %6 = vector.broadcast %5 : vector<1x16x48xbf16> to vector<8x16x48xbf16>
    %7 = arith.truncf %1 : vector<8x8x16xf32> to vector<8x8x16xbf16>
    "tpu.trace_start"() <{level = 10 : i32, message = "ycw,ywn->ycn"}> : () -> ()
    %cst = arith.constant dense<0.000000e+00> : vector<8x8x48xf32>
    %8 = tpu.matmul %7, %6, %cst {dimension_numbers = #tpu.dot_dimension_numbers<[2], [1], [1], [2], [0, 0, 0, 1, 1, 2], [0], [0]>} : vector<8x8x16xbf16>, vector<8x16x48xbf16>, vector<8x8x48xf32> -> vector<8x8x48xf32>
    "tpu.trace_stop"() : () -> ()
    %c0_5 = arith.constant 0 : index
    %c0_6 = arith.constant 0 : index
    %9 = vector.load %arg4[%c0_5, %c0_6] : memref<1x48xf32, #tpu.memory_space<vmem>>, vector<1x48xf32>
    %10 = vector.shape_cast %9 : vector<1x48xf32> to vector<1x1x48xf32>
    %11 = vector.broadcast %10 : vector<1x1x48xf32> to vector<8x8x48xf32>
    %12 = arith.addf %8, %11 : vector<8x8x48xf32>
    %13 = vector.extract_strided_slice %12 {offsets = [0, 0, 0], sizes = [8, 8, 8], strides = [1, 1, 1]} : vector<8x8x48xf32> to vector<8x8x8xf32>
    %14 = vector.extract_strided_slice %12 {offsets = [0, 0, 16], sizes = [8, 8, 8], strides = [1, 1, 1]} : vector<8x8x48xf32> to vector<8x8x8xf32>
    %15 = vector.extract_strided_slice %12 {offsets = [0, 0, 32], sizes = [8, 8, 8], strides = [1, 1, 1]} : vector<8x8x48xf32> to vector<8x8x8xf32>
    %16 = arith.truncf %13 : vector<8x8x8xf32> to vector<8x8x8xbf16>
    %17 = arith.truncf %14 : vector<8x8x8xf32> to vector<8x8x8xbf16>
    "tpu.trace_start"() <{level = 10 : i32, message = "ycd,yed->yce"}> : () -> ()
    %cst_7 = arith.constant dense<0.000000e+00> : vector<8x8x8xf32>
    %18 = tpu.matmul %16, %17, %cst_7 {dimension_numbers = #tpu.dot_dimension_numbers<[2], [2], [1], [1], [0, 0, 0, 1, 1, 1], [0], [0]>} : vector<8x8x8xbf16>, vector<8x8x8xbf16>, vector<8x8x8xf32> -> vector<8x8x8xf32>
    "tpu.trace_stop"() : () -> ()
    %cst_8 = arith.constant 0.353553385 : f32
    %19 = vector.broadcast %cst_8 : f32 to vector<8x8x8xf32>
    %20 = arith.mulf %18, %19 : vector<8x8x8xf32>
    %cst_9 = arith.constant dense<0xFF800000> : vector<8x8xf32>
    %21 = vector.multi_reduction <maximumf>, %20, %cst_9 [2] : vector<8x8x8xf32> to vector<8x8xf32>
    %22 = vector.shape_cast %21 : vector<8x8xf32> to vector<8x8x1xf32>
    %23 = vector.broadcast %22 : vector<8x8x1xf32> to vector<8x8x8xf32>
    %24 = arith.subf %20, %23 : vector<8x8x8xf32>
    %25 = math.exp %24 : vector<8x8x8xf32>
    %cst_10 = arith.constant dense<0.000000e+00> : vector<8x8xf32>
    %26 = vector.multi_reduction <add>, %25, %cst_10 [2] : vector<8x8x8xf32> to vector<8x8xf32>
    %27 = vector.shape_cast %26 : vector<8x8xf32> to vector<8x8x1xf32>
    %28 = arith.truncf %25 : vector<8x8x8xf32> to vector<8x8x8xbf16>
    %29 = arith.truncf %15 : vector<8x8x8xf32> to vector<8x8x8xbf16>
    "tpu.trace_start"() <{level = 10 : i32, message = "yce,yed->ycd"}> : () -> ()
    %cst_11 = arith.constant dense<0.000000e+00> : vector<8x8x8xf32>
    %30 = tpu.matmul %28, %29, %cst_11 {dimension_numbers = #tpu.dot_dimension_numbers<[2], [1], [1], [2], [0, 0, 0, 1, 1, 2], [0], [0]>} : vector<8x8x8xbf16>, vector<8x8x8xbf16>, vector<8x8x8xf32> -> vector<8x8x8xf32>
    "tpu.trace_stop"() : () -> ()
    %31 = tpu.reciprocal %27 {approx = true} : vector<8x8x1xf32> -> vector<8x8x1xf32>
    %32 = vector.broadcast %31 : vector<8x8x1xf32> to vector<8x8x8xf32>
    %33 = arith.mulf %30, %32 : vector<8x8x8xf32>
    %c0_12 = arith.constant 0 : index
    %c0_13 = arith.constant 0 : index
    %c0_14 = arith.constant 0 : index
    %c0_15 = arith.constant 0 : index
    %34 = vector.load %arg5[%c0_12, %c0_13, %c0_14, %c0_15] : memref<1x8x8x16xf32, #tpu.memory_space<vmem>>, vector<1x8x8x8xf32>
    %35 = vector.shape_cast %34 : vector<1x8x8x8xf32> to vector<8x8x8xf32>
    %36 = vector.shape_cast %33 : vector<8x8x8xf32> to vector<1x8x8x8xf32>
    tpu.vector_store %arg5[%c0_12, %c0_13, %c0_14, %c0_15], %36 {strides = array<i32>} : memref<1x8x8x16xf32, #tpu.memory_space<vmem>>, vector<1x8x8x8xf32>,
    %37 = vector.extract_strided_slice %12 {offsets = [0, 0, 8], sizes = [8, 8, 8], strides = [1, 1, 1]} : vector<8x8x48xf32> to vector<8x8x8xf32>
    %38 = vector.extract_strided_slice %12 {offsets = [0, 0, 24], sizes = [8, 8, 8], strides = [1, 1, 1]} : vector<8x8x48xf32> to vector<8x8x8xf32>
    %39 = vector.extract_strided_slice %12 {offsets = [0, 0, 40], sizes = [8, 8, 8], strides = [1, 1, 1]} : vector<8x8x48xf32> to vector<8x8x8xf32>
    %40 = arith.truncf %37 : vector<8x8x8xf32> to vector<8x8x8xbf16>
    %41 = arith.truncf %38 : vector<8x8x8xf32> to vector<8x8x8xbf16>
    "tpu.trace_start"() <{level = 10 : i32, message = "ycd,yed->yce"}> : () -> ()
    %cst_16 = arith.constant dense<0.000000e+00> : vector<8x8x8xf32>
    %42 = tpu.matmul %40, %41, %cst_16 {dimension_numbers = #tpu.dot_dimension_numbers<[2], [2], [1], [1], [0, 0, 0, 1, 1, 1], [0], [0]>} : vector<8x8x8xbf16>, vector<8x8x8xbf16>, vector<8x8x8xf32> -> vector<8x8x8xf32>
    "tpu.trace_stop"() : () -> ()
    %cst_17 = arith.constant 0.353553385 : f32
    %43 = vector.broadcast %cst_17 : f32 to vector<8x8x8xf32>
    %44 = arith.mulf %42, %43 : vector<8x8x8xf32>
    %cst_18 = arith.constant dense<0xFF800000> : vector<8x8xf32>
    %45 = vector.multi_reduction <maximumf>, %44, %cst_18 [2] : vector<8x8x8xf32> to vector<8x8xf32>
    %46 = vector.shape_cast %45 : vector<8x8xf32> to vector<8x8x1xf32>
    %47 = vector.broadcast %46 : vector<8x8x1xf32> to vector<8x8x8xf32>
    %48 = arith.subf %44, %47 : vector<8x8x8xf32>
    %49 = math.exp %48 : vector<8x8x8xf32>
    %cst_19 = arith.constant dense<0.000000e+00> : vector<8x8xf32>
    %50 = vector.multi_reduction <add>, %49, %cst_19 [2] : vector<8x8x8xf32> to vector<8x8xf32>
    %51 = vector.shape_cast %50 : vector<8x8xf32> to vector<8x8x1xf32>
    %52 = arith.truncf %49 : vector<8x8x8xf32> to vector<8x8x8xbf16>
    %53 = arith.truncf %39 : vector<8x8x8xf32> to vector<8x8x8xbf16>
    "tpu.trace_start"() <{level = 10 : i32, message = "yce,yed->ycd"}> : () -> ()
    %cst_20 = arith.constant dense<0.000000e+00> : vector<8x8x8xf32>
    %54 = tpu.matmul %52, %53, %cst_20 {dimension_numbers = #tpu.dot_dimension_numbers<[2], [1], [1], [2], [0, 0, 0, 1, 1, 2], [0], [0]>} : vector<8x8x8xbf16>, vector<8x8x8xbf16>, vector<8x8x8xf32> -> vector<8x8x8xf32>
    "tpu.trace_stop"() : () -> ()
    %55 = tpu.reciprocal %51 {approx = true} : vector<8x8x1xf32> -> vector<8x8x1xf32>
    %56 = vector.broadcast %55 : vector<8x8x1xf32> to vector<8x8x8xf32>
    %57 = arith.mulf %54, %56 : vector<8x8x8xf32>
    %c0_21 = arith.constant 0 : index
    %c0_22 = arith.constant 0 : index
    %c0_23 = arith.constant 0 : index
    %c8 = arith.constant 8 : index
    %58 = vector.load %arg5[%c0_21, %c0_22, %c0_23, %c8] : memref<1x8x8x16xf32, #tpu.memory_space<vmem>>, vector<1x8x8x8xf32>
    %59 = vector.shape_cast %58 : vector<1x8x8x8xf32> to vector<8x8x8xf32>
    %60 = vector.shape_cast %57 : vector<8x8x8xf32> to vector<1x8x8x8xf32>
    tpu.vector_store %arg5[%c0_21, %c0_22, %c0_23, %c8], %60 {strides = array<i32>} : memref<1x8x8x16xf32, #tpu.memory_space<vmem>>, vector<1x8x8x8xf32>,
    return
  }
  func.func @transform_0(%arg0: i32, %arg1: i32) -> (i32, i32, i32, i32) {
    %c0_i32 = arith.constant 0 : i32
    %c0_i32_0 = arith.constant 0 : i32
    %c0_i32_1 = arith.constant 0 : i32
    return %arg0, %arg1, %c0_i32, %c0_i32_0 : i32, i32, i32, i32
  }
  func.func @transform_1(%arg0: i32, %arg1: i32) -> (i32, i32) {
    %c0_i32 = arith.constant 0 : i32
    %c0_i32_0 = arith.constant 0 : i32
    %c0_i32_1 = arith.constant 0 : i32
    return %c0_i32, %c0_i32_0 : i32, i32
  }
  func.func @transform_2(%arg0: i32, %arg1: i32) -> (i32, i32) {
    %c0_i32 = arith.constant 0 : i32
    %c0_i32_0 = arith.constant 0 : i32
    %c0_i32_1 = arith.constant 0 : i32
    return %c0_i32, %c0_i32_0 : i32, i32
  }
  func.func @transform_3(%arg0: i32, %arg1: i32) -> (i32, i32, i32, i32) {
    %c0_i32 = arith.constant 0 : i32
    %c0_i32_0 = arith.constant 0 : i32
    %c0_i32_1 = arith.constant 0 : i32
    return %arg0, %arg1, %c0_i32, %c0_i32_0 : i32, i32, i32, i32
  }
}

module attributes {stable_mosaic.version = 11 : i64} {
  func.func @_fuse_kernel(%arg0: i32, %arg1: memref<1x8x256xf32, #tpu.memory_space<vmem>>, %arg2: memref<1x8x256xf32, #tpu.memory_space<vmem>>, %arg3: memref<1x8x256xf32, #tpu.memory_space<vmem>>, %arg4: memref<8x8xf32, #tpu.memory_space<vmem>>, %arg5: memref<8x1xf32, #tpu.memory_space<vmem>>, %arg6: memref<1x256xf32, #tpu.memory_space<vmem>>, %arg7: memref<1x256xf32, #tpu.memory_space<vmem>>, %arg8: memref<16x8xf32, #tpu.memory_space<vmem>>, %arg9: memref<16x1xf32, #tpu.memory_space<vmem>>, %arg10: memref<8x16xf32, #tpu.memory_space<vmem>>, %arg11: memref<8x1xf32, #tpu.memory_space<vmem>>, %arg12: memref<1x256xf32, #tpu.memory_space<vmem>>, %arg13: memref<1x256xf32, #tpu.memory_space<vmem>>, %arg14: memref<1x8x256xf32, #tpu.memory_space<vmem>>, %arg15: memref<1x8x256xf32, #tpu.memory_space<vmem>>) attributes {dimension_semantics = [#tpu.dimension_semantics<parallel>], iteration_bounds = array<i64: 2>, scalar_prefetch = 0 : i64, scratch_operands = 0 : i64, tpu.core_type = #tpu.core_type<tc>, window_params = [{transform_indices = @transform_0, window_bounds = array<i64: 1, 8, 256>}, {transform_indices = @transform_1, window_bounds = array<i64: 1, 8, 256>}, {transform_indices = @transform_2, window_bounds = array<i64: 1, 8, 256>}, {pipeline_mode = #tpu.pipeline_mode<synchronous>, transform_indices = @transform_3, window_bounds = array<i64: 8, 8>}, {pipeline_mode = #tpu.pipeline_mode<synchronous>, transform_indices = @transform_4, window_bounds = array<i64: 8, 1>}, {pipeline_mode = #tpu.pipeline_mode<synchronous>, transform_indices = @transform_5, window_bounds = array<i64: 1, 256>}, {pipeline_mode = #tpu.pipeline_mode<synchronous>, transform_indices = @transform_6, window_bounds = array<i64: 1, 256>}, {pipeline_mode = #tpu.pipeline_mode<synchronous>, transform_indices = @transform_7, window_bounds = array<i64: 16, 8>}, {pipeline_mode = #tpu.pipeline_mode<synchronous>, transform_indices = @transform_8, window_bounds = array<i64: 16, 1>}, {pipeline_mode = #tpu.pipeline_mode<synchronous>, transform_indices = @transform_9, window_bounds = array<i64: 8, 16>}, {pipeline_mode = #tpu.pipeline_mode<synchronous>, transform_indices = @transform_10, window_bounds = array<i64: 8, 1>}, {pipeline_mode = #tpu.pipeline_mode<synchronous>, transform_indices = @transform_11, window_bounds = array<i64: 1, 256>}, {pipeline_mode = #tpu.pipeline_mode<synchronous>, transform_indices = @transform_12, window_bounds = array<i64: 1, 256>}, {transform_indices = @transform_13, window_bounds = array<i64: 1, 8, 256>}, {transform_indices = @transform_14, window_bounds = array<i64: 1, 8, 256>}]} {
    %c0 = arith.constant 0 : index
    %c0_0 = arith.constant 0 : index
    %c0_1 = arith.constant 0 : index
    %0 = vector.load %arg3[%c0, %c0_0, %c0_1] : memref<1x8x256xf32, #tpu.memory_space<vmem>>, vector<1x8x256xf32>
    %1 = vector.shape_cast %0 : vector<1x8x256xf32> to vector<8x256xf32>
    %c0_2 = arith.constant 0 : index
    %c0_3 = arith.constant 0 : index
    %c0_4 = arith.constant 0 : index
    %2 = vector.load %arg1[%c0_2, %c0_3, %c0_4] : memref<1x8x256xf32, #tpu.memory_space<vmem>>, vector<1x8x256xf32>
    %3 = vector.shape_cast %2 : vector<1x8x256xf32> to vector<8x256xf32>
    %c0_5 = arith.constant 0 : index
    %c0_6 = arith.constant 0 : index
    %c0_7 = arith.constant 0 : index
    %4 = vector.load %arg2[%c0_5, %c0_6, %c0_7] : memref<1x8x256xf32, #tpu.memory_space<vmem>>, vector<1x8x256xf32>
    %5 = vector.shape_cast %4 : vector<1x8x256xf32> to vector<8x256xf32>
    %6 = arith.addf %3, %5 : vector<8x256xf32>
    %c0_8 = arith.constant 0 : index
    %c0_9 = arith.constant 0 : index
    %7 = vector.load %arg4[%c0_8, %c0_9] : memref<8x8xf32, #tpu.memory_space<vmem>>, vector<8x8xf32>
    %8 = arith.truncf %7 : vector<8x8xf32> to vector<8x8xbf16>
    %9 = arith.truncf %6 : vector<8x256xf32> to vector<8x256xbf16>
    %cst = arith.constant dense<0.000000e+00> : vector<8x256xf32>
    %10 = tpu.matmul %8, %9, %cst {dimension_numbers = #tpu.dot_dimension_numbers<[1], [0], [0], [1], [0, 0, 1, 1], [], []>} : vector<8x8xbf16>, vector<8x256xbf16>, vector<8x256xf32> -> vector<8x256xf32>
    %c0_10 = arith.constant 0 : index
    %c0_11 = arith.constant 0 : index
    %11 = vector.load %arg5[%c0_10, %c0_11] : memref<8x1xf32, #tpu.memory_space<vmem>>, vector<8x1xf32>
    %12 = vector.broadcast %11 : vector<8x1xf32> to vector<8x256xf32>
    %13 = arith.addf %10, %12 : vector<8x256xf32>
    %14 = arith.addf %1, %13 : vector<8x256xf32>
    %c0_12 = arith.constant 0 : index
    %c0_13 = arith.constant 0 : index
    %15 = vector.load %arg6[%c0_12, %c0_13] : memref<1x256xf32, #tpu.memory_space<vmem>>, vector<1x256xf32>
    %c0_14 = arith.constant 0 : index
    %c0_15 = arith.constant 0 : index
    %16 = vector.load %arg7[%c0_14, %c0_15] : memref<1x256xf32, #tpu.memory_space<vmem>>, vector<1x256xf32>
    %cst_16 = arith.constant dense<0.000000e+00> : vector<8xf32>
    %17 = vector.multi_reduction <add>, %14, %cst_16 [1] : vector<8x256xf32> to vector<8xf32>
    %18 = vector.shape_cast %17 : vector<8xf32> to vector<8x1xf32>
    %cst_17 = arith.constant 2.560000e+02 : f32
    %19 = vector.broadcast %cst_17 : f32 to vector<8x1xf32>
    %20 = arith.divf %18, %19 : vector<8x1xf32>
    %21 = vector.broadcast %20 : vector<8x1xf32> to vector<8x256xf32>
    %22 = arith.subf %14, %21 : vector<8x256xf32>
    %23 = arith.mulf %22, %22 : vector<8x256xf32>
    %cst_18 = arith.constant dense<0.000000e+00> : vector<8xf32>
    %24 = vector.multi_reduction <add>, %23, %cst_18 [1] : vector<8x256xf32> to vector<8xf32>
    %25 = vector.shape_cast %24 : vector<8xf32> to vector<8x1xf32>
    %cst_19 = arith.constant 2.560000e+02 : f32
    %26 = vector.broadcast %cst_19 : f32 to vector<8x1xf32>
    %27 = arith.divf %25, %26 : vector<8x1xf32>
    %cst_20 = arith.constant 9.99999974E-6 : f32
    %28 = vector.broadcast %cst_20 : f32 to vector<8x1xf32>
    %29 = arith.addf %27, %28 : vector<8x1xf32>
    %30 = math.rsqrt %29 : vector<8x1xf32>
    %31 = vector.broadcast %30 : vector<8x1xf32> to vector<8x256xf32>
    %32 = arith.mulf %22, %31 : vector<8x256xf32>
    %33 = vector.broadcast %15 : vector<1x256xf32> to vector<8x256xf32>
    %34 = arith.mulf %32, %33 : vector<8x256xf32>
    %35 = vector.broadcast %16 : vector<1x256xf32> to vector<8x256xf32>
    %36 = arith.addf %34, %35 : vector<8x256xf32>
    %c0_21 = arith.constant 0 : index
    %c0_22 = arith.constant 0 : index
    %37 = vector.load %arg8[%c0_21, %c0_22] : memref<16x8xf32, #tpu.memory_space<vmem>>, vector<16x8xf32>
    %38 = arith.truncf %37 : vector<16x8xf32> to vector<16x8xbf16>
    %39 = arith.truncf %36 : vector<8x256xf32> to vector<8x256xbf16>
    %cst_23 = arith.constant dense<0.000000e+00> : vector<16x256xf32>
    %40 = tpu.matmul %38, %39, %cst_23 {dimension_numbers = #tpu.dot_dimension_numbers<[1], [0], [0], [1], [0, 0, 1, 1], [], []>} : vector<16x8xbf16>, vector<8x256xbf16>, vector<16x256xf32> -> vector<16x256xf32>
    %c0_24 = arith.constant 0 : index
    %c0_25 = arith.constant 0 : index
    %41 = vector.load %arg9[%c0_24, %c0_25] : memref<16x1xf32, #tpu.memory_space<vmem>>, vector<16x1xf32>
    %42 = vector.broadcast %41 : vector<16x1xf32> to vector<16x256xf32>
    %43 = arith.addf %40, %42 : vector<16x256xf32>
    %cst_26 = arith.constant 5.000000e-01 : f32
    %44 = vector.broadcast %cst_26 : f32 to vector<16x256xf32>
    %45 = arith.mulf %44, %43 : vector<16x256xf32>
    %cst_27 = arith.constant 0.707106769 : f32
    %46 = vector.broadcast %cst_27 : f32 to vector<16x256xf32>
    %47 = arith.mulf %43, %46 : vector<16x256xf32>
    %48 = math.erf %47 : vector<16x256xf32>
    %cst_28 = arith.constant 1.000000e+00 : f32
    %49 = vector.broadcast %cst_28 : f32 to vector<16x256xf32>
    %50 = arith.addf %49, %48 : vector<16x256xf32>
    %51 = arith.mulf %45, %50 : vector<16x256xf32>
    %c0_29 = arith.constant 0 : index
    %c0_30 = arith.constant 0 : index
    %52 = vector.load %arg10[%c0_29, %c0_30] : memref<8x16xf32, #tpu.memory_space<vmem>>, vector<8x16xf32>
    %53 = arith.truncf %52 : vector<8x16xf32> to vector<8x16xbf16>
    %54 = arith.truncf %51 : vector<16x256xf32> to vector<16x256xbf16>
    %cst_31 = arith.constant dense<0.000000e+00> : vector<8x256xf32>
    %55 = tpu.matmul %53, %54, %cst_31 {dimension_numbers = #tpu.dot_dimension_numbers<[1], [0], [0], [1], [0, 0, 1, 1], [], []>} : vector<8x16xbf16>, vector<16x256xbf16>, vector<8x256xf32> -> vector<8x256xf32>
    %c0_32 = arith.constant 0 : index
    %c0_33 = arith.constant 0 : index
    %56 = vector.load %arg11[%c0_32, %c0_33] : memref<8x1xf32, #tpu.memory_space<vmem>>, vector<8x1xf32>
    %57 = vector.broadcast %56 : vector<8x1xf32> to vector<8x256xf32>
    %58 = arith.addf %55, %57 : vector<8x256xf32>
    %59 = arith.addf %14, %58 : vector<8x256xf32>
    %c0_34 = arith.constant 0 : index
    %c0_35 = arith.constant 0 : index
    %c0_36 = arith.constant 0 : index
    %60 = vector.load %arg14[%c0_34, %c0_35, %c0_36] : memref<1x8x256xf32, #tpu.memory_space<vmem>>, vector<1x8x256xf32>
    %61 = vector.shape_cast %60 : vector<1x8x256xf32> to vector<8x256xf32>
    %62 = vector.shape_cast %59 : vector<8x256xf32> to vector<1x8x256xf32>
    tpu.vector_store %arg14[%c0_34, %c0_35, %c0_36], %62 {strides = array<i32>} : memref<1x8x256xf32, #tpu.memory_space<vmem>>, vector<1x8x256xf32>,
    %c0_37 = arith.constant 0 : index
    %c0_38 = arith.constant 0 : index
    %63 = vector.load %arg12[%c0_37, %c0_38] : memref<1x256xf32, #tpu.memory_space<vmem>>, vector<1x256xf32>
    %c0_39 = arith.constant 0 : index
    %c0_40 = arith.constant 0 : index
    %64 = vector.load %arg13[%c0_39, %c0_40] : memref<1x256xf32, #tpu.memory_space<vmem>>, vector<1x256xf32>
    %cst_41 = arith.constant dense<0.000000e+00> : vector<8xf32>
    %65 = vector.multi_reduction <add>, %59, %cst_41 [1] : vector<8x256xf32> to vector<8xf32>
    %66 = vector.shape_cast %65 : vector<8xf32> to vector<8x1xf32>
    %cst_42 = arith.constant 2.560000e+02 : f32
    %67 = vector.broadcast %cst_42 : f32 to vector<8x1xf32>
    %68 = arith.divf %66, %67 : vector<8x1xf32>
    %69 = vector.broadcast %68 : vector<8x1xf32> to vector<8x256xf32>
    %70 = arith.subf %59, %69 : vector<8x256xf32>
    %71 = arith.mulf %70, %70 : vector<8x256xf32>
    %cst_43 = arith.constant dense<0.000000e+00> : vector<8xf32>
    %72 = vector.multi_reduction <add>, %71, %cst_43 [1] : vector<8x256xf32> to vector<8xf32>
    %73 = vector.shape_cast %72 : vector<8xf32> to vector<8x1xf32>
    %cst_44 = arith.constant 2.560000e+02 : f32
    %74 = vector.broadcast %cst_44 : f32 to vector<8x1xf32>
    %75 = arith.divf %73, %74 : vector<8x1xf32>
    %cst_45 = arith.constant 9.99999974E-6 : f32
    %76 = vector.broadcast %cst_45 : f32 to vector<8x1xf32>
    %77 = arith.addf %75, %76 : vector<8x1xf32>
    %78 = math.rsqrt %77 : vector<8x1xf32>
    %79 = vector.broadcast %78 : vector<8x1xf32> to vector<8x256xf32>
    %80 = arith.mulf %70, %79 : vector<8x256xf32>
    %81 = vector.broadcast %63 : vector<1x256xf32> to vector<8x256xf32>
    %82 = arith.mulf %80, %81 : vector<8x256xf32>
    %83 = vector.broadcast %64 : vector<1x256xf32> to vector<8x256xf32>
    %84 = arith.addf %82, %83 : vector<8x256xf32>
    %c0_46 = arith.constant 0 : index
    %c0_47 = arith.constant 0 : index
    %c0_48 = arith.constant 0 : index
    %85 = vector.load %arg15[%c0_46, %c0_47, %c0_48] : memref<1x8x256xf32, #tpu.memory_space<vmem>>, vector<1x8x256xf32>
    %86 = vector.shape_cast %85 : vector<1x8x256xf32> to vector<8x256xf32>
    %87 = vector.shape_cast %84 : vector<8x256xf32> to vector<1x8x256xf32>
    tpu.vector_store %arg15[%c0_46, %c0_47, %c0_48], %87 {strides = array<i32>} : memref<1x8x256xf32, #tpu.memory_space<vmem>>, vector<1x8x256xf32>,
    return
  }
  func.func @transform_0(%arg0: i32) -> (i32, i32, i32) {
    %c0_i32 = arith.constant 0 : i32
    %c0_i32_0 = arith.constant 0 : i32
    %c0_i32_1 = arith.constant 0 : i32
    return %arg0, %c0_i32, %c0_i32_0 : i32, i32, i32
  }
  func.func @transform_1(%arg0: i32) -> (i32, i32, i32) {
    %c0_i32 = arith.constant 0 : i32
    %c0_i32_0 = arith.constant 0 : i32
    %c0_i32_1 = arith.constant 0 : i32
    return %arg0, %c0_i32, %c0_i32_0 : i32, i32, i32
  }
  func.func @transform_2(%arg0: i32) -> (i32, i32, i32) {
    %c0_i32 = arith.constant 0 : i32
    %c0_i32_0 = arith.constant 0 : i32
    %c0_i32_1 = arith.constant 0 : i32
    return %arg0, %c0_i32, %c0_i32_0 : i32, i32, i32
  }
  func.func @transform_3(%arg0: i32) -> (i32, i32) {
    %c0_i32 = arith.constant 0 : i32
    %c0_i32_0 = arith.constant 0 : i32
    %c0_i32_1 = arith.constant 0 : i32
    return %c0_i32, %c0_i32_0 : i32, i32
  }
  func.func @transform_4(%arg0: i32) -> (i32, i32) {
    %c0_i32 = arith.constant 0 : i32
    %c0_i32_0 = arith.constant 0 : i32
    %c0_i32_1 = arith.constant 0 : i32
    return %c0_i32, %c0_i32_0 : i32, i32
  }
  func.func @transform_5(%arg0: i32) -> (i32, i32) {
    %c0_i32 = arith.constant 0 : i32
    %c0_i32_0 = arith.constant 0 : i32
    %c0_i32_1 = arith.constant 0 : i32
    return %c0_i32, %c0_i32_0 : i32, i32
  }
  func.func @transform_6(%arg0: i32) -> (i32, i32) {
    %c0_i32 = arith.constant 0 : i32
    %c0_i32_0 = arith.constant 0 : i32
    %c0_i32_1 = arith.constant 0 : i32
    return %c0_i32, %c0_i32_0 : i32, i32
  }
  func.func @transform_7(%arg0: i32) -> (i32, i32) {
    %c0_i32 = arith.constant 0 : i32
    %c0_i32_0 = arith.constant 0 : i32
    %c0_i32_1 = arith.constant 0 : i32
    return %c0_i32, %c0_i32_0 : i32, i32
  }
  func.func @transform_8(%arg0: i32) -> (i32, i32) {
    %c0_i32 = arith.constant 0 : i32
    %c0_i32_0 = arith.constant 0 : i32
    %c0_i32_1 = arith.constant 0 : i32
    return %c0_i32, %c0_i32_0 : i32, i32
  }
  func.func @transform_9(%arg0: i32) -> (i32, i32) {
    %c0_i32 = arith.constant 0 : i32
    %c0_i32_0 = arith.constant 0 : i32
    %c0_i32_1 = arith.constant 0 : i32
    return %c0_i32, %c0_i32_0 : i32, i32
  }
  func.func @transform_10(%arg0: i32) -> (i32, i32) {
    %c0_i32 = arith.constant 0 : i32
    %c0_i32_0 = arith.constant 0 : i32
    %c0_i32_1 = arith.constant 0 : i32
    return %c0_i32, %c0_i32_0 : i32, i32
  }
  func.func @transform_11(%arg0: i32) -> (i32, i32) {
    %c0_i32 = arith.constant 0 : i32
    %c0_i32_0 = arith.constant 0 : i32
    %c0_i32_1 = arith.constant 0 : i32
    return %c0_i32, %c0_i32_0 : i32, i32
  }
  func.func @transform_12(%arg0: i32) -> (i32, i32) {
    %c0_i32 = arith.constant 0 : i32
    %c0_i32_0 = arith.constant 0 : i32
    %c0_i32_1 = arith.constant 0 : i32
    return %c0_i32, %c0_i32_0 : i32, i32
  }
  func.func @transform_13(%arg0: i32) -> (i32, i32, i32) {
    %c0_i32 = arith.constant 0 : i32
    %c0_i32_0 = arith.constant 0 : i32
    %c0_i32_1 = arith.constant 0 : i32
    return %arg0, %c0_i32, %c0_i32_0 : i32, i32, i32
  }
  func.func @transform_14(%arg0: i32) -> (i32, i32, i32) {
    %c0_i32 = arith.constant 0 : i32
    %c0_i32_0 = arith.constant 0 : i32
    %c0_i32_1 = arith.constant 0 : i32
    return %arg0, %c0_i32, %c0_i32_0 : i32, i32, i32
  }
}

module attributes {stable_mosaic.version = 11 : i64} {
  func.func @_fuse_kernel(%arg0: i32, %arg1: memref<1x8x256xf32, #tpu.memory_space<vmem>>, %arg2: memref<1x8x256xf32, #tpu.memory_space<vmem>>, %arg3: memref<1x8x256xf32, #tpu.memory_space<vmem>>, %arg4: memref<8x8xf32, #tpu.memory_space<vmem>>, %arg5: memref<8x1xf32, #tpu.memory_space<vmem>>, %arg6: memref<1x256xf32, #tpu.memory_space<vmem>>, %arg7: memref<1x256xf32, #tpu.memory_space<vmem>>, %arg8: memref<16x8xf32, #tpu.memory_space<vmem>>, %arg9: memref<16x1xf32, #tpu.memory_space<vmem>>, %arg10: memref<8x16xf32, #tpu.memory_space<vmem>>, %arg11: memref<8x1xf32, #tpu.memory_space<vmem>>, %arg12: memref<1x256xf32, #tpu.memory_space<vmem>>, %arg13: memref<1x256xf32, #tpu.memory_space<vmem>>, %arg14: memref<1x8x256xf32, #tpu.memory_space<vmem>>, %arg15: memref<1x8x256xf32, #tpu.memory_space<vmem>>) attributes {dimension_semantics = [#tpu.dimension_semantics<parallel>], iteration_bounds = array<i64: 2>, scalar_prefetch = 0 : i64, scratch_operands = 0 : i64, tpu.core_type = #tpu.core_type<tc>, window_params = [{transform_indices = @transform_0, window_bounds = array<i64: 1, 8, 256>}, {transform_indices = @transform_1, window_bounds = array<i64: 1, 8, 256>}, {transform_indices = @transform_2, window_bounds = array<i64: 1, 8, 256>}, {pipeline_mode = #tpu.pipeline_mode<synchronous>, transform_indices = @transform_3, window_bounds = array<i64: 8, 8>}, {pipeline_mode = #tpu.pipeline_mode<synchronous>, transform_indices = @transform_4, window_bounds = array<i64: 8, 1>}, {pipeline_mode = #tpu.pipeline_mode<synchronous>, transform_indices = @transform_5, window_bounds = array<i64: 1, 256>}, {pipeline_mode = #tpu.pipeline_mode<synchronous>, transform_indices = @transform_6, window_bounds = array<i64: 1, 256>}, {pipeline_mode = #tpu.pipeline_mode<synchronous>, transform_indices = @transform_7, window_bounds = array<i64: 16, 8>}, {pipeline_mode = #tpu.pipeline_mode<synchronous>, transform_indices = @transform_8, window_bounds = array<i64: 16, 1>}, {pipeline_mode = #tpu.pipeline_mode<synchronous>, transform_indices = @transform_9, window_bounds = array<i64: 8, 16>}, {pipeline_mode = #tpu.pipeline_mode<synchronous>, transform_indices = @transform_10, window_bounds = array<i64: 8, 1>}, {pipeline_mode = #tpu.pipeline_mode<synchronous>, transform_indices = @transform_11, window_bounds = array<i64: 1, 256>}, {pipeline_mode = #tpu.pipeline_mode<synchronous>, transform_indices = @transform_12, window_bounds = array<i64: 1, 256>}, {transform_indices = @transform_13, window_bounds = array<i64: 1, 8, 256>}, {transform_indices = @transform_14, window_bounds = array<i64: 1, 8, 256>}]} {
    %c0 = arith.constant 0 : index
    %c0_0 = arith.constant 0 : index
    %c0_1 = arith.constant 0 : index
    %0 = vector.load %arg3[%c0, %c0_0, %c0_1] : memref<1x8x256xf32, #tpu.memory_space<vmem>>, vector<1x8x256xf32>
    %1 = vector.shape_cast %0 : vector<1x8x256xf32> to vector<8x256xf32>
    %c0_2 = arith.constant 0 : index
    %c0_3 = arith.constant 0 : index
    %c0_4 = arith.constant 0 : index
    %2 = vector.load %arg1[%c0_2, %c0_3, %c0_4] : memref<1x8x256xf32, #tpu.memory_space<vmem>>, vector<1x8x256xf32>
    %3 = vector.shape_cast %2 : vector<1x8x256xf32> to vector<8x256xf32>
    %c0_5 = arith.constant 0 : index
    %c0_6 = arith.constant 0 : index
    %c0_7 = arith.constant 0 : index
    %4 = vector.load %arg2[%c0_5, %c0_6, %c0_7] : memref<1x8x256xf32, #tpu.memory_space<vmem>>, vector<1x8x256xf32>
    %5 = vector.shape_cast %4 : vector<1x8x256xf32> to vector<8x256xf32>
    %6 = arith.addf %3, %5 : vector<8x256xf32>
    %c0_8 = arith.constant 0 : index
    %c0_9 = arith.constant 0 : index
    %7 = vector.load %arg4[%c0_8, %c0_9] : memref<8x8xf32, #tpu.memory_space<vmem>>, vector<8x8xf32>
    %8 = arith.truncf %7 : vector<8x8xf32> to vector<8x8xbf16>
    %9 = arith.truncf %6 : vector<8x256xf32> to vector<8x256xbf16>
    %cst = arith.constant dense<0.000000e+00> : vector<8x256xf32>
    %10 = tpu.matmul %8, %9, %cst {dimension_numbers = #tpu.dot_dimension_numbers<[1], [0], [0], [1], [0, 0, 1, 1], [], []>} : vector<8x8xbf16>, vector<8x256xbf16>, vector<8x256xf32> -> vector<8x256xf32>
    %c0_10 = arith.constant 0 : index
    %c0_11 = arith.constant 0 : index
    %11 = vector.load %arg5[%c0_10, %c0_11] : memref<8x1xf32, #tpu.memory_space<vmem>>, vector<8x1xf32>
    %12 = vector.broadcast %11 : vector<8x1xf32> to vector<8x256xf32>
    %13 = arith.addf %10, %12 : vector<8x256xf32>
    %14 = arith.addf %1, %13 : vector<8x256xf32>
    %c0_12 = arith.constant 0 : index
    %c0_13 = arith.constant 0 : index
    %15 = vector.load %arg6[%c0_12, %c0_13] : memref<1x256xf32, #tpu.memory_space<vmem>>, vector<1x256xf32>
    %c0_14 = arith.constant 0 : index
    %c0_15 = arith.constant 0 : index
    %16 = vector.load %arg7[%c0_14, %c0_15] : memref<1x256xf32, #tpu.memory_space<vmem>>, vector<1x256xf32>
    %cst_16 = arith.constant dense<0.000000e+00> : vector<8xf32>
    %17 = vector.multi_reduction <add>, %14, %cst_16 [1] : vector<8x256xf32> to vector<8xf32>
    %18 = vector.shape_cast %17 : vector<8xf32> to vector<8x1xf32>
    %cst_17 = arith.constant 2.560000e+02 : f32
    %19 = vector.broadcast %cst_17 : f32 to vector<8x1xf32>
    %20 = arith.divf %18, %19 : vector<8x1xf32>
    %21 = vector.broadcast %20 : vector<8x1xf32> to vector<8x256xf32>
    %22 = arith.subf %14, %21 : vector<8x256xf32>
    %23 = arith.mulf %22, %22 : vector<8x256xf32>
    %cst_18 = arith.constant dense<0.000000e+00> : vector<8xf32>
    %24 = vector.multi_reduction <add>, %23, %cst_18 [1] : vector<8x256xf32> to vector<8xf32>
    %25 = vector.shape_cast %24 : vector<8xf32> to vector<8x1xf32>
    %cst_19 = arith.constant 2.560000e+02 : f32
    %26 = vector.broadcast %cst_19 : f32 to vector<8x1xf32>
    %27 = arith.divf %25, %26 : vector<8x1xf32>
    %cst_20 = arith.constant 9.99999974E-6 : f32
    %28 = vector.broadcast %cst_20 : f32 to vector<8x1xf32>
    %29 = arith.addf %27, %28 : vector<8x1xf32>
    %30 = math.rsqrt %29 : vector<8x1xf32>
    %31 = vector.broadcast %30 : vector<8x1xf32> to vector<8x256xf32>
    %32 = arith.mulf %22, %31 : vector<8x256xf32>
    %33 = vector.broadcast %15 : vector<1x256xf32> to vector<8x256xf32>
    %34 = arith.mulf %32, %33 : vector<8x256xf32>
    %35 = vector.broadcast %16 : vector<1x256xf32> to vector<8x256xf32>
    %36 = arith.addf %34, %35 : vector<8x256xf32>
    %c0_21 = arith.constant 0 : index
    %c0_22 = arith.constant 0 : index
    %37 = vector.load %arg8[%c0_21, %c0_22] : memref<16x8xf32, #tpu.memory_space<vmem>>, vector<16x8xf32>
    %38 = arith.truncf %37 : vector<16x8xf32> to vector<16x8xbf16>
    %39 = arith.truncf %36 : vector<8x256xf32> to vector<8x256xbf16>
    %cst_23 = arith.constant dense<0.000000e+00> : vector<16x256xf32>
    %40 = tpu.matmul %38, %39, %cst_23 {dimension_numbers = #tpu.dot_dimension_numbers<[1], [0], [0], [1], [0, 0, 1, 1], [], []>} : vector<16x8xbf16>, vector<8x256xbf16>, vector<16x256xf32> -> vector<16x256xf32>
    %c0_24 = arith.constant 0 : index
    %c0_25 = arith.constant 0 : index
    %41 = vector.load %arg9[%c0_24, %c0_25] : memref<16x1xf32, #tpu.memory_space<vmem>>, vector<16x1xf32>
    %42 = vector.broadcast %41 : vector<16x1xf32> to vector<16x256xf32>
    %43 = arith.addf %40, %42 : vector<16x256xf32>
    %cst_26 = arith.constant 5.000000e-01 : f32
    %44 = vector.broadcast %cst_26 : f32 to vector<16x256xf32>
    %45 = arith.mulf %44, %43 : vector<16x256xf32>
    %cst_27 = arith.constant 0.707106769 : f32
    %46 = vector.broadcast %cst_27 : f32 to vector<16x256xf32>
    %47 = arith.mulf %43, %46 : vector<16x256xf32>
    %48 = math.erf %47 : vector<16x256xf32>
    %cst_28 = arith.constant 1.000000e+00 : f32
    %49 = vector.broadcast %cst_28 : f32 to vector<16x256xf32>
    %50 = arith.addf %49, %48 : vector<16x256xf32>
    %51 = arith.mulf %45, %50 : vector<16x256xf32>
    %c0_29 = arith.constant 0 : index
    %c0_30 = arith.constant 0 : index
    %52 = vector.load %arg10[%c0_29, %c0_30] : memref<8x16xf32, #tpu.memory_space<vmem>>, vector<8x16xf32>
    %53 = arith.truncf %52 : vector<8x16xf32> to vector<8x16xbf16>
    %54 = arith.truncf %51 : vector<16x256xf32> to vector<16x256xbf16>
    %cst_31 = arith.constant dense<0.000000e+00> : vector<8x256xf32>
    %55 = tpu.matmul %53, %54, %cst_31 {dimension_numbers = #tpu.dot_dimension_numbers<[1], [0], [0], [1], [0, 0, 1, 1], [], []>} : vector<8x16xbf16>, vector<16x256xbf16>, vector<8x256xf32> -> vector<8x256xf32>
    %c0_32 = arith.constant 0 : index
    %c0_33 = arith.constant 0 : index
    %56 = vector.load %arg11[%c0_32, %c0_33] : memref<8x1xf32, #tpu.memory_space<vmem>>, vector<8x1xf32>
    %57 = vector.broadcast %56 : vector<8x1xf32> to vector<8x256xf32>
    %58 = arith.addf %55, %57 : vector<8x256xf32>
    %59 = arith.addf %14, %58 : vector<8x256xf32>
    %c0_34 = arith.constant 0 : index
    %c0_35 = arith.constant 0 : index
    %c0_36 = arith.constant 0 : index
    %60 = vector.load %arg14[%c0_34, %c0_35, %c0_36] : memref<1x8x256xf32, #tpu.memory_space<vmem>>, vector<1x8x256xf32>
    %61 = vector.shape_cast %60 : vector<1x8x256xf32> to vector<8x256xf32>
    %62 = vector.shape_cast %59 : vector<8x256xf32> to vector<1x8x256xf32>
    tpu.vector_store %arg14[%c0_34, %c0_35, %c0_36], %62 {strides = array<i32>} : memref<1x8x256xf32, #tpu.memory_space<vmem>>, vector<1x8x256xf32>,
    %cst_37 = arith.constant 5.000000e-01 : f32
    %63 = vector.broadcast %cst_37 : f32 to vector<8x256xf32>
    %64 = arith.mulf %63, %59 : vector<8x256xf32>
    %cst_38 = arith.constant 0.707106769 : f32
    %65 = vector.broadcast %cst_38 : f32 to vector<8x256xf32>
    %66 = arith.mulf %59, %65 : vector<8x256xf32>
    %67 = math.erf %66 : vector<8x256xf32>
    %cst_39 = arith.constant 1.000000e+00 : f32
    %68 = vector.broadcast %cst_39 : f32 to vector<8x256xf32>
    %69 = arith.addf %68, %67 : vector<8x256xf32>
    %70 = arith.mulf %64, %69 : vector<8x256xf32>
    %c0_40 = arith.constant 0 : index
    %c0_41 = arith.constant 0 : index
    %71 = vector.load %arg12[%c0_40, %c0_41] : memref<1x256xf32, #tpu.memory_space<vmem>>, vector<1x256xf32>
    %c0_42 = arith.constant 0 : index
    %c0_43 = arith.constant 0 : index
    %72 = vector.load %arg13[%c0_42, %c0_43] : memref<1x256xf32, #tpu.memory_space<vmem>>, vector<1x256xf32>
    %cst_44 = arith.constant dense<0.000000e+00> : vector<8xf32>
    %73 = vector.multi_reduction <add>, %70, %cst_44 [1] : vector<8x256xf32> to vector<8xf32>
    %74 = vector.shape_cast %73 : vector<8xf32> to vector<8x1xf32>
    %cst_45 = arith.constant 2.560000e+02 : f32
    %75 = vector.broadcast %cst_45 : f32 to vector<8x1xf32>
    %76 = arith.divf %74, %75 : vector<8x1xf32>
    %77 = vector.broadcast %76 : vector<8x1xf32> to vector<8x256xf32>
    %78 = arith.subf %70, %77 : vector<8x256xf32>
    %79 = arith.mulf %78, %78 : vector<8x256xf32>
    %cst_46 = arith.constant dense<0.000000e+00> : vector<8xf32>
    %80 = vector.multi_reduction <add>, %79, %cst_46 [1] : vector<8x256xf32> to vector<8xf32>
    %81 = vector.shape_cast %80 : vector<8xf32> to vector<8x1xf32>
    %cst_47 = arith.constant 2.560000e+02 : f32
    %82 = vector.broadcast %cst_47 : f32 to vector<8x1xf32>
    %83 = arith.divf %81, %82 : vector<8x1xf32>
    %cst_48 = arith.constant 9.99999974E-6 : f32
    %84 = vector.broadcast %cst_48 : f32 to vector<8x1xf32>
    %85 = arith.addf %83, %84 : vector<8x1xf32>
    %86 = math.rsqrt %85 : vector<8x1xf32>
    %87 = vector.broadcast %86 : vector<8x1xf32> to vector<8x256xf32>
    %88 = arith.mulf %78, %87 : vector<8x256xf32>
    %89 = vector.broadcast %71 : vector<1x256xf32> to vector<8x256xf32>
    %90 = arith.mulf %88, %89 : vector<8x256xf32>
    %91 = vector.broadcast %72 : vector<1x256xf32> to vector<8x256xf32>
    %92 = arith.addf %90, %91 : vector<8x256xf32>
    %c0_49 = arith.constant 0 : index
    %c0_50 = arith.constant 0 : index
    %c0_51 = arith.constant 0 : index
    %93 = vector.load %arg15[%c0_49, %c0_50, %c0_51] : memref<1x8x256xf32, #tpu.memory_space<vmem>>, vector<1x8x256xf32>
    %94 = vector.shape_cast %93 : vector<1x8x256xf32> to vector<8x256xf32>
    %95 = vector.shape_cast %92 : vector<8x256xf32> to vector<1x8x256xf32>
    tpu.vector_store %arg15[%c0_49, %c0_50, %c0_51], %95 {strides = array<i32>} : memref<1x8x256xf32, #tpu.memory_space<vmem>>, vector<1x8x256xf32>,
    return
  }
  func.func @transform_0(%arg0: i32) -> (i32, i32, i32) {
    %c0_i32 = arith.constant 0 : i32
    %c0_i32_0 = arith.constant 0 : i32
    %c0_i32_1 = arith.constant 0 : i32
    return %arg0, %c0_i32, %c0_i32_0 : i32, i32, i32
  }
  func.func @transform_1(%arg0: i32) -> (i32, i32, i32) {
    %c0_i32 = arith.constant 0 : i32
    %c0_i32_0 = arith.constant 0 : i32
    %c0_i32_1 = arith.constant 0 : i32
    return %arg0, %c0_i32, %c0_i32_0 : i32, i32, i32
  }
  func.func @transform_2(%arg0: i32) -> (i32, i32, i32) {
    %c0_i32 = arith.constant 0 : i32
    %c0_i32_0 = arith.constant 0 : i32
    %c0_i32_1 = arith.constant 0 : i32
    return %arg0, %c0_i32, %c0_i32_0 : i32, i32, i32
  }
  func.func @transform_3(%arg0: i32) -> (i32, i32) {
    %c0_i32 = arith.constant 0 : i32
    %c0_i32_0 = arith.constant 0 : i32
    %c0_i32_1 = arith.constant 0 : i32
    return %c0_i32, %c0_i32_0 : i32, i32
  }
  func.func @transform_4(%arg0: i32) -> (i32, i32) {
    %c0_i32 = arith.constant 0 : i32
    %c0_i32_0 = arith.constant 0 : i32
    %c0_i32_1 = arith.constant 0 : i32
    return %c0_i32, %c0_i32_0 : i32, i32
  }
  func.func @transform_5(%arg0: i32) -> (i32, i32) {
    %c0_i32 = arith.constant 0 : i32
    %c0_i32_0 = arith.constant 0 : i32
    %c0_i32_1 = arith.constant 0 : i32
    return %c0_i32, %c0_i32_0 : i32, i32
  }
  func.func @transform_6(%arg0: i32) -> (i32, i32) {
    %c0_i32 = arith.constant 0 : i32
    %c0_i32_0 = arith.constant 0 : i32
    %c0_i32_1 = arith.constant 0 : i32
    return %c0_i32, %c0_i32_0 : i32, i32
  }
  func.func @transform_7(%arg0: i32) -> (i32, i32) {
    %c0_i32 = arith.constant 0 : i32
    %c0_i32_0 = arith.constant 0 : i32
    %c0_i32_1 = arith.constant 0 : i32
    return %c0_i32, %c0_i32_0 : i32, i32
  }
  func.func @transform_8(%arg0: i32) -> (i32, i32) {
    %c0_i32 = arith.constant 0 : i32
    %c0_i32_0 = arith.constant 0 : i32
    %c0_i32_1 = arith.constant 0 : i32
    return %c0_i32, %c0_i32_0 : i32, i32
  }
  func.func @transform_9(%arg0: i32) -> (i32, i32) {
    %c0_i32 = arith.constant 0 : i32
    %c0_i32_0 = arith.constant 0 : i32
    %c0_i32_1 = arith.constant 0 : i32
    return %c0_i32, %c0_i32_0 : i32, i32
  }
  func.func @transform_10(%arg0: i32) -> (i32, i32) {
    %c0_i32 = arith.constant 0 : i32
    %c0_i32_0 = arith.constant 0 : i32
    %c0_i32_1 = arith.constant 0 : i32
    return %c0_i32, %c0_i32_0 : i32, i32
  }
  func.func @transform_11(%arg0: i32) -> (i32, i32) {
    %c0_i32 = arith.constant 0 : i32
    %c0_i32_0 = arith.constant 0 : i32
    %c0_i32_1 = arith.constant 0 : i32
    return %c0_i32, %c0_i32_0 : i32, i32
  }
  func.func @transform_12(%arg0: i32) -> (i32, i32) {
    %c0_i32 = arith.constant 0 : i32
    %c0_i32_0 = arith.constant 0 : i32
    %c0_i32_1 = arith.constant 0 : i32
    return %c0_i32, %c0_i32_0 : i32, i32
  }
  func.func @transform_13(%arg0: i32) -> (i32, i32, i32) {
    %c0_i32 = arith.constant 0 : i32
    %c0_i32_0 = arith.constant 0 : i32
    %c0_i32_1 = arith.constant 0 : i32
    return %arg0, %c0_i32, %c0_i32_0 : i32, i32, i32
  }
  func.func @transform_14(%arg0: i32) -> (i32, i32, i32) {
    %c0_i32 = arith.constant 0 : i32
    %c0_i32_0 = arith.constant 0 : i32
    %c0_i32_1 = arith.constant 0 : i32
    return %arg0, %c0_i32, %c0_i32_0 : i32, i32, i32
  }
}

</mosaic_0001>

<bundles_post_ra>
// kernel: _lambda_.7
= control target key start
LH: loop header
LB: loop body
LE: loop exit
PB: predicated region body
PF: predicated region fallthrough
CT: control target
= control target key end

     0   :  { %s617_s18 = smov 0   ;;  %s619_s19 = smov 0   ;;  %s670_s0 = inlined_call_operand.vmem [shape: f32[2,8,256], index: 0, kind: input, shape index: {}]   ;;  %s671_s1 = inlined_call_operand.vmem [shape: f32[1,8,256], index: 1, kind: input, shape index: {}]   ;;  %s672_s2 = inlined_call_operand.vmem [shape: f32[1,256], index: 2, kind: input, shape index: {}]   ;;  %s673_s3 = inlined_call_operand.vmem [shape: f32[1,256], index: 3, kind: input, shape index: {}]   ;;  %s674_s4 = inlined_call_operand.vmem [shape: f32[2,8,256], index: 4, kind: output, shape index: {0}]   ;;  %s675_s5 = inlined_call_operand.vmem [shape: f32[2,8,256], index: 5, kind: output, shape index: {1}]  }
   0x1   :  { %s621_s20 = smov 0  }
   0x2 LB: > { %s28_s21 = sadd.s32 1, %s581_s19  ;;  %p525_p0 = scmp.ge.s32.totalorder %s585_s20, 1  ;;  %s585_s20 = sphi %s621_s20, %s16_s20   ;;  %s581_s19 = sphi %s619_s19, %s677_s19   ;;  %s577_s18 = sphi %s617_s18, %s676_s18  }
   0x3   : > { %p30_p1 = scmp.ge.s32.totalorder %s28_s21, 2  ;;  %p222_p2 = scmp.lt.s32.totalorder %s585_s20, 3 }
   0x5   : > { %s679_s21 = smov (%p30_p1, %s28_s21), 0  ;;  %p223_p3 = pnand %p525_p0, %p222_p2 }
   0x6   : > { %p272_p4 = scmp.lt.s32.totalorder (!%p223_p3), %s577_s18, 1  ;;  %v306_v0 = vld [vmem:[%s671_s1] sm:$0xff] (!%p223_p3)  ;;  %v307_v1 = vld [vmem:[%s671_s1 + $0x8] sm:$0xff] (!%p223_p3)  ;;  %v332_v16 = vlaneseq (!%p223_p3) }
   0x7   : > { %226 = sbr.rel (%p223_p3) target bundleno = 336 (0x150), region = 36  ;;  %v312_v21 = vld [vmem:[%s672_s2] sm:$0x3] (!%p223_p3) }
   0x8   : > { %v333_v18 = vshrl.u32 (!%p223_p3), %v332_v16, 7  ;;  %v313_v22 = vld [vmem:[%s673_s3] sm:$0x3] (!%p223_p3) }
   0xa   : > { %v334_v19 = vsub.s32 (!%p223_p3), 0, %v333_v18  ;;  %v338_v20 = vsub.s32 (!%p223_p3), 1, %v333_v18 }
   0xc   : > { %v335_v23 = vrot.slane (!%p223_p3), %v312_v21, %v334_v19  ;;  %v339_v24 = vrot.slane (!%p223_p3), %v312_v21, %v338_v20  ;;  %v348_v26 = vrot.slane (!%p223_p3), %v313_v22, %v334_v19  ;;  %v352_v27 = vrot.slane (!%p223_p3), %v313_v22, %v338_v20 }
   0xe   : > { %s681_s18 = smov (!%p272_p4, %s577_s18), 1 }
   0xf   : > { %s635_s22 = sshll.u32 %s681_s18, 4 }
  0x10   : > { %s280_s29 = scalar_lea.vmem %s670_s0, %s635_s22  ;;  %s294_s7 = scalar_lea.vmem %s674_s4, %s635_s22 }
  0x11   : > { %v304_v2 = vld [vmem:[%s280_s29] sm:$0xff]  ;;  %v305_v3 = vld [vmem:[%s280_s29 + $0x8] sm:$0xff]  ;;  %s303_s14 = scalar_lea.vmem %s675_s5, %s635_s22 }
  0x12   : > { %v308_v4 = vadd.f32 %v306_v0, %v304_v2  ;;  %v309_v5 = vadd.f32 %v307_v1, %v305_v3 }
  0x14   : > { %311 = vst [vmem:[%s294_s7 + $0x8] sm:$0xff] %v309_v5  ;;  %v314_v6 = vadd.f32 %v309_v5, %v308_v4  ;;  %310 = vst [vmem:[%s294_s7] sm:$0xff] %v308_v4 }
  0x16   : > { %315 = vadd.xlane.f32.xlu0 %v314_v6 }
  0xa3   : > { %v316_v7 = vpop.xlane.xlu0 %315 }
  0xa4   : > { %v318_v8 = vmul.f32 0.00390625, %v316_v7 }
  0xa6   : > { %v319_v9 = vsub.f32 %v308_v4, %v318_v8  ;;  %v320_v10 = vsub.f32 %v309_v5, %v318_v8 }
  0xa8   : > { %v321_v11 = vmul.f32 %v319_v9, %v319_v9  ;;  %v322_v12 = vmul.f32 %v320_v10, %v320_v10 }
  0xaa   : > { %v323_v13 = vadd.f32 %v322_v12, %v321_v11 }
  0xac   : > { %324 = vadd.xlane.f32.xlu0 %v323_v13 }
 0x139   : > { %v325_v14 = vpop.xlane.xlu0 %324 }
 0x13a   : > { %v326_v15 = vmul.f32 0.00390625, %v325_v14 }
 0x13c   : > { %v327_v17 = vadd.f32 1e-05, %v326_v15 }
 0x13e   : > { %561 = vrsqrt.f32 %v327_v17 }
 0x148   : > { %v562_v25 = vpop.eup %561 }
 0x149   : > { %v329_v28 = vmul.f32 %v562_v25, %v319_v9  ;;  %v330_v29 = vmul.f32 %v562_v25, %v320_v10 }
 0x14b   : > { %v342_v30 = vmul.f32 %v335_v23, %v329_v28  ;;  %v343_v31 = vmul.f32 %v339_v24, %v330_v29 }
 0x14d   : > { %v355_v32 = vadd.f32 %v348_v26, %v342_v30  ;;  %v356_v33 = vadd.f32 %v352_v27, %v343_v31 }
 0x14f   : > { %357 = vst [vmem:[%s303_s14] sm:$0xff] %v355_v32  ;;  %358 = vst [vmem:[%s303_s14 + $0x8] sm:$0xff] %v356_v33 }
 0x150 PF: > { %s16_s20 = sadd.s32 1, %s585_s20   ;;  %s676_s18 = smov %s581_s19 }
 0x151   : > { %p13_p5 = scmp.ge.s32.totalorder %s16_s20, 4   ;;  %s677_s19 = smov %s679_s21 }
 0x153   :  { %15 = sbr.rel (!%p13_p5) target bundleno = 2 (0x2), region = 81 }

// kernel: _lambda_.10
= control target key start
LH: loop header
LB: loop body
LE: loop exit
PB: predicated region body
PF: predicated region fallthrough
CT: control target
= control target key end

     0   :  { %s1079_s29 = smov 0   ;;  %s1176_s0 = inlined_call_operand.vmem [shape: f32[2,8,256], index: 0, kind: input, shape index: {}]   ;;  %s1177_s1 = inlined_call_operand.vmem [shape: f32[2,8,256], index: 1, kind: input, shape index: {}]   ;;  %s1178_s2 = inlined_call_operand.vmem [shape: f32[2,8,256], index: 2, kind: input, shape index: {}]   ;;  %s1179_s3 = inlined_call_operand.vmem [shape: f32[8,8], index: 3, kind: input, shape index: {}]   ;;  %s1180_s4 = inlined_call_operand.vmem [shape: f32[8,1], index: 4, kind: input, shape index: {}]   ;;  %s1181_s5 = inlined_call_operand.vmem [shape: f32[1,256], index: 5, kind: input, shape index: {}]   ;;  %s1182_s6 = inlined_call_operand.vmem [shape: f32[1,256], index: 6, kind: input, shape index: {}]   ;;  %s1183_s7 = inlined_call_operand.vmem [shape: f32[16,8], index: 7, kind: input, shape index: {}]   ;;  %s1184_s8 = inlined_call_operand.vmem [shape: f32[16,1], index: 8, kind: input, shape index: {}]   ;;  %s1185_s9 = inlined_call_operand.vmem [shape: f32[8,16], index: 9, kind: input, shape index: {}]   ;;  %s1186_s10 = inlined_call_operand.vmem [shape: f32[8,1], index: 10, kind: input, shape index: {}]   ;;  %s1187_s11 = inlined_call_operand.vmem [shape: f32[1,256], index: 11, kind: input, shape index: {}]   ;;  %s1188_s12 = inlined_call_operand.vmem [shape: f32[1,256], index: 12, kind: input, shape index: {}]   ;;  %s1189_s13 = inlined_call_operand.vmem [shape: f32[2,8,256], index: 13, kind: output, shape index: {0}]   ;;  %s1190_s14 = inlined_call_operand.vmem [shape: f32[2,8,256], index: 14, kind: output, shape index: {1}]  }
   0x1 LB: > { %s945_s30 = sadd.s32 4294967295, %s1001_s29   ;;  %p949_p0 = scmp.ge.s32.totalorder %s1001_s29, 1  ;;  %s1001_s29 = sphi %s1079_s29, %s25_s29  }
   0x2   : > { %p435_p1 = scmp.lt.s32.totalorder %s1001_s29, 3 }
   0x4   : > { %p436_p2 = pnand %p949_p0, %p435_p1 }
   0x5   : > { %p496_p3 = scmp.lt.s32.totalorder (!%p436_p2), %s945_s30, 1  ;;  %v534_v0 = vld [vmem:[%s1180_s4] sm:$0xff] (!%p436_p2)  ;;  %v1003_v1 = vmov (!%p436_p2), 0   ;;  %vm544_vm0 = vcmask (!%p436_p2), 1043456   ;;  %vm540_vm1 = vcmask (!%p436_p2), 64512   ;;  %v645_v33 = vld [vmem:[%s1184_s8 + $0x8] sm:$0xff] (!%p436_p2)  ;;  %v614_v37 = vlaneseq (!%p436_p2) }
   0x6   : > { %439 = sbr.rel (%p436_p2) target bundleno = 1337 (0x539), region = 72  ;;  %583 = vmatprep.mubr.bf16.mxu0 (!%p436_p2), %v1003_v1  ;;  %981 = vset.pattern.permute.xlu0 (!%p436_p2), %v1003_v1  ;;  %v530_v9 = vld [vmem:[%s1179_s3] sm:$0xff] (!%p436_p2)  ;;  %v640_v56 = vld [vmem:[%s1183_s7 + $0x8] sm:$0xff] (!%p436_p2)  ;;  %vm738_vm2 = vcmask (!%p436_p2), 130048  }
   0x7   : > { %537 = vperm.xlu0 (!%p436_p2), %981, %v534_v0   ;;  %697 = vmatprep.mubr.bf16.mxu1 (!%p436_p2), %v1003_v1  ;;  %v531_v12 = vpack.c.bf16 (!%p436_p2), %v530_v9, %v530_v9  ;;  %v644_v32 = vld [vmem:[%s1184_s8] sm:$0xff] (!%p436_p2)  ;;  %v615_v39 = vshrl.u32 (!%p436_p2), %v614_v37, 7 }
   0x8   : > { %982 = vset.pattern.permute.xlu1 (!%p436_p2), %v1003_v1  ;;  %v732_v34 = vld [vmem:[%s1186_s10] sm:$0xff] (!%p436_p2) }
   0x9   : > { %v1127_v40 = vsub.s32 (!%p436_p2), 1, %v615_v39  ;;  %v1129_v41 = vsub.s32 (!%p436_p2), 0, %v615_v39  ;;  %v594_v42 = vld [vmem:[%s1181_s5] sm:$0x3] (!%p436_p2) }
   0xa   : > { %v595_v43 = vld [vmem:[%s1182_s6] sm:$0x3] (!%p436_p2) }
   0xb   : > { %v621_v44 = vrot.slane (!%p436_p2), %v594_v42, %v1127_v40  ;;  %v617_v45 = vrot.slane (!%p436_p2), %v594_v42, %v1129_v41  ;;  %v634_v48 = vrot.slane (!%p436_p2), %v595_v43, %v1127_v40  ;;  %v630_v50 = vrot.slane (!%p436_p2), %v595_v43, %v1129_v41  ;;  %v639_v55 = vld [vmem:[%s1183_s7] sm:$0xff] (!%p436_p2) }
   0xc   : > { %v641_v60 = vpack.c.bf16 (!%p436_p2), %v640_v56, %v639_v55 }
   0xd   : > { %s1192_s30 = smov (!%p496_p3, %s945_s30), 1 }
   0xe   : > { %s1090_s17 = sshll.u32 %s1192_s30, 4 }
   0xf   : > { %s500_s20 = scalar_lea.vmem %s1176_s0, %s1090_s17  ;;  %s505_s23 = scalar_lea.vmem %s1177_s1, %s1090_s17 }
  0x10   : > { %v525_v2 = vld [vmem:[%s500_s20 + $0x8] sm:$0xff]  ;;  %v524_v4 = vld [vmem:[%s500_s20] sm:$0xff]  ;;  %s510_s28 = scalar_lea.vmem %s1178_s2, %s1090_s17  ;;  %s515_s19 = scalar_lea.vmem %s1189_s13, %s1090_s17 }
  0x11   : > { %v527_v3 = vld [vmem:[%s505_s23 + $0x8] sm:$0xff]  ;;  %v526_v6 = vld [vmem:[%s505_s23] sm:$0xff]  ;;  %s520_s26 = scalar_lea.vmem %s1190_s14, %s1090_s17 }
  0x12   : > { %v529_v5 = vadd.f32 %v527_v3, %v525_v2  ;;  %v528_v7 = vadd.f32 %v526_v6, %v524_v4  ;;  %v522_v14 = vld [vmem:[%s510_s28] sm:$0xff]  ;;  %v523_v17 = vld [vmem:[%s510_s28 + $0x8] sm:$0xff] }
  0x14   : > { %v533_v8 = vpack.c.bf16 %v529_v5, %v529_v5  ;;  %v532_v10 = vpack.c.bf16 %v528_v7, %v528_v7 }
  0x16   : > { %960 = vmatprep.subr.msk.bf16.mxu0 %vm544_vm0, %v533_v8  ;;  %v546_v11 = vsel %vm544_vm0, %v532_v10, 0 }
  0x17   : > { %552 = vmatpush1.bf16.msra.mxu0 %v546_v11 }
  0x1a   : > { %961 = vmatmul.mubr.msk.bf16.vlgmr.msra.gmra.mrb[0].mxu0 %vm540_vm1, %v531_v12 }
  0x1b   : > { %774 = vmatprep.mubr.bf16.mxu0 %v1003_v1 }
  0x86   : > { %v538_v13 = vpop.permute.xlu0 %537 }
  0xed   : > { %v585_v15 = vpop.f32.mrb[0].mxu0 }
  0xee   : > { %v586_v16 = vadd.f32 %v585_v15, %v538_v13  ;;  %v587_v18 = vpop.f32.mrb[1].mxu0 }
  0xef   : > { %v588_v19 = vadd.f32 %v587_v18, %v538_v13  ;;  %v589_v20 = vpop.f32.mrb[2].mxu0 }
  0xf0   : > { %v1110_v21 = vadd.f32 %v586_v16, %v522_v14  ;;  %v590_v22 = vpop.f32.mrb[3].mxu0 }
  0xf1   : > { %v1112_v23 = vadd.f32 %v588_v19, %v523_v17 }
  0xf3   : > { %v596_v24 = vadd.f32 %v1112_v23, %v1110_v21 }
  0xf5   : > { %597 = vadd.xlane.f32.xlu0 %v596_v24 }
 0x182   : > { %v598_v25 = vpop.xlane.xlu0 %597 }
 0x183   : > { %v600_v26 = vmul.f32 0.00390625, %v598_v25 }
 0x185   : > { %v601_v27 = vsub.f32 %v1110_v21, %v600_v26  ;;  %v602_v28 = vsub.f32 %v1112_v23, %v600_v26 }
 0x187   : > { %v603_v29 = vmul.f32 %v601_v27, %v601_v27  ;;  %v604_v30 = vmul.f32 %v602_v28, %v602_v28 }
 0x189   : > { %v605_v31 = vadd.f32 %v604_v30, %v603_v29  ;;  %v728_v30 = vld [vmem:[%s1185_s9] sm:$0xff] }
 0x18b   : > { %606 = vadd.xlane.f32.xlu1 %v605_v31 }
 0x19c   : > { %648 = vperm.xlu1 %982, %v644_v32   ;;  %v729_v32 = vpack.c.bf16 %v728_v30, %v728_v30 }
 0x1a0   : > { %653 = vperm.xlu1 %982, %v645_v33  }
 0x1a4   : > { %735 = vperm.xlu1 %982, %v732_v34  }
 0x218   : > { %v607_v35 = vpop.xlane.xlu1 %606 }
 0x219   : > { %v608_v36 = vmul.f32 0.00390625, %v607_v35 }
 0x21b   : > { %v609_v38 = vadd.f32 1e-05, %v608_v36 }
 0x21c   : > { %v649_v61 = vpop.permute.xlu1 %648 }
 0x21d   : > { %983 = vrsqrt.f32 %v609_v38 }
 0x220   : > { %v654_v1 = vpop.permute.xlu1 %653 }
 0x224   : > { %v736_v33 = vpop.permute.xlu1 %735 }
 0x227   : > { %v984_v46 = vpop.eup %983 }
 0x228   : > { %v612_v47 = vmul.f32 %v984_v46, %v602_v28  ;;  %v611_v49 = vmul.f32 %v984_v46, %v601_v27 }
 0x22a   : > { %v625_v51 = vmul.f32 %v621_v44, %v612_v47  ;;  %v624_v52 = vmul.f32 %v617_v45, %v611_v49 }
 0x22c   : > { %v638_v53 = vadd.f32 %v634_v48, %v625_v51  ;;  %v637_v54 = vadd.f32 %v630_v50, %v624_v52 }
 0x22e   : > { %v643_v57 = vpack.c.bf16 %v638_v53, %v638_v53  ;;  %v642_v58 = vpack.c.bf16 %v637_v54, %v637_v54 }
 0x230   : > { %962 = vmatprep.subr.msk.bf16.mxu1 %vm544_vm0, %v643_v57  ;;  %v660_v59 = vsel %vm544_vm0, %v642_v58, 0 }
 0x231   : > { %666 = vmatpush1.bf16.msra.mxu1 %v660_v59 }
 0x234   : > { %963 = vmatmul.mubr.msk.bf16.vlgmr.msra.gmra.mrb[0].mxu1 %vm540_vm1, %v641_v60 }
 0x307   : > { %v699_v62 = vpop.f32.mrb[0].mxu1 }
 0x308   : > { %v700_v63 = vadd.f32 %v699_v62, %v649_v61  ;;  %v701_v0 = vpop.f32.mrb[1].mxu1 }
 0x309   : > { %v702_v2 = vadd.f32 %v701_v0, %v649_v61  ;;  %v703_v3 = vpop.f32.mrb[2].mxu1 }
 0x30a   : > { %v712_v4 = vmul.f32 0.70710677, %v700_v63  ;;  %v704_v5 = vadd.f32 %v703_v3, %v654_v1  ;;  %v705_v6 = vpop.f32.mrb[3].mxu1  ;;  %v708_v17 = vmul.f32 0.5, %v700_v63 }
 0x30b   : > { %v713_v7 = vmul.f32 0.70710677, %v702_v2  ;;  %v706_v8 = vadd.f32 %v705_v6, %v654_v1  ;;  %v709_v20 = vmul.f32 0.5, %v702_v2 }
 0x30c   : > { %985 = verf.f32 %v712_v4  ;;  %v714_v9 = vmul.f32 0.70710677, %v704_v5  ;;  %v710_v18 = vmul.f32 0.5, %v704_v5 }
 0x30d   : > { %987 = verf.f32 %v713_v7  ;;  %v715_v10 = vmul.f32 0.70710677, %v706_v8  ;;  %v711_v22 = vmul.f32 0.5, %v706_v8 }
 0x30e   : > { %989 = verf.f32 %v714_v9 }
 0x30f   : > { %991 = verf.f32 %v715_v10 }
 0x316   : > { %v986_v11 = vpop.eup %985 }
 0x317   : > { %v988_v12 = vpop.eup %987  ;;  %v720_v13 = vadd.f32 1.0, %v986_v11 }
 0x318   : > { %v990_v14 = vpop.eup %989  ;;  %v721_v15 = vadd.f32 1.0, %v988_v12 }
 0x319   : > { %v992_v16 = vpop.eup %991  ;;  %v722_v19 = vadd.f32 1.0, %v990_v14  ;;  %v724_v25 = vmul.f32 %v720_v13, %v708_v17 }
 0x31a   : > { %v723_v24 = vadd.f32 1.0, %v992_v16  ;;  %v725_v27 = vmul.f32 %v721_v15, %v709_v20 }
 0x31b   : > { %v726_v26 = vmul.f32 %v722_v19, %v710_v18 }
 0x31c   : > { %v727_v28 = vmul.f32 %v723_v24, %v711_v22 }
 0x31d   : > { %v730_v29 = vpack.c.bf16 %v726_v26, %v724_v25 }
 0x31e   : > { %v731_v31 = vpack.c.bf16 %v727_v28, %v725_v27 }
 0x320   : > { %742 = vmatprep.subr.bf16.mxu0 %v731_v31 }
 0x321   : > { %743 = vmatpush1.bf16.msra.mxu0 %v730_v29 }
 0x324   : > { %964 = vmatmul.mubr.msk.bf16.vlgmr.msra.gmra.mrb[4].mxu0 %vm738_vm2, %v729_v32 }
 0x3f7   : > { %v776_v34 = vpop.f32.mrb[4].mxu0 }
 0x3f8   : > { %v777_v35 = vadd.f32 %v776_v34, %v736_v33  ;;  %v778_v36 = vpop.f32.mrb[5].mxu0 }
 0x3f9   : > { %v779_v37 = vadd.f32 %v778_v36, %v736_v33  ;;  %v780_v38 = vpop.f32.mrb[6].mxu0 }
 0x3fa   : > { %v783_v39 = vadd.f32 %v777_v35, %v1110_v21  ;;  %v781_v42 = vpop.f32.mrb[7].mxu0  ;;  %v787_v21 = vld [vmem:[%s1187_s11] sm:$0x3] }
 0x3fb   : > { %v784_v43 = vadd.f32 %v779_v37, %v1112_v23  ;;  %v788_v23 = vld [vmem:[%s1188_s12] sm:$0x3]  ;;  %v809_v55 = vrot.slane %v787_v21, %v1129_v41  ;;  %v813_v56 = vrot.slane %v787_v21, %v1127_v40 }
 0x3fc   : > { %785 = vst [vmem:[%s515_s19] sm:$0xff] %v783_v39  ;;  %v822_v58 = vrot.slane %v788_v23, %v1129_v41  ;;  %v826_v59 = vrot.slane %v788_v23, %v1127_v40 }
 0x3fd   : > { %786 = vst [vmem:[%s515_s19 + $0x8] sm:$0xff] %v784_v43  ;;  %v789_v44 = vadd.f32 %v784_v43, %v783_v39 }
 0x3ff   : > { %790 = vadd.xlane.f32.xlu1 %v789_v44 }
 0x48c   : > { %v791_v45 = vpop.xlane.xlu1 %790 }
 0x48d   : > { %v792_v46 = vmul.f32 0.00390625, %v791_v45 }
 0x48f   : > { %v793_v47 = vsub.f32 %v783_v39, %v792_v46  ;;  %v794_v48 = vsub.f32 %v784_v43, %v792_v46 }
 0x491   : > { %v795_v49 = vmul.f32 %v793_v47, %v793_v47  ;;  %v796_v50 = vmul.f32 %v794_v48, %v794_v48 }
 0x493   : > { %v797_v51 = vadd.f32 %v796_v50, %v795_v49 }
 0x495   : > { %798 = vadd.xlane.f32.xlu0 %v797_v51 }
 0x522   : > { %v799_v52 = vpop.xlane.xlu0 %798 }
 0x523   : > { %v800_v53 = vmul.f32 0.00390625, %v799_v52 }
 0x525   : > { %v801_v54 = vadd.f32 1e-05, %v800_v53 }
 0x527   : > { %993 = vrsqrt.f32 %v801_v54 }
 0x531   : > { %v994_v57 = vpop.eup %993 }
 0x532   : > { %v803_v60 = vmul.f32 %v994_v57, %v793_v47  ;;  %v804_v61 = vmul.f32 %v994_v57, %v794_v48 }
 0x534   : > { %v816_v62 = vmul.f32 %v809_v55, %v803_v60  ;;  %v817_v63 = vmul.f32 %v813_v56, %v804_v61 }
 0x536   : > { %v829_v0 = vadd.f32 %v822_v58, %v816_v62  ;;  %v830_v1 = vadd.f32 %v826_v59, %v817_v63 }
 0x538   : > { %831 = vst [vmem:[%s520_s26] sm:$0xff] %v829_v0  ;;  %832 = vst [vmem:[%s520_s26 + $0x8] sm:$0xff] %v830_v1 }
 0x539 PF: > { %s25_s29 = sadd.s32 1, %s1001_s29  }
 0x53a   : > { %p22_p4 = scmp.ge.s32.totalorder %s25_s29, 4  }
 0x53c   :  { %24 = sbr.rel (!%p22_p4) target bundleno = 1 (0x1), region = 120 }

// kernel: _lambda_.8
= control target key start
LH: loop header
LB: loop body
LE: loop exit
PB: predicated region body
PF: predicated region fallthrough
CT: control target
= control target key end

     0   :  { %s3053_s12 = smov 0   ;;  %s3055_s13 = smov 0   ;;  %s3615_s0 = inlined_call_operand.vmem [shape: f32[2,16,8,16], index: 0, kind: input, shape index: {}]   ;;  %s3616_s1 = inlined_call_operand.vmem [shape: f32[16,48], index: 1, kind: input, shape index: {}]   ;;  %s3617_s2 = inlined_call_operand.vmem [shape: f32[1,48], index: 2, kind: input, shape index: {}]   ;;  %s3618_s3 = inlined_call_operand.vmem [shape: f32[2,16,8,16], index: 3, kind: output, shape index: {}]  }
   0x1   :  { %s3057_s14 = smov 0   ;;  %s3059_s15 = smov 0  }
   0x2   :  { %s3061_s16 = smov 0  }
   0x3 LB: > { %s22_s17 = sadd.s32 1, %s3015_s14  ;;  %s25_s18 = sadd.s32 1, %s3019_s15  ;;  %s3023_s16 = sphi %s3061_s16, %s13_s16   ;;  %s3019_s15 = sphi %s3059_s15, %s3622_s15   ;;  %s3015_s14 = sphi %s3057_s14, %s3621_s14   ;;  %s3011_s13 = sphi %s3055_s13, %s3620_s13   ;;  %s3007_s12 = sphi %s3053_s12, %s3619_s12  }
   0x4   : > { %p23_p0 = scmp.ge.s32.totalorder %s22_s17, 2  ;;  %p2503_p1 = scmp.ge.s32.totalorder %s3023_s16, 1 }
   0x5   : > { %p158_p2 = scmp.lt.s32.totalorder %s3023_s16, 5 }
   0x6   : > { %s3624_s17 = smov (%p23_p0, %s22_s17), 0  ;;  %s3626_s18 = smov (!%p23_p0, %s25_s18), %s3019_s15 }
   0x7   : > { %p159_p3 = pnand %p2503_p1, %p158_p2  ;;  %p27_p4 = scmp.ge.s32.totalorder %s3626_s18, 2 }
   0x8   : > { %v219_v0 = vld [vmem:[%s3616_s1] sm:$0xff] (!%p159_p3)  ;;  %v220_v1 = vld [vmem:[%s3616_s1 + $0x8] sm:$0xff] (!%p159_p3)  ;;  %s2504_s23 = sshll.u32 (!%p159_p3), %s3007_s12, 3  ;;  %p191_p5 = scmp.lt.s32.totalorder (!%p159_p3), %s3011_s13, 1  ;;  %v3025_v2 = vmov (!%p159_p3), 0.0   ;;  %vm3026_vm0 = vmmov (!%p159_p3), 0  }
   0x9   : > { %s3628_s18 = smov (%p27_p4, %s3626_s18), 0  ;;  %162 = sbr.rel (%p159_p3) target bundleno = 1591 (0x637), region = 32 }
   0xa   : > { %2633 = vmatprep.subr.bf16.mxu0 (!%p159_p3), %v3025_v2  ;;  %2639 = vmatprep.subr.bf16.mxu1 (!%p159_p3), %v3025_v2  ;;  %v221_v3 = vpack.c.bf16 (!%p159_p3), %v220_v1, %v219_v0  ;;  %p193_p6 = scmp.lt.s32.totalorder (!%p159_p3), %s2504_s23, 15  ;;  %vm237_vm1 = vcmask (!%p159_p3), 130048   ;;  %v2510_v20 = vld [vmem:[%s3617_s2] ss:$0 sm:$0xff] (!%p159_p3)  ;;  %s3027_s5 = smov (!%p159_p3), 112   ;;  %vm593_vm2 = vcmask (!%p159_p3), 64512  }
   0xb   : > { %2635 = vmatprep.mubr.msk.bf16.mxu0 (!%p159_p3), %vm3026_vm0, %v3025_v2  ;;  %2641 = vmatprep.mubr.msk.bf16.mxu1 (!%p159_p3), %vm3026_vm0, %v3025_v2  ;;  %s3028_s6 = smov (!%p159_p3), 96   ;;  %vm1076_vm3 = vcmask (!%p159_p3), 1043456   ;;  %s3029_s7 = smov (!%p159_p3), 104   ;;  %vm2400_vm4 = vcmask (!%p159_p3), 130112  }
   0xc   : > { %2634 = vmatpush3.bf16.msra.mxu0 (!%p159_p3), %v221_v3  ;;  %2640 = vmatpush3.bf16.msra.mxu1 (!%p159_p3), %v221_v3  ;;  %s3030_s8 = smov (!%p159_p3), 120   ;;  %s3031_s9 = smov (!%p159_p3), 88  }
   0xd   : > { %2645 = vmatprep.subr.bf16.mxu0 (!%p159_p3), %v3025_v2  ;;  %2651 = vmatprep.subr.bf16.mxu1 (!%p159_p3), %v3025_v2  ;;  %s3032_s10 = smov (!%p159_p3), 8  }
  0x10   : > { %s3630_s13 = smov (!%p191_p5, %s3011_s13), 1  ;;  %s3632_s23 = smov (!%p193_p6, %s2504_s23), 15 }
  0x11   : > { %s2505_s24 = sshll.u32 %s3630_s13, 4 }
  0x12   : > { %s3100_s25 = sadd.s32 %s2505_s24, %s3632_s23 }
  0x13   : > { %s2506_s26 = sshll.u32 %s3100_s25, 3 }
  0x14   : > { %s3108_s29 = scalar_lea.vmem %s3615_s0, %s2506_s26  ;;  %s3547_s13 = scalar_lea.vmem %s3618_s3, %s2506_s26 }
  0x15   : > { %v211_v4 = vld [vmem:[%s3108_s29] sm:$0xff]  ;;  %v212_v5 = vld [vmem:[%s3108_s29 + $0x8] sm:$0xff]  ;;  %v213_v8 = vld [vmem:[%s3108_s29 + $0x10] sm:$0xff] }
  0x16   : > { %v222_v6 = vpack.c.bf16 %v211_v4, %v211_v4  ;;  %v223_v7 = vpack.c.bf16 %v212_v5, %v212_v5  ;;  %v214_v9 = vld [vmem:[%s3108_s29 + $0x18] sm:$0xff]  ;;  %v224_v10 = vpack.c.bf16 %v213_v8, %v213_v8  ;;  %v215_v12 = vld [vmem:[%s3108_s29 + $0x20] sm:$0xff]  ;;  %v216_v13 = vld [vmem:[%s3108_s29 + $0x28] sm:$0xff] }
  0x17   : > { %v225_v11 = vpack.c.bf16 %v214_v9, %v214_v9  ;;  %v226_v14 = vpack.c.bf16 %v215_v12, %v215_v12  ;;  %v227_v15 = vpack.c.bf16 %v216_v13, %v216_v13  ;;  %v217_v16 = vld [vmem:[%s3108_s29 + $0x30] sm:$0xff]  ;;  %v218_v17 = vld [vmem:[%s3108_s29 + $0x38] sm:$0xff] }
  0x18   : > { %2636 = vmatmul.mubr.msk.bf16.vlgmr.msra.gmra.mrb[0].mxu0 %vm237_vm1, %v222_v6  ;;  %2642 = vmatmul.mubr.msk.bf16.vlgmr.msra.gmra.mrb[0].mxu1 %vm237_vm1, %v223_v7  ;;  %v228_v18 = vpack.c.bf16 %v217_v16, %v217_v16  ;;  %v229_v19 = vpack.c.bf16 %v218_v17, %v218_v17 }
  0x19   : > { %2646 = vmatpush3.bf16.msra.mxu0 %v221_v3  ;;  %2652 = vmatpush3.bf16.msra.mxu1 %v221_v3 }
  0x1a   : > { %2647 = vmatprep.mubr.msk.bf16.mxu0 %vm3026_vm0, %v3025_v2  ;;  %2653 = vmatprep.mubr.msk.bf16.mxu1 %vm3026_vm0, %v3025_v2 }
  0x1b   : > { %2657 = vmatprep.subr.bf16.mxu0 %v3025_v2  ;;  %2663 = vmatprep.subr.bf16.mxu1 %v3025_v2 }
  0x20   : > { %2648 = vmatmul.mubr.msk.bf16.vlgmr.msra.gmra.mrb[4].mxu0 %vm237_vm1, %v224_v10  ;;  %2654 = vmatmul.mubr.msk.bf16.vlgmr.msra.gmra.mrb[4].mxu1 %vm237_vm1, %v225_v11 }
  0x21   : > { %2658 = vmatpush3.bf16.msra.mxu0 %v221_v3  ;;  %2664 = vmatpush3.bf16.msra.mxu1 %v221_v3 }
  0x22   : > { %2659 = vmatprep.mubr.msk.bf16.mxu0 %vm3026_vm0, %v3025_v2  ;;  %2665 = vmatprep.mubr.msk.bf16.mxu1 %vm3026_vm0, %v3025_v2 }
  0x23   : > { %2669 = vmatprep.subr.bf16.mxu0 %v3025_v2  ;;  %2675 = vmatprep.subr.bf16.mxu1 %v3025_v2 }
  0x28   : > { %2660 = vmatmul.mubr.msk.bf16.vlgmr.msra.gmra.mrb[8].mxu0 %vm237_vm1, %v226_v14  ;;  %2666 = vmatmul.mubr.msk.bf16.vlgmr.msra.gmra.mrb[8].mxu1 %vm237_vm1, %v227_v15 }
  0x29   : > { %2670 = vmatpush3.bf16.msra.mxu0 %v221_v3  ;;  %2676 = vmatpush3.bf16.msra.mxu1 %v221_v3 }
  0x2a   : > { %2671 = vmatprep.mubr.msk.bf16.mxu0 %vm3026_vm0, %v3025_v2  ;;  %2677 = vmatprep.mubr.msk.bf16.mxu1 %vm3026_vm0, %v3025_v2 }
  0x2b   : > { %2681 = vmatprep.subr.bf16.mxu0 %v3025_v2  ;;  %2687 = vmatprep.subr.bf16.mxu1 %v3025_v2 }
  0x30   : > { %2672 = vmatmul.mubr.msk.bf16.vlgmr.msra.gmra.mrb[12].mxu0 %vm237_vm1, %v228_v18  ;;  %2678 = vmatmul.mubr.msk.bf16.vlgmr.msra.gmra.mrb[12].mxu1 %vm237_vm1, %v229_v19 }
  0x31   : > { %2683 = vmatprep.mubr.msk.bf16.mxu0 %vm3026_vm0, %v3025_v2  ;;  %2689 = vmatprep.mubr.msk.bf16.mxu1 %vm3026_vm0, %v3025_v2 }
  0xeb   : > { %v275_v21 = vpop.f32.mrb[0].mxu0  ;;  %v318_v22 = vpop.f32.mrb[0].mxu1 }
  0xec   : > { %v276_v23 = vadd.f32 %v2510_v20, %v275_v21  ;;  %v2637_v24 = vpop.f32.mrb[1].mxu0  ;;  %v319_v25 = vadd.f32 %v2510_v20, %v318_v22  ;;  %v2643_v26 = vpop.f32.mrb[1].mxu1 }
  0xed   : > { %v278_v27 = vpop.f32.mrb[2].mxu0  ;;  %v321_v28 = vpop.f32.mrb[2].mxu1 }
  0xee   : > { %v3151_v29 = vpack.c.bf16 %v276_v23, %v276_v23  ;;  %v2638_v30 = vpop.f32.mrb[3].mxu0  ;;  %v2644_v31 = vpop.f32.mrb[3].mxu1  ;;  %v3153_v32 = vpack.c.bf16 %v319_v25, %v319_v25 }
  0xf0   : > { %591 = vrot.lane.b32.xlu0 %v3151_v29, %s3027_s5 }
  0xf3   : > { %v361_v33 = vpop.f32.mrb[4].mxu0  ;;  %v404_v34 = vpop.f32.mrb[4].mxu1 }
  0xf4   : > { %v362_v35 = vadd.f32 %v2510_v20, %v361_v33  ;;  %v405_v36 = vadd.f32 %v2510_v20, %v404_v34  ;;  %641 = vrot.lane.b32.xlu0 %v3153_v32, %s3027_s5  ;;  %v2649_v37 = vpop.f32.mrb[5].mxu0  ;;  %v2655_v38 = vpop.f32.mrb[5].mxu1 }
  0xf5   : > { %v364_v39 = vpop.f32.mrb[6].mxu0  ;;  %v407_v40 = vpop.f32.mrb[6].mxu1 }
  0xf6   : > { %v3159_v41 = vpack.c.bf16 %v362_v35, %v362_v35  ;;  %v2650_v42 = vpop.f32.mrb[7].mxu0  ;;  %v2656_v43 = vpop.f32.mrb[7].mxu1  ;;  %v3161_v44 = vpack.c.bf16 %v405_v36, %v405_v36 }
  0xf8   : > { %690 = vrot.lane.b32.xlu1 %v3159_v41, %s3027_s5 }
  0xfb   : > { %v447_v45 = vpop.f32.mrb[8].mxu0  ;;  %v490_v46 = vpop.f32.mrb[8].mxu1 }
  0xfc   : > { %v448_v47 = vadd.f32 %v2510_v20, %v447_v45  ;;  %v491_v48 = vadd.f32 %v2510_v20, %v490_v46  ;;  %739 = vrot.lane.b32.xlu1 %v3161_v44, %s3027_s5  ;;  %v2661_v49 = vpop.f32.mrb[9].mxu0  ;;  %v2667_v50 = vpop.f32.mrb[9].mxu1 }
  0xfd   : > { %v450_v51 = vpop.f32.mrb[10].mxu0  ;;  %v493_v52 = vpop.f32.mrb[10].mxu1 }
  0xfe   : > { %v3167_v53 = vpack.c.bf16 %v448_v47, %v448_v47  ;;  %v3169_v54 = vpack.c.bf16 %v491_v48, %v491_v48  ;;  %v2662_v55 = vpop.f32.mrb[11].mxu0  ;;  %v2668_v56 = vpop.f32.mrb[11].mxu1 }
 0x100   : > { %788 = vrot.lane.b32.xlu0 %v3167_v53, %s3027_s5  ;;  %837 = vrot.lane.b32.xlu1 %v3169_v54, %s3027_s5 }
 0x103   : > { %v533_v57 = vpop.f32.mrb[12].mxu0  ;;  %v576_v58 = vpop.f32.mrb[12].mxu1 }
 0x104   : > { %v534_v59 = vadd.f32 %v2510_v20, %v533_v57  ;;  %v577_v60 = vadd.f32 %v2510_v20, %v576_v58  ;;  %v2673_v61 = vpop.f32.mrb[13].mxu0  ;;  %v2679_v62 = vpop.f32.mrb[13].mxu1 }
 0x105   : > { %v536_v63 = vpop.f32.mrb[14].mxu0  ;;  %v579_v0 = vpop.f32.mrb[14].mxu1 }
 0x106   : > { %v3175_v1 = vpack.c.bf16 %v534_v59, %v534_v59  ;;  %v3177_v3 = vpack.c.bf16 %v577_v60, %v577_v60  ;;  %v2674_v4 = vpop.f32.mrb[15].mxu0  ;;  %v2680_v5 = vpop.f32.mrb[15].mxu1 }
 0x108   : > { %935 = vrot.lane.b32.xlu1 %v3177_v3, %s3027_s5  ;;  %886 = vrot.lane.b32.xlu0 %v3175_v1, %s3027_s5 }
 0x10c   : > { %1071 = vrot.lane.b32.xlu1 %v3151_v29, %s3028_s6  ;;  %1120 = vrot.lane.b32.xlu0 %v3153_v32, %s3028_s6 }
 0x110   : > { %1168 = vrot.lane.b32.xlu1 %v3159_v41, %s3028_s6  ;;  %1264 = vrot.lane.b32.xlu0 %v3167_v53, %s3028_s6 }
 0x114   : > { %1216 = vrot.lane.b32.xlu1 %v3161_v44, %s3028_s6 }
 0x118   : > { %1312 = vrot.lane.b32.xlu1 %v3169_v54, %s3028_s6 }
 0x162   : > { %v592_v6 = vpop.permute.xlu0 %591 }
 0x163   : > { %v598_v7 = vsel %vm593_vm2, %v592_v6, 0 }
 0x164   : > { %2682 = vmatpush3.bf16.xpose.msra.mxu0 %v598_v7 }
 0x165   : > { %2693 = vmatprep.subr.bf16.mxu0 %v3025_v2 }
 0x166   : > { %v642_v8 = vpop.permute.xlu0 %641 }
 0x167   : > { %v647_v9 = vsel %vm593_vm2, %v642_v8, 0 }
 0x168   : > { %2688 = vmatpush3.bf16.xpose.msra.mxu1 %v647_v9 }
 0x169   : > { %2699 = vmatprep.subr.bf16.mxu1 %v3025_v2 }
 0x16a   : > { %v691_v10 = vpop.permute.xlu1 %690 }
 0x16b   : > { %v696_v11 = vsel %vm593_vm2, %v691_v10, 0  ;;  %2684 = vmatmul.mubr.msk.bf16.vlgmr.msra.gmra.mrb[16].mxu0 %vm593_vm2, %v3151_v29 }
 0x16c   : > { %2694 = vmatpush3.bf16.xpose.msra.mxu0 %v696_v11  ;;  %2695 = vmatprep.mubr.msk.bf16.mxu0 %vm3026_vm0, %v3025_v2 }
 0x16d   : > { %2705 = vmatprep.subr.bf16.mxu0 %v3025_v2 }
 0x16e   : > { %v740_v12 = vpop.permute.xlu1 %739 }
 0x16f   : > { %v745_v13 = vsel %vm593_vm2, %v740_v12, 0  ;;  %2690 = vmatmul.mubr.msk.bf16.vlgmr.msra.gmra.mrb[16].mxu1 %vm593_vm2, %v3153_v32 }
 0x170   : > { %2700 = vmatpush3.bf16.xpose.msra.mxu1 %v745_v13  ;;  %2701 = vmatprep.mubr.msk.bf16.mxu1 %vm3026_vm0, %v3025_v2 }
 0x171   : > { %2711 = vmatprep.subr.bf16.mxu1 %v3025_v2 }
 0x172   : > { %v789_v14 = vpop.permute.xlu0 %788  ;;  %v838_v15 = vpop.permute.xlu1 %837 }
 0x173   : > { %v794_v16 = vsel %vm593_vm2, %v789_v14, 0  ;;  %2696 = vmatmul.mubr.msk.bf16.vlgmr.msra.gmra.mrb[20].mxu0 %vm593_vm2, %v3159_v41  ;;  %v843_v17 = vsel %vm593_vm2, %v838_v15, 0 }
 0x174   : > { %2706 = vmatpush3.bf16.xpose.msra.mxu0 %v794_v16  ;;  %2707 = vmatprep.mubr.msk.bf16.mxu0 %vm3026_vm0, %v3025_v2 }
 0x175   : > { %2717 = vmatprep.subr.bf16.mxu0 %v3025_v2 }
 0x177   : > { %2702 = vmatmul.mubr.msk.bf16.vlgmr.msra.gmra.mrb[20].mxu1 %vm593_vm2, %v3161_v44 }
 0x178   : > { %2712 = vmatpush3.bf16.xpose.msra.mxu1 %v843_v17  ;;  %2713 = vmatprep.mubr.msk.bf16.mxu1 %vm3026_vm0, %v3025_v2 }
 0x179   : > { %2723 = vmatprep.subr.bf16.mxu1 %v3025_v2 }
 0x17a   : > { %v936_v18 = vpop.permute.xlu1 %935  ;;  %v887_v19 = vpop.permute.xlu0 %886 }
 0x17b   : > { %v892_v20 = vsel %vm593_vm2, %v887_v19, 0  ;;  %2708 = vmatmul.mubr.msk.bf16.vlgmr.msra.gmra.mrb[24].mxu0 %vm593_vm2, %v3167_v53  ;;  %v941_v21 = vsel %vm593_vm2, %v936_v18, 0 }
 0x17c   : > { %2718 = vmatpush3.bf16.xpose.msra.mxu0 %v892_v20  ;;  %2719 = vmatprep.mubr.msk.bf16.mxu0 %vm3026_vm0, %v3025_v2 }
 0x17d   : > { %2729 = vmatprep.subr.bf16.mxu0 %v3025_v2 }
 0x17e   : > { %v1072_v22 = vpop.permute.xlu1 %1071  ;;  %v1121_v24 = vpop.permute.xlu0 %1120 }
 0x17f   : > { %2714 = vmatmul.mubr.msk.bf16.vlgmr.msra.gmra.mrb[24].mxu1 %vm593_vm2, %v3169_v54  ;;  %v1078_v23 = vsel %vm1076_vm3, %v1072_v22, 0  ;;  %v1126_v25 = vsel %vm1076_vm3, %v1121_v24, 0 }
 0x180   : > { %2724 = vmatpush3.bf16.xpose.msra.mxu1 %v941_v21  ;;  %2725 = vmatprep.mubr.msk.bf16.mxu1 %vm3026_vm0, %v3025_v2 }
 0x181   : > { %2735 = vmatprep.subr.bf16.mxu1 %v3025_v2 }
 0x182   : > { %v1169_v19 = vpop.permute.xlu1 %1168  ;;  %v1265_v21 = vpop.permute.xlu0 %1264 }
 0x183   : > { %2720 = vmatmul.mubr.msk.bf16.vlgmr.msra.gmra.mrb[28].mxu0 %vm593_vm2, %v3175_v1 }
 0x184   : > { %2730 = vmatpush3.bf16.msra.mxu0 %v1078_v23  ;;  %2731 = vmatprep.mubr.msk.bf16.mxu0 %vm3026_vm0, %v3025_v2 }
 0x185   : > { %2741 = vmatprep.subr.bf16.mxu0 %v3025_v2 }
 0x186   : > { %v1217_v20 = vpop.permute.xlu1 %1216 }
 0x187   : > { %2726 = vmatmul.mubr.msk.bf16.vlgmr.msra.gmra.mrb[28].mxu1 %vm593_vm2, %v3177_v3 }
 0x188   : > { %2736 = vmatpush3.bf16.msra.mxu1 %v1126_v25  ;;  %2737 = vmatprep.mubr.msk.bf16.mxu1 %vm3026_vm0, %v3025_v2 }
 0x189   : > { %2747 = vmatprep.subr.bf16.mxu1 %v3025_v2 }
 0x18a   : > { %v1313_v22 = vpop.permute.xlu1 %1312 }
 0x23e   : > { %v634_v26 = vpop.f32.mrb[16].mxu0 }
 0x23f   : > { %v3247_v27 = vmul.f32 0.35355338, %v634_v26  ;;  %v2685_v28 = vpop.f32.mrb[17].mxu0 }
 0x240   : > { %v637_v30 = vpop.f32.mrb[18].mxu0 }
 0x241   : > { %v2686_v31 = vpop.f32.mrb[19].mxu0  ;;  %v991_v33 = vsel %vm593_vm2, %v3247_v27, -inf }
 0x242   : > { %v683_v34 = vpop.f32.mrb[16].mxu1  ;;  %992 = vmax.xlane.f32.xlu0 %v991_v33 }
 0x243   : > { %v3251_v35 = vmul.f32 0.35355338, %v683_v34  ;;  %v2691_v36 = vpop.f32.mrb[17].mxu1 }
 0x244   : > { %v686_v37 = vpop.f32.mrb[18].mxu1 }
 0x245   : > { %v2692_v38 = vpop.f32.mrb[19].mxu1  ;;  %v994_v39 = vsel %vm593_vm2, %v3251_v35, -inf  ;;  %v1174_v37 = vsel %vm1076_vm3, %v1169_v19, 0 }
 0x246   : > { %995 = vmax.xlane.f32.xlu1 %v994_v39  ;;  %v732_v40 = vpop.f32.mrb[20].mxu0 }
 0x247   : > { %v3255_v42 = vmul.f32 0.35355338, %v732_v40  ;;  %v2697_v43 = vpop.f32.mrb[21].mxu0 }
 0x248   : > { %v735_v45 = vpop.f32.mrb[22].mxu0 }
 0x249   : > { %v2698_v46 = vpop.f32.mrb[23].mxu0  ;;  %v997_v47 = vsel %vm593_vm2, %v3255_v42, -inf  ;;  %v1222_v45 = vsel %vm1076_vm3, %v1217_v20, 0 }
 0x24a   : > { %v781_v48 = vpop.f32.mrb[20].mxu1  ;;  %998 = vmax.xlane.f32.xlu0 %v997_v47 }
 0x24b   : > { %v3259_v49 = vmul.f32 0.35355338, %v781_v48  ;;  %v2703_v50 = vpop.f32.mrb[21].mxu1 }
 0x24c   : > { %v784_v51 = vpop.f32.mrb[22].mxu1 }
 0x24d   : > { %v2704_v52 = vpop.f32.mrb[23].mxu1  ;;  %v1000_v55 = vsel %vm593_vm2, %v3259_v49, -inf }
 0x24e   : > { %1001 = vmax.xlane.f32.xlu0 %v1000_v55  ;;  %v830_v56 = vpop.f32.mrb[24].mxu0  ;;  %v1318_v52 = vsel %vm1076_vm3, %v1313_v22, 0 }
 0x24f   : > { %v3263_v57 = vmul.f32 0.35355338, %v830_v56  ;;  %v2709_v58 = vpop.f32.mrb[25].mxu0 }
 0x250   : > { %v833_v59 = vpop.f32.mrb[26].mxu0 }
 0x251   : > { %v2710_v60 = vpop.f32.mrb[27].mxu0  ;;  %v1003_v61 = vsel %vm593_vm2, %v3263_v57, -inf }
 0x252   : > { %v879_v62 = vpop.f32.mrb[24].mxu1  ;;  %1004 = vmax.xlane.f32.xlu1 %v1003_v61 }
 0x253   : > { %v3267_v63 = vmul.f32 0.35355338, %v879_v62  ;;  %v2715_v0 = vpop.f32.mrb[25].mxu1 }
 0x254   : > { %v882_v4 = vpop.f32.mrb[26].mxu1 }
 0x255   : > { %v2716_v5 = vpop.f32.mrb[27].mxu1  ;;  %v1006_v6 = vsel %vm593_vm2, %v3267_v63, -inf }
 0x256   : > { %1007 = vmax.xlane.f32.xlu0 %v1006_v6  ;;  %v928_v7 = vpop.f32.mrb[28].mxu0 }
 0x257   : > { %v2721_v8 = vpop.f32.mrb[29].mxu0  ;;  %v3275_v15 = vmul.f32 0.35355338, %v928_v7 }
 0x258   : > { %v931_v9 = vpop.f32.mrb[30].mxu0 }
 0x259   : > { %v2722_v10 = vpop.f32.mrb[31].mxu0  ;;  %v1009_v17 = vsel %vm593_vm2, %v3275_v15, -inf }
 0x25a   : > { %v977_v11 = vpop.f32.mrb[28].mxu1 }
 0x25b   : > { %v2727_v12 = vpop.f32.mrb[29].mxu1  ;;  %v3277_v16 = vmul.f32 0.35355338, %v977_v11 }
 0x25c   : > { %v980_v13 = vpop.f32.mrb[30].mxu1 }
 0x25d   : > { %v2728_v14 = vpop.f32.mrb[31].mxu1  ;;  %v1012_v18 = vsel %vm593_vm2, %v3277_v16, -inf }
 0x263   : > { %1408 = vrot.lane.b32.xlu1 %v3177_v3, %s3028_s6 }
 0x26c   : > { %1360 = vrot.lane.b32.xlu0 %v3175_v1, %s3028_s6 }
 0x287   : > { %1010 = vmax.xlane.f32.xlu1 %v1009_v17 }
 0x28b   : > { %1013 = vmax.xlane.f32.xlu0 %v1012_v18 }
 0x298   : > { %1532 = vrot.lane.b32.xlu1 %v3153_v32, %s3029_s7 }
 0x29c   : > { %1530 = vrot.lane.b32.xlu1 %v3153_v32, %s3030_s8 }
 0x2a0   : > { %1632 = vrot.lane.b32.xlu1 %v3161_v44, %s3029_s7 }
 0x2a1   : > { %1482 = vrot.lane.b32.xlu0 %v3151_v29, %s3029_s7 }
 0x2a4   : > { %1630 = vrot.lane.b32.xlu1 %v3161_v44, %s3030_s8 }
 0x2a5   : > { %1480 = vrot.lane.b32.xlu0 %v3151_v29, %s3030_s8 }
 0x2a8   : > { %1732 = vrot.lane.b32.xlu1 %v3169_v54, %s3029_s7 }
 0x2a9   : > { %1582 = vrot.lane.b32.xlu0 %v3159_v41, %s3029_s7 }
 0x2ac   : > { %1730 = vrot.lane.b32.xlu1 %v3169_v54, %s3030_s8 }
 0x2ad   : > { %1580 = vrot.lane.b32.xlu0 %v3159_v41, %s3030_s8 }
 0x2b0   : > { %1832 = vrot.lane.b32.xlu1 %v3177_v3, %s3029_s7 }
 0x2b1   : > { %1682 = vrot.lane.b32.xlu0 %v3167_v53, %s3029_s7 }
 0x2b4   : > { %1830 = vrot.lane.b32.xlu1 %v3177_v3, %s3030_s8 }
 0x2b5   : > { %1680 = vrot.lane.b32.xlu0 %v3167_v53, %s3030_s8 }
 0x2b8   : > { %1968 = vrot.lane.b32.xlu1 %v3151_v29, %s3031_s9 }
 0x2b9   : > { %1782 = vrot.lane.b32.xlu0 %v3175_v1, %s3029_s7 }
 0x2bc   : > { %2064 = vrot.lane.b32.xlu1 %v3159_v41, %s3031_s9 }
 0x2bd   : > { %1780 = vrot.lane.b32.xlu0 %v3175_v1, %s3030_s8 }
 0x2c0   : > { %2112 = vrot.lane.b32.xlu1 %v3161_v44, %s3031_s9 }
 0x2c1   : > { %2016 = vrot.lane.b32.xlu0 %v3153_v32, %s3031_s9 }
 0x2cf   : > { %v993_v23 = vpop.xlane.xlu0 %992 }
 0x2d0   : > { %v1015_v29 = vsub.f32 %v3247_v27, %v993_v23 }
 0x2d2   : > { %v1023_v24 = vmul.f32 1.442695, %v1015_v29 }
 0x2d3   : > { %v996_v25 = vpop.xlane.xlu1 %995 }
 0x2d4   : > { %2921 = vpow2.f32 %v1023_v24  ;;  %v1016_v41 = vsub.f32 %v3251_v35, %v996_v25 }
 0x2d6   : > { %v1025_v26 = vmul.f32 1.442695, %v1016_v41 }
 0x2d7   : > { %v999_v28 = vpop.xlane.xlu0 %998 }
 0x2d8   : > { %2923 = vpow2.f32 %v1025_v26  ;;  %v1017_v44 = vsub.f32 %v3255_v42, %v999_v28 }
 0x2da   : > { %v1027_v30 = vmul.f32 1.442695, %v1017_v44 }
 0x2db   : > { %v1002_v31 = vpop.xlane.xlu0 %1001 }
 0x2dc   : > { %2925 = vpow2.f32 %v1027_v30  ;;  %v1018_v32 = vsub.f32 %v3259_v49, %v1002_v31  ;;  %v1270_v49 = vsel %vm1076_vm3, %v1265_v21, 0 }
 0x2de   : > { %v3311_v33 = vpop.eup %2921  ;;  %v1029_v34 = vmul.f32 1.442695, %v1018_v32 }
 0x2df   : > { %v1005_v36 = vpop.xlane.xlu1 %1004  ;;  %v1063_v27 = vpack.c.bf16 %v3311_v33, %v3311_v33 }
 0x2e0   : > { %2927 = vpow2.f32 %v1029_v34  ;;  %v1019_v35 = vsub.f32 %v3263_v57, %v1005_v36 }
 0x2e1   : > { %2732 = vmatmul.mubr.msk.bf16.vlgmr.msra.gmra.mrb[32].mxu0 %vm593_vm2, %v1063_v27 }
 0x2e2   : > { %v3318_v38 = vpop.eup %2923  ;;  %v1031_v39 = vmul.f32 1.442695, %v1019_v35  ;;  %2742 = vmatpush3.bf16.msra.mxu0 %v1174_v37  ;;  %2743 = vmatprep.mubr.msk.bf16.mxu0 %vm3026_vm0, %v3025_v2 }
 0x2e3   : > { %v1008_v40 = vpop.xlane.xlu0 %1007  ;;  %v1064_v42 = vpack.c.bf16 %v3318_v38, %v3318_v38  ;;  %2753 = vmatprep.subr.bf16.mxu0 %v3025_v2  ;;  %v1409_v60 = vpop.permute.xlu1 %1408 }
 0x2e4   : > { %2929 = vpow2.f32 %v1031_v39  ;;  %v1020_v43 = vsub.f32 %v3267_v63, %v1008_v40  ;;  %v1414_v62 = vsel %vm1076_vm3, %v1409_v60, 0 }
 0x2e5   : > { %2738 = vmatmul.mubr.msk.bf16.vlgmr.msra.gmra.mrb[32].mxu1 %vm593_vm2, %v1064_v42 }
 0x2e6   : > { %v3328_v46 = vpop.eup %2925  ;;  %v1033_v47 = vmul.f32 1.442695, %v1020_v43  ;;  %2748 = vmatpush3.bf16.msra.mxu1 %v1222_v45  ;;  %2749 = vmatprep.mubr.msk.bf16.mxu1 %vm3026_vm0, %v3025_v2 }
 0x2e7   : > { %v1065_v48 = vpack.c.bf16 %v3328_v46, %v3328_v46  ;;  %2759 = vmatprep.subr.bf16.mxu1 %v3025_v2  ;;  %v1361_v56 = vpop.permute.xlu0 %1360 }
 0x2e8   : > { %2931 = vpow2.f32 %v1033_v47  ;;  %v1366_v58 = vsel %vm1076_vm3, %v1361_v56, 0 }
 0x2e9   : > { %2744 = vmatmul.mubr.msk.bf16.vlgmr.msra.gmra.mrb[36].mxu0 %vm593_vm2, %v1065_v48 }
 0x2ea   : > { %v3337_v50 = vpop.eup %2927  ;;  %2754 = vmatpush3.bf16.msra.mxu0 %v1270_v49  ;;  %2755 = vmatprep.mubr.msk.bf16.mxu0 %vm3026_vm0, %v3025_v2 }
 0x2eb   : > { %v1066_v51 = vpack.c.bf16 %v3337_v50, %v3337_v50  ;;  %2765 = vmatprep.subr.bf16.mxu0 %v3025_v2 }
 0x2ed   : > { %2750 = vmatmul.mubr.msk.bf16.vlgmr.msra.gmra.mrb[36].mxu1 %vm593_vm2, %v1066_v51 }
 0x2ee   : > { %v3346_v55 = vpop.eup %2929  ;;  %2760 = vmatpush3.bf16.msra.mxu1 %v1318_v52  ;;  %2761 = vmatprep.mubr.msk.bf16.mxu1 %vm3026_vm0, %v3025_v2 }
 0x2ef   : > { %v1067_v57 = vpack.c.bf16 %v3346_v55, %v3346_v55  ;;  %2771 = vmatprep.subr.bf16.mxu1 %v3025_v2 }
 0x2f1   : > { %2756 = vmatmul.mubr.msk.bf16.vlgmr.msra.gmra.mrb[40].mxu0 %vm593_vm2, %v1067_v57 }
 0x2f2   : > { %v3355_v59 = vpop.eup %2931  ;;  %2766 = vmatpush3.bf16.msra.mxu0 %v1366_v58  ;;  %2767 = vmatprep.mubr.msk.bf16.mxu0 %vm3026_vm0, %v3025_v2 }
 0x2f3   : > { %v1068_v61 = vpack.c.bf16 %v3355_v59, %v3355_v59  ;;  %2777 = vmatprep.subr.bf16.mxu0 %v3025_v2 }
 0x2f5   : > { %2762 = vmatmul.mubr.msk.bf16.vlgmr.msra.gmra.mrb[40].mxu1 %vm593_vm2, %v1068_v61 }
 0x2f6   : > { %2772 = vmatpush3.bf16.msra.mxu1 %v1414_v62  ;;  %2773 = vmatprep.mubr.msk.bf16.mxu1 %vm3026_vm0, %v3025_v2 }
 0x2f7   : > { %2783 = vmatprep.subr.bf16.mxu1 %v3025_v2 }
 0x314   : > { %v1011_v63 = vpop.xlane.xlu1 %1010 }
 0x315   : > { %v1021_v0 = vsub.f32 %v3275_v15, %v1011_v63 }
 0x317   : > { %v1035_v4 = vmul.f32 1.442695, %v1021_v0 }
 0x318   : > { %v1014_v5 = vpop.xlane.xlu0 %1013  ;;  %v1533_v6 = vpop.permute.xlu1 %1532 }
 0x319   : > { %2933 = vpow2.f32 %v1035_v4  ;;  %v1022_v7 = vsub.f32 %v3277_v16, %v1014_v5  ;;  %v1538_v21 = vsel %vm593_vm2, %v1533_v6, 0 }
 0x31b   : > { %v1037_v8 = vmul.f32 1.442695, %v1022_v7 }
 0x31c   : > { %v1483_v9 = vpop.permute.xlu0 %1482  ;;  %v1531_v10 = vpop.permute.xlu1 %1530 }
 0x31d   : > { %2935 = vpow2.f32 %v1037_v8  ;;  %v1488_v15 = vsel %vm593_vm2, %v1483_v9, 0 }
 0x320   : > { %v1481_v11 = vpop.permute.xlu0 %1480  ;;  %v1633_v12 = vpop.permute.xlu1 %1632 }
 0x321   : > { %v1638_v25 = vsel %vm593_vm2, %v1633_v12, 0 }
 0x323   : > { %v3369_v13 = vpop.eup %2933 }
 0x324   : > { %v1583_v14 = vpop.permute.xlu0 %1582  ;;  %v1069_v17 = vpack.c.bf16 %v3369_v13, %v3369_v13  ;;  %v1631_v18 = vpop.permute.xlu1 %1630 }
 0x325   : > { %v1588_v23 = vsel %vm593_vm2, %v1583_v14, 0 }
 0x326   : > { %2768 = vmatmul.mubr.msk.bf16.vlgmr.msra.gmra.mrb[44].mxu0 %vm593_vm2, %v1069_v17 }
 0x327   : > { %v3375_v19 = vpop.eup %2935  ;;  %2778 = vmatpush3.bf16.xpose.msra.mxu0 %v1488_v15  ;;  %2779 = vmatprep.mubr.msk.bf16.mxu0 %vm3026_vm0, %v3025_v2 }
 0x328   : > { %v1070_v16 = vpack.c.bf16 %v3375_v19, %v3375_v19  ;;  %2789 = vmatprep.subr.bf16.mxu0 %v3025_v2  ;;  %v1581_v20 = vpop.permute.xlu0 %1580  ;;  %v1733_v22 = vpop.permute.xlu1 %1732 }
 0x329   : > { %v1738_v44 = vsel %vm593_vm2, %v1733_v22, 0 }
 0x32a   : > { %2774 = vmatmul.mubr.msk.bf16.vlgmr.msra.gmra.mrb[44].mxu1 %vm593_vm2, %v1070_v16 }
 0x32b   : > { %2784 = vmatpush3.bf16.xpose.msra.mxu1 %v1538_v21  ;;  %2785 = vmatprep.mubr.msk.bf16.mxu1 %vm3026_vm0, %v3025_v2 }
 0x32c   : > { %2795 = vmatprep.subr.bf16.mxu1 %v3025_v2  ;;  %v1683_v29 = vpop.permute.xlu0 %1682  ;;  %v1731_v24 = vpop.permute.xlu1 %1730 }
 0x32d   : > { %v1688_v26 = vsel %vm593_vm2, %v1683_v29, 0 }
 0x32e   : > { %2780 = vmatmul.mubr.msk.bf16.vlgmr.msra.gmra.mrb[48].mxu0 %vm593_vm2, %v1481_v11 }
 0x32f   : > { %2790 = vmatpush3.bf16.xpose.msra.mxu0 %v1588_v23  ;;  %2791 = vmatprep.mubr.msk.bf16.mxu0 %vm3026_vm0, %v3025_v2 }
 0x330   : > { %2801 = vmatprep.subr.bf16.mxu0 %v3025_v2  ;;  %v1681_v41 = vpop.permute.xlu0 %1680  ;;  %v1833_v28 = vpop.permute.xlu1 %1832 }
 0x331   : > { %v1838_v36 = vsel %vm593_vm2, %v1833_v28, 0 }
 0x332   : > { %2786 = vmatmul.mubr.msk.bf16.vlgmr.msra.gmra.mrb[48].mxu1 %vm593_vm2, %v1531_v10 }
 0x333   : > { %2796 = vmatpush3.bf16.xpose.msra.mxu1 %v1638_v25  ;;  %2797 = vmatprep.mubr.msk.bf16.mxu1 %vm3026_vm0, %v3025_v2 }
 0x334   : > { %2807 = vmatprep.subr.bf16.mxu1 %v3025_v2  ;;  %v1783_v30 = vpop.permute.xlu0 %1782  ;;  %v1831_v31 = vpop.permute.xlu1 %1830 }
 0x335   : > { %v1788_v32 = vsel %vm593_vm2, %v1783_v30, 0 }
 0x336   : > { %2792 = vmatmul.mubr.msk.bf16.vlgmr.msra.gmra.mrb[52].mxu0 %vm593_vm2, %v1581_v20 }
 0x337   : > { %2802 = vmatpush3.bf16.xpose.msra.mxu0 %v1688_v26  ;;  %2803 = vmatprep.mubr.msk.bf16.mxu0 %vm3026_vm0, %v3025_v2 }
 0x338   : > { %2813 = vmatprep.subr.bf16.mxu0 %v3025_v2  ;;  %v1781_v34 = vpop.permute.xlu0 %1780  ;;  %v1969_v27 = vpop.permute.xlu1 %1968 }
 0x339   : > { %v1974_v35 = vsel %vm1076_vm3, %v1969_v27, 0 }
 0x33a   : > { %2798 = vmatmul.mubr.msk.bf16.vlgmr.msra.gmra.mrb[52].mxu1 %vm593_vm2, %v1631_v18 }
 0x33b   : > { %2808 = vmatpush3.bf16.xpose.msra.mxu1 %v1738_v44  ;;  %2809 = vmatprep.mubr.msk.bf16.mxu1 %vm3026_vm0, %v3025_v2 }
 0x33c   : > { %2819 = vmatprep.subr.bf16.mxu1 %v3025_v2  ;;  %v2017_v37 = vpop.permute.xlu0 %2016 }
 0x33d   : > { %v2022_v39 = vsel %vm1076_vm3, %v2017_v37, 0 }
 0x33e   : > { %2804 = vmatmul.mubr.msk.bf16.vlgmr.msra.gmra.mrb[56].mxu0 %vm593_vm2, %v1681_v41 }
 0x33f   : > { %2814 = vmatpush3.bf16.xpose.msra.mxu0 %v1788_v32  ;;  %2815 = vmatprep.mubr.msk.bf16.mxu0 %vm3026_vm0, %v3025_v2 }
 0x340   : > { %2825 = vmatprep.subr.bf16.mxu0 %v3025_v2 }
 0x342   : > { %2810 = vmatmul.mubr.msk.bf16.vlgmr.msra.gmra.mrb[56].mxu1 %vm593_vm2, %v1731_v24 }
 0x343   : > { %2820 = vmatpush3.bf16.xpose.msra.mxu1 %v1838_v36  ;;  %2821 = vmatprep.mubr.msk.bf16.mxu1 %vm3026_vm0, %v3025_v2 }
 0x344   : > { %2831 = vmatprep.subr.bf16.mxu1 %v3025_v2 }
 0x346   : > { %2816 = vmatmul.mubr.msk.bf16.vlgmr.msra.gmra.mrb[60].mxu0 %vm593_vm2, %v1781_v34 }
 0x347   : > { %2826 = vmatpush3.bf16.msra.mxu0 %v1974_v35  ;;  %2827 = vmatprep.mubr.msk.bf16.mxu0 %vm3026_vm0, %v3025_v2 }
 0x348   : > { %2837 = vmatprep.subr.bf16.mxu0 %v3025_v2 }
 0x34a   : > { %2822 = vmatmul.mubr.msk.bf16.vlgmr.msra.gmra.mrb[60].mxu1 %vm593_vm2, %v1831_v31 }
 0x34b   : > { %2832 = vmatpush3.bf16.msra.mxu1 %v2022_v39  ;;  %2833 = vmatprep.mubr.msk.bf16.mxu1 %vm3026_vm0, %v3025_v2 }
 0x34c   : > { %2843 = vmatprep.subr.bf16.mxu1 %v3025_v2 }
 0x3b4   : > { %v3427_v40 = vpop.f32.mrb[32].mxu0 }
 0x3b5   : > { %v2733_v42 = vpop.f32.mrb[33].mxu0 }
 0x3b6   : > { %v1117_v43 = vpop.f32.mrb[34].mxu0 }
 0x3b7   : > { %v2734_v45 = vpop.f32.mrb[35].mxu0 }
 0x3b8   : > { %v3429_v47 = vpop.f32.mrb[32].mxu1 }
 0x3b9   : > { %v2739_v48 = vpop.f32.mrb[33].mxu1 }
 0x3ba   : > { %v1165_v49 = vpop.f32.mrb[34].mxu1 }
 0x3bb   : > { %v2740_v51 = vpop.f32.mrb[35].mxu1 }
 0x3bc   : > { %v3431_v52 = vpop.f32.mrb[36].mxu0 }
 0x3bd   : > { %v2745_v56 = vpop.f32.mrb[37].mxu0 }
 0x3be   : > { %v1213_v57 = vpop.f32.mrb[38].mxu0 }
 0x3bf   : > { %v2746_v58 = vpop.f32.mrb[39].mxu0 }
 0x3c0   : > { %v3433_v60 = vpop.f32.mrb[36].mxu1 }
 0x3c1   : > { %v2751_v61 = vpop.f32.mrb[37].mxu1 }
 0x3c2   : > { %v1261_v62 = vpop.f32.mrb[38].mxu1 }
 0x3c3   : > { %v2752_v63 = vpop.f32.mrb[39].mxu1 }
 0x3c4   : > { %v3435_v0 = vpop.f32.mrb[40].mxu0 }
 0x3c5   : > { %v2757_v4 = vpop.f32.mrb[41].mxu0 }
 0x3c6   : > { %v1309_v5 = vpop.f32.mrb[42].mxu0 }
 0x3c7   : > { %v2758_v6 = vpop.f32.mrb[43].mxu0 }
 0x3c8   : > { %v3437_v7 = vpop.f32.mrb[40].mxu1 }
 0x3c9   : > { %v2763_v8 = vpop.f32.mrb[41].mxu1 }
 0x3ca   : > { %v1357_v9 = vpop.f32.mrb[42].mxu1 }
 0x3cb   : > { %v2764_v10 = vpop.f32.mrb[43].mxu1 }
 0x3f9   : > { %v3439_v11 = vpop.f32.mrb[44].mxu0 }
 0x3fa   : > { %v2769_v12 = vpop.f32.mrb[45].mxu0 }
 0x3fb   : > { %v1405_v14 = vpop.f32.mrb[46].mxu0 }
 0x3fc   : > { %v2770_v17 = vpop.f32.mrb[47].mxu0 }
 0x3fd   : > { %v3441_v18 = vpop.f32.mrb[44].mxu1 }
 0x3fe   : > { %v2775_v15 = vpop.f32.mrb[45].mxu1 }
 0x3ff   : > { %v1453_v16 = vpop.f32.mrb[46].mxu1 }
 0x400   : > { %v2776_v20 = vpop.f32.mrb[47].mxu1 }
 0x401   : > { %v1524_v21 = vpop.f32.mrb[48].mxu0 }
 0x402   : > { %v3443_v22 = vmul.f32 0.35355338, %v1524_v21  ;;  %v2781_v23 = vpop.f32.mrb[49].mxu0 }
 0x403   : > { %v1527_v29 = vpop.f32.mrb[50].mxu0 }
 0x404   : > { %v2782_v24 = vpop.f32.mrb[51].mxu0  ;;  %v1888_v25 = vsel %vm593_vm2, %v3443_v22, -inf }
 0x405   : > { %v1574_v41 = vpop.f32.mrb[48].mxu1  ;;  %1889 = vmax.xlane.f32.xlu0 %v1888_v25  ;;  %v2065_v24 = vpop.permute.xlu1 %2064 }
 0x406   : > { %v1881_v26 = vmul.f32 0.35355338, %v1574_v41  ;;  %v2787_v28 = vpop.f32.mrb[49].mxu1 }
 0x407   : > { %v1577_v44 = vpop.f32.mrb[50].mxu1 }
 0x408   : > { %v2788_v30 = vpop.f32.mrb[51].mxu1  ;;  %v1891_v31 = vsel %vm593_vm2, %v1881_v26, -inf }
 0x409   : > { %1892 = vmax.xlane.f32.xlu1 %v1891_v31  ;;  %v1624_v32 = vpop.f32.mrb[52].mxu0  ;;  %v2113_v25 = vpop.permute.xlu1 %2112 }
 0x40a   : > { %v1882_v34 = vmul.f32 0.35355338, %v1624_v32  ;;  %v2793_v36 = vpop.f32.mrb[53].mxu0 }
 0x40b   : > { %v1627_v27 = vpop.f32.mrb[54].mxu0 }
 0x40c   : > { %v2794_v35 = vpop.f32.mrb[55].mxu0  ;;  %v1894_v37 = vsel %vm593_vm2, %v1882_v34, -inf }
 0x40d   : > { %v1674_v39 = vpop.f32.mrb[52].mxu1  ;;  %1895 = vmax.xlane.f32.xlu0 %v1894_v37 }
 0x40e   : > { %v1883_v42 = vmul.f32 0.35355338, %v1674_v39  ;;  %v2799_v43 = vpop.f32.mrb[53].mxu1 }
 0x40f   : > { %v1677_v45 = vpop.f32.mrb[54].mxu1 }
 0x410   : > { %v2800_v48 = vpop.f32.mrb[55].mxu1  ;;  %v1897_v49 = vsel %vm593_vm2, %v1883_v42, -inf }
 0x411   : > { %1898 = vmax.xlane.f32.xlu0 %v1897_v49  ;;  %v1724_v51 = vpop.f32.mrb[56].mxu0 }
 0x412   : > { %v2805_v56 = vpop.f32.mrb[57].mxu0  ;;  %v3454_v15 = vmul.f32 0.35355338, %v1724_v51 }
 0x413   : > { %v1727_v57 = vpop.f32.mrb[58].mxu0 }
 0x414   : > { %v2806_v58 = vpop.f32.mrb[59].mxu0  ;;  %v1900_v20 = vsel %vm593_vm2, %v3454_v15, -inf }
 0x415   : > { %v1774_v61 = vpop.f32.mrb[56].mxu1 }
 0x416   : > { %v2811_v62 = vpop.f32.mrb[57].mxu1  ;;  %v3460_v21 = vmul.f32 0.35355338, %v1774_v61 }
 0x417   : > { %v1777_v63 = vpop.f32.mrb[58].mxu1 }
 0x418   : > { %v2812_v4 = vpop.f32.mrb[59].mxu1  ;;  %v1903_v29 = vsel %vm593_vm2, %v3460_v21, -inf }
 0x419   : > { %v1824_v5 = vpop.f32.mrb[60].mxu0 }
 0x41a   : > { %2208 = vrot.lane.b32.xlu1 %v3169_v54, %s3031_s9  ;;  %v2817_v6 = vpop.f32.mrb[61].mxu0  ;;  %v3456_v16 = vmul.f32 0.35355338, %v1824_v5 }
 0x41b   : > { %v1827_v8 = vpop.f32.mrb[62].mxu0 }
 0x41c   : > { %v2818_v9 = vpop.f32.mrb[63].mxu0  ;;  %v1906_v54 = vsel %vm593_vm2, %v3456_v16, -inf }
 0x41d   : > { %v1874_v10 = vpop.f32.mrb[60].mxu1 }
 0x41e   : > { %v2823_v12 = vpop.f32.mrb[61].mxu1  ;;  %v3464_v23 = vmul.f32 0.35355338, %v1874_v10 }
 0x41f   : > { %v1877_v14 = vpop.f32.mrb[62].mxu1 }
 0x420   : > { %v2824_v17 = vpop.f32.mrb[63].mxu1 }
 0x427   : > { %2160 = vrot.lane.b32.xlu0 %v3167_v53, %s3031_s9  ;;  %v1909_v53 = vsel %vm593_vm2, %v3464_v23, -inf }
 0x43e   : > { %1901 = vmax.xlane.f32.xlu1 %v1900_v20 }
 0x442   : > { %1907 = vmax.xlane.f32.xlu1 %v1906_v54 }
 0x446   : > { %1904 = vmax.xlane.f32.xlu0 %v1903_v29 }
 0x44a   : > { %1910 = vmax.xlane.f32.xlu0 %v1909_v53 }
 0x453   : > { %2304 = vrot.lane.b32.xlu1 %v3177_v3, %s3031_s9 }
 0x460   : > { %2256 = vrot.lane.b32.xlu0 %v3175_v1, %s3031_s9 }
 0x492   : > { %v1890_v41 = vpop.xlane.xlu0 %1889 }
 0x493   : > { %v1912_v28 = vsub.f32 %v3443_v22, %v1890_v41  ;;  %v2070_v22 = vsel %vm1076_vm3, %v2065_v24, 0 }
 0x495   : > { %v1920_v44 = vmul.f32 1.442695, %v1912_v28 }
 0x496   : > { %v1893_v30 = vpop.xlane.xlu1 %1892 }
 0x497   : > { %2937 = vpow2.f32 %v1920_v44  ;;  %v1913_v31 = vsub.f32 %v1881_v26, %v1893_v30 }
 0x499   : > { %v1922_v32 = vmul.f32 1.442695, %v1913_v31 }
 0x49a   : > { %v1896_v36 = vpop.xlane.xlu0 %1895  ;;  %v2209_v62 = vpop.permute.xlu1 %2208 }
 0x49b   : > { %2939 = vpow2.f32 %v1922_v32  ;;  %v1914_v27 = vsub.f32 %v1882_v34, %v1896_v36  ;;  %v2214_v5 = vsel %vm1076_vm3, %v2209_v62, 0  ;;  %v1039_v32 = vsel %vm593_vm2, %v3311_v33, 0.0 }
 0x49c   : > { %v1045_v33 = vsel %vm593_vm2, %v3328_v46, 0.0  ;;  %v1054_v46 = vsel %vm593_vm2, %v3355_v59, 0.0 }
 0x49d   : > { %v1924_v35 = vmul.f32 1.442695, %v1914_v27 }
 0x49e   : > { %v1899_v37 = vpop.xlane.xlu0 %1898 }
 0x49f   : > { %2941 = vpow2.f32 %v1924_v35  ;;  %v1915_v3 = vsub.f32 %v1883_v42, %v1899_v37  ;;  %v2118_v42 = vsel %vm1076_vm3, %v2113_v25, 0 }
 0x4a1   : > { %v2938_v39 = vpop.eup %2937  ;;  %v1926_v43 = vmul.f32 1.442695, %v1915_v3 }
 0x4a2   : > { %v1936_v1 = vsel %vm593_vm2, %v2938_v39, 0.0  ;;  %v1960_v45 = vpack.c.bf16 %v2938_v39, %v2938_v39  ;;  %v2161_v51 = vpop.permute.xlu0 %2160  ;;  %v1042_v39 = vsel %vm593_vm2, %v3318_v38, 0.0  ;;  %v1060_v38 = vsel %vm593_vm2, %v3375_v19, 0.0 }
 0x4a3   : > { %2943 = vpow2.f32 %v1926_v43  ;;  %1937 = vadd.xlane.f32.xlu0 %v1936_v1  ;;  %v2166_v58 = vsel %vm1076_vm3, %v2161_v51, 0  ;;  %v1051_v43 = vsel %vm593_vm2, %v3346_v55, 0.0 }
 0x4a4   : > { %2828 = vmatmul.mubr.msk.bf16.vlgmr.msra.gmra.mrb[64].mxu0 %vm593_vm2, %v1960_v45  ;;  %v1057_v45 = vsel %vm593_vm2, %v3369_v13, 0.0 }
 0x4a5   : > { %v2940_v26 = vpop.eup %2939  ;;  %2838 = vmatpush3.bf16.msra.mxu0 %v2070_v22  ;;  %2839 = vmatprep.mubr.msk.bf16.mxu0 %vm3026_vm0, %v3025_v2 }
 0x4a6   : > { %v1939_v34 = vsel %vm593_vm2, %v2940_v26, 0.0  ;;  %v1961_v48 = vpack.c.bf16 %v2940_v26, %v2940_v26  ;;  %2849 = vmatprep.subr.bf16.mxu0 %v3025_v2 }
 0x4a7   : > { %1940 = vadd.xlane.f32.xlu1 %v1939_v34 }
 0x4a8   : > { %2834 = vmatmul.mubr.msk.bf16.vlgmr.msra.gmra.mrb[64].mxu1 %vm593_vm2, %v1961_v48 }
 0x4a9   : > { %v2942_v49 = vpop.eup %2941  ;;  %2844 = vmatpush3.bf16.msra.mxu1 %v2118_v42  ;;  %2845 = vmatprep.mubr.msk.bf16.mxu1 %vm3026_vm0, %v3025_v2 }
 0x4aa   : > { %v1942_v56 = vsel %vm593_vm2, %v2942_v49, 0.0  ;;  %v1962_v57 = vpack.c.bf16 %v2942_v49, %v2942_v49  ;;  %2855 = vmatprep.subr.bf16.mxu1 %v3025_v2 }
 0x4ab   : > { %1943 = vadd.xlane.f32.xlu0 %v1942_v56 }
 0x4ac   : > { %2840 = vmatmul.mubr.msk.bf16.vlgmr.msra.gmra.mrb[68].mxu0 %vm593_vm2, %v1962_v57 }
 0x4ad   : > { %v2944_v61 = vpop.eup %2943  ;;  %2850 = vmatpush3.bf16.msra.mxu0 %v2166_v58  ;;  %2851 = vmatprep.mubr.msk.bf16.mxu0 %vm3026_vm0, %v3025_v2 }
 0x4ae   : > { %v1945_v63 = vsel %vm593_vm2, %v2944_v61, 0.0  ;;  %v1963_v4 = vpack.c.bf16 %v2944_v61, %v2944_v61  ;;  %2861 = vmatprep.subr.bf16.mxu0 %v3025_v2 }
 0x4af   : > { %1946 = vadd.xlane.f32.xlu0 %v1945_v63 }
 0x4b0   : > { %2846 = vmatmul.mubr.msk.bf16.vlgmr.msra.gmra.mrb[68].mxu1 %vm593_vm2, %v1963_v4 }
 0x4b1   : > { %2856 = vmatpush3.bf16.msra.mxu1 %v2214_v5  ;;  %2857 = vmatprep.mubr.msk.bf16.mxu1 %vm3026_vm0, %v3025_v2 }
 0x4b2   : > { %2867 = vmatprep.subr.bf16.mxu1 %v3025_v2 }
 0x4cb   : > { %v1902_v6 = vpop.xlane.xlu1 %1901 }
 0x4cc   : > { %v1916_v8 = vsub.f32 %v3454_v15, %v1902_v6 }
 0x4ce   : > { %v1928_v9 = vmul.f32 1.442695, %v1916_v8 }
 0x4cf   : > { %v1908_v10 = vpop.xlane.xlu1 %1907 }
 0x4d0   : > { %2945 = vpow2.f32 %v1928_v9  ;;  %v1918_v12 = vsub.f32 %v3456_v16, %v1908_v10 }
 0x4d2   : > { %v1932_v14 = vmul.f32 1.442695, %v1918_v12 }
 0x4d3   : > { %v1905_v17 = vpop.xlane.xlu0 %1904  ;;  %v2305_v30 = vpop.permute.xlu1 %2304 }
 0x4d4   : > { %2947 = vpow2.f32 %v1932_v14  ;;  %v1917_v20 = vsub.f32 %v3460_v21, %v1905_v17  ;;  %v2310_v35 = vsel %vm1076_vm3, %v2305_v30, 0 }
 0x4d6   : > { %v1930_v54 = vmul.f32 1.442695, %v1917_v20 }
 0x4d7   : > { %v1911_v29 = vpop.xlane.xlu0 %1910 }
 0x4d8   : > { %2949 = vpow2.f32 %v1930_v54  ;;  %v1919_v53 = vsub.f32 %v3464_v23, %v1911_v29 }
 0x4da   : > { %v2946_v24 = vpop.eup %2945  ;;  %v1934_v25 = vmul.f32 1.442695, %v1919_v53 }
 0x4db   : > { %v2257_v41 = vpop.permute.xlu0 %2256  ;;  %v1948_v15 = vsel %vm593_vm2, %v2946_v24, 0.0  ;;  %v1964_v28 = vpack.c.bf16 %v2946_v24, %v2946_v24 }
 0x4dc   : > { %2951 = vpow2.f32 %v1934_v25  ;;  %v2262_v44 = vsel %vm1076_vm3, %v2257_v41, 0  ;;  %1949 = vadd.xlane.f32.xlu1 %v1948_v15 }
 0x4dd   : > { %2852 = vmatmul.mubr.msk.bf16.vlgmr.msra.gmra.mrb[72].mxu0 %vm593_vm2, %v1964_v28 }
 0x4de   : > { %v2948_v16 = vpop.eup %2947  ;;  %2862 = vmatpush3.bf16.msra.mxu0 %v2262_v44  ;;  %2863 = vmatprep.mubr.msk.bf16.mxu0 %vm3026_vm0, %v3025_v2 }
 0x4df   : > { %v1954_v21 = vsel %vm593_vm2, %v2948_v16, 0.0  ;;  %v1966_v27 = vpack.c.bf16 %v2948_v16, %v2948_v16 }
 0x4e0   : > { %1955 = vadd.xlane.f32.xlu1 %v1954_v21 }
 0x4e2   : > { %v2950_v23 = vpop.eup %2949 }
 0x4e3   : > { %v1951_v31 = vsel %vm593_vm2, %v2950_v23, 0.0  ;;  %v1965_v36 = vpack.c.bf16 %v2950_v23, %v2950_v23 }
 0x4e4   : > { %1952 = vadd.xlane.f32.xlu0 %v1951_v31  ;;  %1040 = vadd.xlane.f32.xlu1 %v1039_v32 }
 0x4e5   : > { %2858 = vmatmul.mubr.msk.bf16.vlgmr.msra.gmra.mrb[72].mxu1 %vm593_vm2, %v1965_v36  ;;  %2864 = vmatmul.mubr.msk.bf16.vlgmr.msra.gmra.mrb[76].mxu0 %vm593_vm2, %v1966_v27 }
 0x4e6   : > { %v2952_v37 = vpop.eup %2951  ;;  %2868 = vmatpush3.bf16.msra.mxu1 %v2310_v35  ;;  %2869 = vmatprep.mubr.msk.bf16.mxu1 %vm3026_vm0, %v3025_v2  ;;  %v1048_v2 = vsel %vm593_vm2, %v3337_v50, 0.0 }
 0x4e7   : > { %v1957_v3 = vsel %vm593_vm2, %v2952_v37, 0.0  ;;  %v1967_v1 = vpack.c.bf16 %v2952_v37, %v2952_v37 }
 0x4e8   : > { %1958 = vadd.xlane.f32.xlu0 %v1957_v3  ;;  %1046 = vadd.xlane.f32.xlu1 %v1045_v33 }
 0x4ec   : > { %1043 = vadd.xlane.f32.xlu0 %v1042_v39  ;;  %1052 = vadd.xlane.f32.xlu1 %v1051_v43 }
 0x4ed   : > { %2870 = vmatmul.mubr.msk.bf16.vlgmr.msra.gmra.mrb[76].mxu1 %vm593_vm2, %v1967_v1 }
 0x4f0   : > { %1049 = vadd.xlane.f32.xlu0 %v1048_v2  ;;  %1058 = vadd.xlane.f32.xlu1 %v1057_v45 }
 0x4f4   : > { %1055 = vadd.xlane.f32.xlu0 %v1054_v46 }
 0x4f8   : > { %1061 = vadd.xlane.f32.xlu0 %v1060_v38 }
 0x530   : > { %v1938_v55 = vpop.xlane.xlu0 %1937 }
 0x531   : > { %2953 = vrcp.f32 %v1938_v55 }
 0x534   : > { %v1941_v22 = vpop.xlane.xlu1 %1940 }
 0x535   : > { %2955 = vrcp.f32 %v1941_v22 }
 0x538   : > { %v1944_v26 = vpop.xlane.xlu0 %1943 }
 0x53b   : > { %v2954_v19 = vpop.eup %2953 }
 0x53c   : > { %v1947_v50 = vpop.xlane.xlu0 %1946 }
 0x53f   : > { %v2956_v63 = vpop.eup %2955 }
 0x569   : > { %v3533_v34 = vpop.xlane.xlu1 %1949 }
 0x56d   : > { %v3535_v48 = vpop.xlane.xlu1 %1955 }
 0x571   : > { %v3537_v13 = vpop.xlane.xlu0 %1952  ;;  %v1041_v42 = vpop.xlane.xlu1 %1040 }
 0x572   : > { %2957 = vrcp.f32 %v1041_v42 }
 0x573   : > { %2959 = vrcp.f32 %v1944_v26 }
 0x575   : > { %v3539_v59 = vpop.xlane.xlu0 %1958  ;;  %v1047_v49 = vpop.xlane.xlu1 %1046 }
 0x576   : > { %2961 = vrcp.f32 %v1047_v49 }
 0x577   : > { %v2010_v51 = vpop.f32.mrb[64].mxu0  ;;  %2963 = vrcp.f32 %v1947_v50 }
 0x578   : > { %v2360_v56 = vmul.f32 %v2954_v19, %v2010_v51  ;;  %v2829_v57 = vpop.f32.mrb[65].mxu0 }
 0x579   : > { %v1044_v58 = vpop.xlane.xlu0 %1043  ;;  %v1053_v61 = vpop.xlane.xlu1 %1052 }
 0x57a   : > { %2965 = vrcp.f32 %v1044_v58  ;;  %v2013_v62 = vpop.f32.mrb[66].mxu0  ;;  %2376 = vrot.lane.b32.xlu1 %v2360_v56, %s3032_s10 }
 0x57b   : > { %2967 = vrcp.f32 %v1053_v61  ;;  %v2830_v4 = vpop.f32.mrb[67].mxu0  ;;  %v2058_v5 = vpop.f32.mrb[64].mxu1 }
 0x57c   : > { %v2361_v6 = vmul.f32 %v2956_v63, %v2058_v5  ;;  %v2835_v8 = vpop.f32.mrb[65].mxu1  ;;  %v2958_v9 = vpop.eup %2957 }
 0x57d   : > { %v2061_v10 = vpop.f32.mrb[66].mxu1  ;;  %v1050_v12 = vpop.xlane.xlu0 %1049  ;;  %v1464_v14 = vmul.f32 %v2958_v9, %v3427_v40 }
 0x57e   : > { %2969 = vrcp.f32 %v1050_v12  ;;  %v1059_v17 = vpop.xlane.xlu1 %1058  ;;  %v2836_v20 = vpop.f32.mrb[67].mxu1  ;;  %2378 = vrot.lane.b32.xlu0 %v2361_v6, %s3032_s10 }
 0x57f   : > { %v2960_v54 = vpop.eup %2959  ;;  %2971 = vrcp.f32 %v1059_v17  ;;  %v2106_v29 = vpop.f32.mrb[68].mxu0  ;;  %1472 = vst.msk [vmem:[%s3547_s13] sm:$0xff] %vm593_vm2, %v1464_v14 }
 0x580   : > { %v2362_v53 = vmul.f32 %v2960_v54, %v2106_v29  ;;  %v2841_v24 = vpop.f32.mrb[69].mxu0  ;;  %v2962_v25 = vpop.eup %2961 }
 0x581   : > { %v1056_v41 = vpop.xlane.xlu0 %1055  ;;  %v2109_v15 = vpop.f32.mrb[70].mxu0  ;;  %v1466_v28 = vmul.f32 %v2962_v25, %v3431_v52 }
 0x582   : > { %2973 = vrcp.f32 %v1056_v41  ;;  %2380 = vrot.lane.b32.xlu1 %v2362_v53, %s3032_s10  ;;  %v2842_v40 = vpop.f32.mrb[71].mxu0  ;;  %v2964_v44 = vpop.eup %2963 }
 0x583   : > { %v2154_v16 = vpop.f32.mrb[68].mxu1  ;;  %1474 = vst.msk [vmem:[%s3547_s13 + $0x10] sm:$0xff] %vm593_vm2, %v1466_v28 }
 0x584   : > { %v2966_v21 = vpop.eup %2965  ;;  %v2363_v23 = vmul.f32 %v2964_v44, %v2154_v16  ;;  %v2847_v30 = vpop.f32.mrb[69].mxu1 }
 0x585   : > { %v2968_v31 = vpop.eup %2967  ;;  %v1465_v32 = vmul.f32 %v2966_v21, %v3429_v47  ;;  %v2157_v36 = vpop.f32.mrb[70].mxu1 }
 0x586   : > { %v1062_v52 = vpop.xlane.xlu0 %1061  ;;  %v1468_v27 = vmul.f32 %v2968_v31, %v3435_v0  ;;  %v2848_v35 = vpop.f32.mrb[71].mxu1  ;;  %2382 = vrot.lane.b32.xlu1 %v2363_v23, %s3032_s10 }
 0x587   : > { %2975 = vrcp.f32 %v1062_v52  ;;  %1473 = vst.msk [vmem:[%s3547_s13 + $0x8] sm:$0xff] %vm593_vm2, %v1465_v32 }
 0x588   : > { %v2970_v37 = vpop.eup %2969  ;;  %1476 = vst.msk [vmem:[%s3547_s13 + $0x20] sm:$0xff] %vm593_vm2, %v1468_v27  ;;  %2977 = vrcp.f32 %v3533_v34 }
 0x589   : > { %v2972_v3 = vpop.eup %2971  ;;  %v1467_v33 = vmul.f32 %v2970_v37, %v3433_v60  ;;  %2979 = vrcp.f32 %v3535_v48 }
 0x58a   : > { %v1470_v47 = vmul.f32 %v2972_v3, %v3439_v11  ;;  %2981 = vrcp.f32 %v3537_v13 }
 0x58b   : > { %1475 = vst.msk [vmem:[%s3547_s13 + $0x18] sm:$0xff] %vm593_vm2, %v1467_v33  ;;  %2983 = vrcp.f32 %v3539_v59 }
 0x58c   : > { %v2974_v39 = vpop.eup %2973  ;;  %1478 = vst.msk [vmem:[%s3547_s13 + $0x30] sm:$0xff] %vm593_vm2, %v1470_v47 }
 0x58d   : > { %v1469_v0 = vmul.f32 %v2974_v39, %v3437_v7 }
 0x58f   : > { %1477 = vst.msk [vmem:[%s3547_s13 + $0x28] sm:$0xff] %vm593_vm2, %v1469_v0 }
 0x591   : > { %v2976_v43 = vpop.eup %2975 }
 0x592   : > { %v1471_v1 = vmul.f32 %v2976_v43, %v3441_v18  ;;  %v2978_v60 = vpop.eup %2977 }
 0x593   : > { %v2980_v38 = vpop.eup %2979 }
 0x594   : > { %1479 = vst.msk [vmem:[%s3547_s13 + $0x38] sm:$0xff] %vm593_vm2, %v1471_v1  ;;  %v2982_v18 = vpop.eup %2981 }
 0x595   : > { %v2984_v59 = vpop.eup %2983 }
 0x5b0   : > { %v2202_v11 = vpop.f32.mrb[72].mxu0 }
 0x5b1   : > { %v2364_v2 = vmul.f32 %v2978_v60, %v2202_v11  ;;  %v2853_v45 = vpop.f32.mrb[73].mxu0 }
 0x5b2   : > { %v2205_v46 = vpop.f32.mrb[74].mxu0 }
 0x5b3   : > { %2384 = vrot.lane.b32.xlu0 %v2364_v2, %s3032_s10  ;;  %v2854_v7 = vpop.f32.mrb[75].mxu0 }
 0x5b8   : > { %v2250_v55 = vpop.f32.mrb[72].mxu1  ;;  %v2298_v22 = vpop.f32.mrb[76].mxu0 }
 0x5b9   : > { %v2365_v26 = vmul.f32 %v2982_v18, %v2250_v55  ;;  %v2366_v34 = vmul.f32 %v2980_v38, %v2298_v22  ;;  %v2859_v50 = vpop.f32.mrb[73].mxu1  ;;  %v2865_v48 = vpop.f32.mrb[77].mxu0 }
 0x5ba   : > { %v2253_v13 = vpop.f32.mrb[74].mxu1  ;;  %v2301_v42 = vpop.f32.mrb[78].mxu0 }
 0x5bb   : > { %v2860_v49 = vpop.f32.mrb[75].mxu1  ;;  %2386 = vrot.lane.b32.xlu1 %v2365_v26, %s3032_s10  ;;  %2388 = vrot.lane.b32.xlu0 %v2366_v34, %s3032_s10  ;;  %v2866_v19 = vpop.f32.mrb[79].mxu0 }
 0x5c0   : > { %v2346_v51 = vpop.f32.mrb[76].mxu1 }
 0x5c1   : > { %v2367_v56 = vmul.f32 %v2984_v59, %v2346_v51  ;;  %v2871_v57 = vpop.f32.mrb[77].mxu1 }
 0x5c2   : > { %v2349_v58 = vpop.f32.mrb[78].mxu1 }
 0x5c3   : > { %v2872_v61 = vpop.f32.mrb[79].mxu1  ;;  %2390 = vrot.lane.b32.xlu1 %v2367_v56, %s3032_s10 }
 0x5ec   : > { %v2377_v62 = vpop.permute.xlu1 %2376 }
 0x5ed   : > { %2401 = vst.msk [vmem:[%s3547_s13] sm:$0xff] %vm2400_vm4, %v2377_v62 }
 0x5f0   : > { %v2379_v63 = vpop.permute.xlu0 %2378 }
 0x5f1   : > { %2402 = vst.msk [vmem:[%s3547_s13 + $0x8] sm:$0xff] %vm2400_vm4, %v2379_v63 }
 0x5f4   : > { %v2381_v4 = vpop.permute.xlu1 %2380 }
 0x5f5   : > { %2403 = vst.msk [vmem:[%s3547_s13 + $0x10] sm:$0xff] %vm2400_vm4, %v2381_v4 }
 0x5f8   : > { %v2383_v5 = vpop.permute.xlu1 %2382 }
 0x5f9   : > { %2404 = vst.msk [vmem:[%s3547_s13 + $0x18] sm:$0xff] %vm2400_vm4, %v2383_v5 }
 0x625   : > { %v2385_v6 = vpop.permute.xlu0 %2384 }
 0x626   : > { %2405 = vst.msk [vmem:[%s3547_s13 + $0x20] sm:$0xff] %vm2400_vm4, %v2385_v6 }
 0x62d   : > { %v2387_v8 = vpop.permute.xlu1 %2386  ;;  %v2389_v9 = vpop.permute.xlu0 %2388 }
 0x62e   : > { %2406 = vst.msk [vmem:[%s3547_s13 + $0x28] sm:$0xff] %vm2400_vm4, %v2387_v8  ;;  %2407 = vst.msk [vmem:[%s3547_s13 + $0x30] sm:$0xff] %vm2400_vm4, %v2389_v9 }
 0x635   : > { %v2391_v10 = vpop.permute.xlu1 %2390 }
 0x636   : > { %2408 = vst.msk [vmem:[%s3547_s13 + $0x38] sm:$0xff] %vm2400_vm4, %v2391_v10 }
 0x637 PF: > { %s13_s16 = sadd.s32 1, %s3023_s16   ;;  %s3619_s12 = smov %s3015_s14 }
 0x638   : > { %p10_p7 = scmp.ge.s32.totalorder %s13_s16, 6   ;;  %s3620_s13 = smov %s3019_s15 }
 0x639   : > { %s3621_s14 = smov %s3624_s17  ;;  %s3622_s15 = smov %s3628_s18 }
 0x63a   :  { %12 = sbr.rel (!%p10_p7) target bundleno = 3 (0x3), region = 62 }

// kernel: _lambda_.13
= control target key start
LH: loop header
LB: loop body
LE: loop exit
PB: predicated region body
PF: predicated region fallthrough
CT: control target
= control target key end

     0   :  { %s1376_s0 = inlined_call_operand.vmem [shape: f32[2,8,256], index: 0, kind: input, shape index: {}]   ;;  %s1377_s1 = inlined_call_operand.vmem [shape: f32[2,8,256], index: 1, kind: input, shape index: {}]   ;;  %s1378_s2 = inlined_call_operand.vmem [shape: f32[2,8,256], index: 2, kind: input, shape index: {}]   ;;  %s1379_s3 = inlined_call_operand.vmem [shape: f32[8,8], index: 3, kind: input, shape index: {}]   ;;  %s1380_s4 = inlined_call_operand.vmem [shape: f32[8,1], index: 4, kind: input, shape index: {}]   ;;  %s1381_s5 = inlined_call_operand.vmem [shape: f32[1,256], index: 5, kind: input, shape index: {}]   ;;  %s1382_s6 = inlined_call_operand.vmem [shape: f32[1,256], index: 6, kind: input, shape index: {}]   ;;  %s1383_s7 = inlined_call_operand.vmem [shape: f32[16,8], index: 7, kind: input, shape index: {}]   ;;  %s1384_s8 = inlined_call_operand.vmem [shape: f32[16,1], index: 8, kind: input, shape index: {}]   ;;  %s1385_s9 = inlined_call_operand.vmem [shape: f32[8,16], index: 9, kind: input, shape index: {}]   ;;  %s1386_s10 = inlined_call_operand.vmem [shape: f32[8,1], index: 10, kind: input, shape index: {}]   ;;  %s1387_s11 = inlined_call_operand.vmem [shape: f32[1,256], index: 11, kind: input, shape index: {}]   ;;  %s1388_s12 = inlined_call_operand.vmem [shape: f32[1,256], index: 12, kind: input, shape index: {}]   ;;  %s1389_s13 = inlined_call_operand.hbm [shape: f32[2,8,256], index: 13, kind: output, shape index: {0}]   ;;  %s1390_s14 = inlined_call_operand.vmem [shape: f32[2,8,256], index: 14, kind: output, shape index: {1}]  }
   0x1   :  { %1392 = sst [smem:[#allocation7_spill]] %s1376_s0 }
   0x2   :  { %1393 = sst [smem:[#allocation8_spill]] %s1377_s1 }
   0x3   :  { %1394 = sst [smem:[#allocation9_spill]] %s1378_s2 }
   0x4   :  { %1395 = sst [smem:[#allocation10_spill]] %s1379_s3 }
   0x5   :  { %20 = vsyncpa [#allocation3], 0 }
   0x6   :  { %22 = vsyncpa [#allocation3 + $0x1], 0  ;;  %s1199_s29 = smov 0   ;;  %s1201_s30 = smov 0  }
   0x7   :  { %s1203_s15 = smov 0   ;;  %s1205_s16 = smov 0  }
   0x8 LB: > { %1396 = sst [smem:[#allocation5_spill]] %s1116_s15  ;;  %s1220_s17 = sadd.s32 4294967295, %s1120_s16   ;;  %s1120_s16 = sphi %s1205_s16, %s1408_s16   ;;  %s1116_s15 = sphi %s1203_s15, %s1405_s15   ;;  %s1112_s30 = sphi %s1201_s30, %s1407_s30   ;;  %s1108_s29 = sphi %s1199_s29, %s1406_s29  }
   0x9   : > { %s972_s18 = sadd.s32 4294967294, %s1120_s16   ;;  %s1224_s19 = sadd.s32 1, %s1120_s16  }
   0xa   : > { %s323_s20 = sadd.s32 1, %s1116_s15  ;;  %s320_s21 = ssub.s32 %s1120_s16, %s1224_s19 }
   0xb   : > { %p333_p0 = scmp.ne.s32.totalorder %s1116_s15, %s1112_s30  ;;  %p321_p1 = scmp.eq.s32.totalorder %s320_s21, 0 }
   0xc   : > { %p334_p2 = scmp.eq.s32.totalorder %s1220_s17, 1  ;;  %p339_p3 = scmp.ne.s32.totalorder %s1112_s30, %s1108_s29 }
   0xd   : > { %p340_p4 = scmp.eq.s32.totalorder %s972_s18, 1  ;;  %p975_p7 = scmp.ge.s32.totalorder %s1120_s16, 1 }
   0xe   : > { %s1235_s22 = scalar_select %p321_p1, %s1116_s15, %s323_s20  }
   0xf   : > { %p1237_p5 = por %p334_p2, %p333_p0  ;;  %p1241_p6 = por %p340_p4, %p339_p3 }
  0x10   : > { %1397 = sst [smem:[#allocation6_spill]] %s1235_s22  ;;  %p438_p8 = scmp.lt.s32.totalorder %s1120_s16, 3 }
  0x12   : > { %p439_p9 = pnand %p975_p7, %p438_p8 }
  0x13   : > { %p499_p10 = scmp.lt.s32.totalorder (!%p439_p9), %s1220_s17, 1  ;;  %v532_v0 = vld [vmem:[%s1380_s4] sm:$0xff] (!%p439_p9)  ;;  %v1122_v1 = vmov (!%p439_p9), 0   ;;  %s1400_s0 = sld [smem:[#allocation7_spill]] (!%p439_p9)  ;;  %vm542_vm0 = vcmask (!%p439_p9), 1043456   ;;  %vm538_vm1 = vcmask (!%p439_p9), 64512   ;;  %v612_v37 = vlaneseq (!%p439_p9) }
  0x14   : > { %442 = sbr.rel (%p439_p9) target bundleno = 1369 (0x559), region = 72  ;;  %581 = vmatprep.mubr.bf16.mxu0 (!%p439_p9), %v1122_v1  ;;  %1040 = vset.pattern.permute.xlu0 (!%p439_p9), %v1122_v1  ;;  %s1401_s1 = sld [smem:[#allocation8_spill]] (!%p439_p9)  ;;  %v642_v32 = vld [vmem:[%s1384_s8] sm:$0xff] (!%p439_p9)  ;;  %v643_v33 = vld [vmem:[%s1384_s8 + $0x8] sm:$0xff] (!%p439_p9)  ;;  %vm736_vm2 = vcmask (!%p439_p9), 130048  }
  0x15   : > { %535 = vperm.xlu0 (!%p439_p9), %1040, %v532_v0   ;;  %695 = vmatprep.mubr.bf16.mxu1 (!%p439_p9), %v1122_v1  ;;  %s1402_s3 = sld [smem:[#allocation10_spill]] (!%p439_p9)  ;;  %s1403_s2 = sld [smem:[#allocation9_spill]] (!%p439_p9)  ;;  %v730_v34 = vld [vmem:[%s1386_s10] sm:$0xff] (!%p439_p9)  ;;  %v613_v39 = vshrl.u32 (!%p439_p9), %v612_v37, 7  ;;  %v638_v56 = vld [vmem:[%s1383_s7 + $0x8] sm:$0xff] (!%p439_p9) }
  0x16   : > { %1041 = vset.pattern.permute.xlu1 (!%p439_p9), %v1122_v1  ;;  %v592_v42 = vld [vmem:[%s1381_s5] sm:$0x3] (!%p439_p9)  ;;  %s489_s20 = sand.u32 (!%p439_p9), 1, %s1112_s30   ;;  %s999_s26 = sshll.u32 (!%p439_p9), %s1220_s17, 8 }
  0x17   : > { %v1289_v40 = vsub.s32 (!%p439_p9), 1, %v613_v39  ;;  %v1291_v41 = vsub.s32 (!%p439_p9), 0, %v613_v39  ;;  %v593_v43 = vld [vmem:[%s1382_s6] sm:$0x3] (!%p439_p9) }
  0x18   : > { %v637_v55 = vld [vmem:[%s1383_s7] sm:$0xff] (!%p439_p9) }
  0x19   : > { %v619_v44 = vrot.slane (!%p439_p9), %v592_v42, %v1289_v40  ;;  %v615_v45 = vrot.slane (!%p439_p9), %v592_v42, %v1291_v41  ;;  %v632_v48 = vrot.slane (!%p439_p9), %v593_v43, %v1289_v40  ;;  %v628_v50 = vrot.slane (!%p439_p9), %v593_v43, %v1291_v41 }
  0x1a   : > { %v639_v60 = vpack.c.bf16 (!%p439_p9), %v638_v56, %v637_v55 }
  0x1b   : > { %s500_s27 = scalar_select %p499_p10, %s1220_s17, 1  ;;  %v528_v9 = vld [vmem:[%s1402_s3] sm:$0xff] }
  0x1c   : > { %v529_v12 = vpack.c.bf16 %v528_v9, %v528_v9 }
  0x1d   : > { %s1252_s28 = sshll.u32 %s500_s27, 4 }
  0x1e   : > { %s503_s21 = scalar_lea.vmem %s1400_s0, %s1252_s28  ;;  %s508_s25 = scalar_lea.vmem %s1401_s1, %s1252_s28 }
  0x1f   : > { %v523_v2 = vld [vmem:[%s503_s21 + $0x8] sm:$0xff]  ;;  %v522_v4 = vld [vmem:[%s503_s21] sm:$0xff]  ;;  %s513_s18 = scalar_lea.vmem %s1403_s2, %s1252_s28  ;;  %s976_s21 = sshll.u32 %s489_s20, 4 }
  0x20   : > { %v525_v3 = vld [vmem:[%s508_s25 + $0x8] sm:$0xff]  ;;  %v524_v6 = vld [vmem:[%s508_s25] sm:$0xff]  ;;  %s491_s25 = scalar_lea.vmem [#allocation2], %s976_s21  ;;  %s842_s21 = scalar_lea.sflag [#allocation3], %s489_s20 }
  0x21   : > { %v527_v5 = vadd.f32 %v525_v3, %v523_v2  ;;  %v526_v7 = vadd.f32 %v524_v6, %v522_v4  ;;  %v520_v14 = vld [vmem:[%s513_s18] sm:$0xff]  ;;  %v521_v17 = vld [vmem:[%s513_s18 + $0x8] sm:$0xff]  ;;  %s861_s27 = sshll.u32 %s491_s25, 4  ;;  %s1324_s18 = scalar_lea.hbm %s1389_s13, %s999_s26  ;;  %s862_s27 = int_to_ptr.vmem [resolvable:$true] %s861_s27 }
  0x22   : > { %s1058_s0 = scalar_lea.vmem %s862_s27, 256  ;;  %s1123_s1 = smov [#allocation2]  }
  0x23   : > { %v531_v8 = vpack.c.bf16 %v527_v5, %v527_v5  ;;  %v530_v10 = vpack.c.bf16 %v526_v7, %v526_v7  ;;  %p1059_p11 = scmp.ne.s32.totalorder %s862_s27, %s1058_s0  ;;  %s1062_s2 = sshll.u32 %s1123_s1, 4  ;;  %s1063_s2 = int_to_ptr.vmem [resolvable:$false] %s1062_s2 }
  0x24   : > { %s1064_s3 = scalar_lea.vmem %s1063_s2, 512  ;;  %p1065_p0 = scmp.lt.s32.totalorder %s862_s27, %s1063_s2 }
  0x25   : > { %985 = vmatprep.subr.msk.bf16.mxu0 %vm542_vm0, %v531_v8  ;;  %v544_v11 = vsel %vm542_vm0, %v530_v10, 0  ;;  %p1060_p12 = pnand %p1059_p11, %p1237_p5  ;;  %p1066_p1 = scmp.lt.s32.totalorder %s1064_s3, %s1058_s0 }
  0x26   : > { %550 = vmatpush1.bf16.msra.mxu0 %v544_v11 }
  0x27   : > { %p1061_p13 = pneg %p1060_p12  ;;  %p1067_p2 = por %p1066_p1, %p1065_p0 }
  0x29   : > { %986 = vmatmul.mubr.msk.bf16.vlgmr.msra.gmra.mrb[0].mxu0 %vm538_vm1, %v529_v12  ;;  %p1068_p3 = pnand %p1067_p2, %p1061_p13 }
  0x2a   : > { %772 = vmatprep.mubr.bf16.mxu0 %v1122_v1 }
  0x94   : > { %v536_v13 = vpop.permute.xlu0 %535 }
  0xfc   : > { %v583_v15 = vpop.f32.mrb[0].mxu0 }
  0xfd   : > { %v584_v16 = vadd.f32 %v583_v15, %v536_v13  ;;  %v585_v18 = vpop.f32.mrb[1].mxu0 }
  0xfe   : > { %v586_v19 = vadd.f32 %v585_v18, %v536_v13  ;;  %v587_v20 = vpop.f32.mrb[2].mxu0 }
  0xff   : > { %v1272_v21 = vadd.f32 %v584_v16, %v520_v14  ;;  %v588_v22 = vpop.f32.mrb[3].mxu0 }
 0x100   : > { %v1274_v23 = vadd.f32 %v586_v19, %v521_v17 }
 0x102   : > { %v594_v24 = vadd.f32 %v1274_v23, %v1272_v21 }
 0x104   : > { %595 = vadd.xlane.f32.xlu0 %v594_v24 }
 0x191   : > { %v596_v25 = vpop.xlane.xlu0 %595 }
 0x192   : > { %v598_v26 = vmul.f32 0.00390625, %v596_v25 }
 0x194   : > { %v599_v27 = vsub.f32 %v1272_v21, %v598_v26  ;;  %v600_v28 = vsub.f32 %v1274_v23, %v598_v26 }
 0x196   : > { %v601_v29 = vmul.f32 %v599_v27, %v599_v27  ;;  %v602_v30 = vmul.f32 %v600_v28, %v600_v28 }
 0x198   : > { %v603_v31 = vadd.f32 %v602_v30, %v601_v29  ;;  %v726_v30 = vld [vmem:[%s1385_s9] sm:$0xff] }
 0x19a   : > { %604 = vadd.xlane.f32.xlu1 %v603_v31 }
 0x1ab   : > { %646 = vperm.xlu1 %1041, %v642_v32   ;;  %v727_v32 = vpack.c.bf16 %v726_v30, %v726_v30 }
 0x1af   : > { %651 = vperm.xlu1 %1041, %v643_v33  }
 0x1b3   : > { %733 = vperm.xlu1 %1041, %v730_v34  }
 0x227   : > { %v605_v35 = vpop.xlane.xlu1 %604 }
 0x228   : > { %v606_v36 = vmul.f32 0.00390625, %v605_v35 }
 0x22a   : > { %v607_v38 = vadd.f32 1e-05, %v606_v36 }
 0x22b   : > { %v647_v61 = vpop.permute.xlu1 %646 }
 0x22c   : > { %1042 = vrsqrt.f32 %v607_v38 }
 0x22f   : > { %v652_v1 = vpop.permute.xlu1 %651 }
 0x233   : > { %v734_v33 = vpop.permute.xlu1 %733 }
 0x236   : > { %v1043_v46 = vpop.eup %1042 }
 0x237   : > { %v610_v47 = vmul.f32 %v1043_v46, %v600_v28  ;;  %v609_v49 = vmul.f32 %v1043_v46, %v599_v27 }
 0x239   : > { %v623_v51 = vmul.f32 %v619_v44, %v610_v47  ;;  %v622_v52 = vmul.f32 %v615_v45, %v609_v49 }
 0x23b   : > { %v636_v53 = vadd.f32 %v632_v48, %v623_v51  ;;  %v635_v54 = vadd.f32 %v628_v50, %v622_v52 }
 0x23d   : > { %v641_v57 = vpack.c.bf16 %v636_v53, %v636_v53  ;;  %v640_v58 = vpack.c.bf16 %v635_v54, %v635_v54 }
 0x23f   : > { %987 = vmatprep.subr.msk.bf16.mxu1 %vm542_vm0, %v641_v57  ;;  %v658_v59 = vsel %vm542_vm0, %v640_v58, 0 }
 0x240   : > { %664 = vmatpush1.bf16.msra.mxu1 %v658_v59 }
 0x243   : > { %988 = vmatmul.mubr.msk.bf16.vlgmr.msra.gmra.mrb[0].mxu1 %vm538_vm1, %v639_v60 }
 0x316   : > { %v697_v62 = vpop.f32.mrb[0].mxu1 }
 0x317   : > { %v698_v63 = vadd.f32 %v697_v62, %v647_v61  ;;  %v699_v0 = vpop.f32.mrb[1].mxu1 }
 0x318   : > { %v700_v2 = vadd.f32 %v699_v0, %v647_v61  ;;  %v701_v3 = vpop.f32.mrb[2].mxu1 }
 0x319   : > { %v710_v4 = vmul.f32 0.70710677, %v698_v63  ;;  %v702_v5 = vadd.f32 %v701_v3, %v652_v1  ;;  %v703_v6 = vpop.f32.mrb[3].mxu1  ;;  %v706_v17 = vmul.f32 0.5, %v698_v63 }
 0x31a   : > { %v711_v7 = vmul.f32 0.70710677, %v700_v2  ;;  %v704_v8 = vadd.f32 %v703_v6, %v652_v1  ;;  %v707_v20 = vmul.f32 0.5, %v700_v2 }
 0x31b   : > { %1044 = verf.f32 %v710_v4  ;;  %v712_v9 = vmul.f32 0.70710677, %v702_v5  ;;  %v708_v18 = vmul.f32 0.5, %v702_v5 }
 0x31c   : > { %1046 = verf.f32 %v711_v7  ;;  %v713_v10 = vmul.f32 0.70710677, %v704_v8  ;;  %v709_v22 = vmul.f32 0.5, %v704_v8 }
 0x31d   : > { %1048 = verf.f32 %v712_v9 }
 0x31e   : > { %1050 = verf.f32 %v713_v10 }
 0x325   : > { %v1045_v11 = vpop.eup %1044 }
 0x326   : > { %v1047_v12 = vpop.eup %1046  ;;  %v718_v13 = vadd.f32 1.0, %v1045_v11 }
 0x327   : > { %v1049_v14 = vpop.eup %1048  ;;  %v719_v15 = vadd.f32 1.0, %v1047_v12 }
 0x328   : > { %v1051_v16 = vpop.eup %1050  ;;  %v720_v19 = vadd.f32 1.0, %v1049_v14  ;;  %v722_v25 = vmul.f32 %v718_v13, %v706_v17 }
 0x329   : > { %v721_v24 = vadd.f32 1.0, %v1051_v16  ;;  %v723_v27 = vmul.f32 %v719_v15, %v707_v20 }
 0x32a   : > { %v724_v26 = vmul.f32 %v720_v19, %v708_v18 }
 0x32b   : > { %v725_v28 = vmul.f32 %v721_v24, %v709_v22 }
 0x32c   : > { %v728_v29 = vpack.c.bf16 %v724_v26, %v722_v25 }
 0x32d   : > { %v729_v31 = vpack.c.bf16 %v725_v28, %v723_v27 }
 0x32f   : > { %740 = vmatprep.subr.bf16.mxu0 %v729_v31 }
 0x330   : > { %741 = vmatpush1.bf16.msra.mxu0 %v728_v29 }
 0x333   : > { %989 = vmatmul.mubr.msk.bf16.vlgmr.msra.gmra.mrb[4].mxu0 %vm736_vm2, %v727_v32 }
 0x406   : > { %v774_v34 = vpop.f32.mrb[4].mxu0 }
 0x407   : > { %v775_v35 = vadd.f32 %v774_v34, %v734_v33  ;;  %v776_v36 = vpop.f32.mrb[5].mxu0 }
 0x408   : > { %v777_v37 = vadd.f32 %v776_v36, %v734_v33  ;;  %v778_v38 = vpop.f32.mrb[6].mxu0 }
 0x409   : > { %v781_v39 = vadd.f32 %v775_v35, %v1272_v21  ;;  %v779_v42 = vpop.f32.mrb[7].mxu0 }
 0x40a   : > { %v782_v43 = vadd.f32 %v777_v37, %v1274_v23 }
 0x40b   : > { %v787_v44 = vmul.f32 0.70710677, %v781_v39  ;;  %783 = vst [vmem:[%s491_s25] sm:$0xff] %v781_v39  ;;  %v785_v48 = vmul.f32 0.5, %v781_v39 }
 0x40c   : > { %v788_v45 = vmul.f32 0.70710677, %v782_v43  ;;  %784 = vst [vmem:[%s491_s25 + $0x8] sm:$0xff] %v782_v43  ;;  %v786_v50 = vmul.f32 0.5, %v782_v43 }
 0x40d   : > { %1052 = verf.f32 %v787_v44 }
 0x40e   : > { %1054 = verf.f32 %v788_v45 }
 0x417   : > { %v1053_v46 = vpop.eup %1052 }
 0x418   : > { %v1055_v47 = vpop.eup %1054  ;;  %v791_v49 = vadd.f32 1.0, %v1053_v46 }
 0x419   : > { %v792_v51 = vadd.f32 1.0, %v1055_v47 }
 0x41a   : > { %v793_v52 = vmul.f32 %v791_v49, %v785_v48 }
 0x41b   : > { %v794_v21 = vmul.f32 %v792_v51, %v786_v50 }
 0x41d   : > { %v797_v53 = vadd.f32 %v794_v21, %v793_v52 }
 0x41f   : > { %798 = vadd.xlane.f32.xlu1 %v797_v53 }
 0x4ac   : > { %v799_v23 = vpop.xlane.xlu1 %798 }
 0x4ad   : > { %v800_v54 = vmul.f32 0.00390625, %v799_v23 }
 0x4af   : > { %v801_v55 = vsub.f32 %v793_v52, %v800_v54  ;;  %v802_v56 = vsub.f32 %v794_v21, %v800_v54 }
 0x4b1   : > { %v803_v57 = vmul.f32 %v801_v55, %v801_v55  ;;  %v804_v58 = vmul.f32 %v802_v56, %v802_v56 }
 0x4b3   : > { %v805_v59 = vadd.f32 %v804_v58, %v803_v57 }
 0x4b5   : > { %806 = vadd.xlane.f32.xlu0 %v805_v59 }
 0x4b6   : > { %1071 = shalt.err (!%p1068_p3)
}
 0x4b7   : > { %s1072_s17 = scalar_lea.hbm %s1324_s18, 256  ;;  %s1076_s1 = scalar_lea.hbm %s1389_s13, 512 }
 0x4b8   : > { %p1073_p4 = scmp.ne.s32.totalorder %s1324_s18, %s1072_s17  ;;  %p1077_p9 = scmp.lt.u32.totalorder %s1324_s18, %s1389_s13 }
 0x4b9   : > { %p1078_p10 = scmp.lt.u32.totalorder %s1076_s1, %s1072_s17  ;;  %p1080_p12 = scmp.lt.u32.totalorder %s1072_s17, %s1324_s18 }
 0x4ba   : > { %p1074_p7 = pnand %p1073_p4, %p1237_p5 }
 0x4bb   : > { %p1079_p11 = por %p1078_p10, %p1077_p9 }
 0x4bc   : > { %p1075_p8 = pneg %p1074_p7 }
 0x4bd   : > { %p1081_p13 = por %p1080_p12, %p1079_p11 }
 0x4bf   : > { %p1082_p0 = pnand %p1081_p13, %p1075_p8 }
 0x4c1   : > { %1085 = shalt.err (!%p1082_p0)
}
 0x4c2   : > { %1000 = dma.vmem_to_hbm [thread:$0]  (%p1237_p5), %s862_s27, 256, %s1324_s18, %s842_s21   ;;  %v795_v63 = vld [vmem:[%s1387_s11] sm:$0x3] }
 0x4c3   : > { %v796_v0 = vld [vmem:[%s1388_s12] sm:$0x3]  ;;  %v817_v1 = vrot.slane %v795_v63, %v1291_v41  ;;  %v821_v2 = vrot.slane %v795_v63, %v1289_v40  ;;  %s518_s18 = scalar_lea.vmem %s1390_s14, %s1252_s28 }
 0x4c4   : > { %v830_v4 = vrot.slane %v796_v0, %v1291_v41  ;;  %v834_v5 = vrot.slane %v796_v0, %v1289_v40 }
 0x542   : > { %v807_v60 = vpop.xlane.xlu0 %806 }
 0x543   : > { %v808_v61 = vmul.f32 0.00390625, %v807_v60 }
 0x545   : > { %v809_v62 = vadd.f32 1e-05, %v808_v61 }
 0x547   : > { %1056 = vrsqrt.f32 %v809_v62 }
 0x551   : > { %v1057_v3 = vpop.eup %1056 }
 0x552   : > { %v811_v6 = vmul.f32 %v1057_v3, %v801_v55  ;;  %v812_v7 = vmul.f32 %v1057_v3, %v802_v56 }
 0x554   : > { %v824_v8 = vmul.f32 %v817_v1, %v811_v6  ;;  %v825_v9 = vmul.f32 %v821_v2, %v812_v7 }
 0x556   : > { %v837_v10 = vadd.f32 %v830_v4, %v824_v8  ;;  %v838_v11 = vadd.f32 %v834_v5, %v825_v9 }
 0x558   : > { %839 = vst [vmem:[%s518_s18] sm:$0xff] %v837_v10  ;;  %840 = vst [vmem:[%s518_s18 + $0x8] sm:$0xff] %v838_v11 }
 0x559 PF: > { %p1006_p5 = scmp.ge.s32.totalorder %s1120_s16, 2  ;;  %s876_s21 = sand.u32 1, %s1108_s29  }
 0x55a   : > { %s877_s17 = scalar_lea.sflag [#allocation3], %s876_s21 }
 0x55b   : > { %p1003_p1 = pnand %p1006_p5, %p1241_p6 }
 0x55d   : > { %1103 = dma.done.wait (!%p1003_p1), %s877_s17, 256  }
 0x55e   : > { %1105 = vsyncadd (!%p1003_p1), %s877_s17, 4294967040  ;;  %s1404_s20 = sld [smem:[#allocation5_spill]]  ;;  %s1405_s15 = sld [smem:[#allocation6_spill]] }
 0x55f   : > { %p25_p2 = scmp.ge.s32.totalorder %s1224_s19, 4   ;;  %s1406_s29 = smov %s1112_s30 }
 0x560   : > { %s1408_s16 = smov %s1224_s19 }
 0x561   :  { %27 = sbr.rel (!%p25_p2) target bundleno = 8 (0x8), region = 125 }
 0x564   : > { %s1407_s30 = smov %s1404_s20 }
 0x568   :  { %890 = vsyncpa [#allocation3], 1 }
 0x569   :  { %892 = vsyncpa [#allocation3 + $0x1], 1 }

</bundles_post_ra>
